<compile_context>
chip_gen: v5e
topology: v5e:2x2
jax: 0.10.0
libtpu: 0.0.40
codegen_flags: <defaults>
</compile_context>

<pallas_src>
import functools

import jax
import jax.numpy as jnp
from jax.experimental import pallas as pl
from jax.experimental.pallas import tpu as pltpu


def _round_up(x, m):
    return ((x + m - 1) // m) * m


def _device_kind() -> str:
    try:
        return jax.devices()[0].device_kind.lower()
    except Exception:
        return ""


_KIND = _device_kind()
_IS_V5 = "v5" in _KIND


def _vmem_limit() -> int:
    # v5e/v6e (and v4) have 128 MiB physical VMEM -> 96 MiB scope; v7x has only
    # 64 MiB physical -> stay <= 48 MiB; unknown backends keep a safe default.
    if "v7" in _KIND:
        return 48 * 1024 * 1024
    if any(g in _KIND for g in ("v4", "v5", "v6")):
        return 96 * 1024 * 1024
    return 32 * 1024 * 1024


_VMEM_LIMIT = _vmem_limit()


# --------------------------- tiled MXU matmul -------------------------------

def _matmul_tiles():
    if _IS_V5:
        # v5e MXU is 4x128x128 and has a single vector-store slot: a 256-wide
        # N tile buys nothing; keep tiles narrow and the pipeline deep.
        return 512, 128, 256
    return 256, 256, 512


def _matmul_kernel(x_ref, w_ref, o_ref, acc_ref):
    @pl.when(pl.program_id(2) == 0)
    def _():
        acc_ref[...] = jnp.zeros_like(acc_ref)
    acc_ref[...] += jnp.dot(x_ref[...], w_ref[...],
                            preferred_element_type=jnp.float32)

    @pl.when(pl.program_id(2) == pl.num_programs(2) - 1)
    def _():
        o_ref[...] = acc_ref[...].astype(o_ref.dtype)


def pallas_matmul(x, w, *, out_dtype=jnp.bfloat16, tiles=None):
    """x:(M,K) @ w:(K,N) -> (M,N) in out_dtype (bf16 MXU inputs, f32 acc).
    Inputs are zero-padded to tile multiples (zero rows/cols contribute 0)."""
    M, K = x.shape
    K2, N = w.shape
    assert K == K2
    tm, tn, tk = tiles if tiles is not None else _matmul_tiles()
    tm = min(tm, _round_up(M, 8))
    tn = min(tn, _round_up(N, 128))
    tk = min(tk, _round_up(K, 128))
    Mp, Np, Kp = _round_up(M, tm), _round_up(N, tn), _round_up(K, tk)
    xp = jnp.pad(x.astype(jnp.bfloat16), ((0, Mp - M), (0, Kp - K)))
    wp = jnp.pad(w.astype(jnp.bfloat16), ((0, Kp - K), (0, Np - N)))
    out = pl.pallas_call(
        _matmul_kernel,
        out_shape=jax.ShapeDtypeStruct((Mp, Np), out_dtype),
        grid=(Mp // tm, Np // tn, Kp // tk),
        in_specs=[pl.BlockSpec((tm, tk), lambda i, j, k: (i, k)),
                  pl.BlockSpec((tk, tn), lambda i, j, k: (k, j))],
        out_specs=pl.BlockSpec((tm, tn), lambda i, j, k: (i, j)),
        scratch_shapes=[pltpu.VMEM((tm, tn), jnp.float32)],
        compiler_params=pltpu.CompilerParams(
            dimension_semantics=("parallel", "parallel", "arbitrary"),
            vmem_limit_bytes=_VMEM_LIMIT),
    )(xp, wp)
    return out[:M, :N]


# ----------------- fused 3x3 conv (pad + im2col + one MXU matmul) -----------
# One grid step per batch sample: zero-pad into an f32 VMEM scratch (border
# only re-zeroed), gather the 9 taps into a bf16 im2col scratch, and run ONE
# matmul with K = 9*Cin.  Optional prologue fuses a per-channel affine
# (folded BatchNorm) + ReLU onto the conv input; optional epilogue emits the
# per-sample channel sum/sumsq used to fold the *next* BatchNorm.

def _conv3x3_kernel(x_ref, w_ref, scale_ref, bias_ref, *rest, H, W, Ho, Wo,
                    Cin, stride, apply_prologue, with_stats):
    if with_stats:
        o_ref, sum_ref, ssq_ref, pad_ref, col_ref = rest
    else:
        o_ref, pad_ref, col_ref = rest

    x = x_ref[0].astype(jnp.float32)                        # (H, W, Cin)
    if apply_prologue:                                      # BN affine + ReLU
        x = jnp.maximum(x * scale_ref[...] + bias_ref[...], 0.0)

    # Zero only the 1-px border (interior fully overwritten below).  Done every
    # step (not pl.when(first)) because the grid axis is 'parallel': a megacore
    # split may start a core mid-grid with an uninitialised scratch.
    pad_ref[0:1, :, :] = jnp.zeros((1, W + 2, Cin), jnp.float32)
    pad_ref[H + 1:H + 2, :, :] = jnp.zeros((1, W + 2, Cin), jnp.float32)
    pad_ref[:, 0:1, :] = jnp.zeros((H + 2, 1, Cin), jnp.float32)
    pad_ref[:, W + 1:W + 2, :] = jnp.zeros((H + 2, 1, Cin), jnp.float32)
    pad_ref[1:H + 1, 1:W + 1, :] = x

    # im2col: K ordering is (tap = ky*3 + kx, ci), matching the weight layout.
    for tap in range(9):                                    # static unroll, 9 copies
        dy, dx = tap // 3, tap % 3
        if stride == 1:
            patch = pad_ref[dy:dy + Ho, dx:dx + Wo, :]
        else:
            # TODO(synk): strided-gather path is not exercised by the demo.
            patch = pad_ref[pl.ds(dy, Ho, stride), pl.ds(dx, Wo, stride), :]
        col_ref[:, :, tap * Cin:(tap + 1) * Cin] = patch.astype(jnp.bfloat16)

    cols = col_ref[...].reshape(Ho * Wo, 9 * Cin)
    res = jnp.dot(cols, w_ref[...], preferred_element_type=jnp.float32)
    o_ref[0] = res.astype(o_ref.dtype)
    if with_stats:                                          # BatchNorm partials
        sum_ref[0] = jnp.sum(res, axis=0, keepdims=True)
        ssq_ref[0] = jnp.sum(res * res, axis=0, keepdims=True)


def pallas_conv3x3(x_nhwc, w2d, *, stride=1, prologue_scale=None,
                   prologue_bias=None, with_stats=False,
                   out_dtype=jnp.bfloat16):
    """3x3 conv, padding=1, no bias.  w2d: (9*Cin, Cout) bf16 (HWIO-flattened).
    Returns (N, Ho*Wo, Cout) in out_dtype; with_stats also returns per-sample
    channel sum / sumsq (N, 1, Cout) f32 of the f32 conv result."""
    N, H, W, Cin = x_nhwc.shape
    K9, Cout = w2d.shape
    assert K9 == 9 * Cin
    Ho = (H - 1) // stride + 1
    Wo = (W - 1) // stride + 1

    apply_prologue = prologue_scale is not None
    if not apply_prologue:
        prologue_scale = jnp.ones((Cin,), jnp.float32)
        prologue_bias = jnp.zeros((Cin,), jnp.float32)
    scale = prologue_scale.reshape(1, 1, Cin).astype(jnp.float32)
    bias = prologue_bias.reshape(1, 1, Cin).astype(jnp.float32)

    kern = functools.partial(_conv3x3_kernel, H=H, W=W, Ho=Ho, Wo=Wo, Cin=Cin,
                             stride=stride, apply_prologue=apply_prologue,
                             with_stats=with_stats)

    out_shape = [jax.ShapeDtypeStruct((N, Ho * Wo, Cout), out_dtype)]
    out_specs = [pl.BlockSpec((1, Ho * Wo, Cout), lambda n: (n, 0, 0))]
    if with_stats:
        out_shape += [jax.ShapeDtypeStruct((N, 1, Cout), jnp.float32)] * 2
        out_specs += [pl.BlockSpec((1, 1, Cout), lambda n: (n, 0, 0))] * 2

    outs = pl.pallas_call(
        kern,
        out_shape=tuple(out_shape),
        grid=(N,),
        in_specs=[pl.BlockSpec((1, H, W, Cin), lambda n: (n, 0, 0, 0)),
                  pl.BlockSpec((9 * Cin, Cout), lambda n: (0, 0)),
                  pl.BlockSpec((1, 1, Cin), lambda n: (0, 0, 0)),
                  pl.BlockSpec((1, 1, Cin), lambda n: (0, 0, 0))],
        out_specs=tuple(out_specs),
        # TODO(synk): for very large H*W*C (v7x, 64 MiB VMEM) tile over output
        # rows with a 2-row halo instead of one whole sample per grid step.
        scratch_shapes=[pltpu.VMEM((H + 2, W + 2, Cin), jnp.float32),
                        pltpu.VMEM((Ho, Wo, 9 * Cin), jnp.bfloat16)],
        compiler_params=pltpu.CompilerParams(
            dimension_semantics=("parallel",),
            vmem_limit_bytes=_VMEM_LIMIT),
    )(x_nhwc, w2d, scale, bias)
    if with_stats:
        return outs
    return outs[0]


# -------------------- tiled per-channel sum / sum-of-squares ----------------
# Used only for the projection-shortcut BatchNorm (conv1's stats are fused
# into the conv epilogue above).

def _channel_stats_kernel(x_ref, sum_ref, ssq_ref):
    @pl.when(pl.program_id(0) == 0)
    def _():
        sum_ref[...] = jnp.zeros_like(sum_ref)
        ssq_ref[...] = jnp.zeros_like(ssq_ref)
    x = x_ref[...].astype(jnp.float32)
    sum_ref[...] += jnp.sum(x, axis=0, keepdims=True)
    ssq_ref[...] += jnp.sum(x * x, axis=0, keepdims=True)


def pallas_channel_stats(x2d, *, tile_m=1024):
    M, C = x2d.shape
    tile_m = min(tile_m, _round_up(M, 8))
    Mp = _round_up(M, tile_m)
    xp = jnp.pad(x2d, ((0, Mp - M), (0, 0)))        # zero rows: no effect on sums
    s, ss = pl.pallas_call(
        _channel_stats_kernel,
        out_shape=(jax.ShapeDtypeStruct((1, C), jnp.float32),
                   jax.ShapeDtypeStruct((1, C), jnp.float32)),
        grid=(Mp // tile_m,),
        in_specs=[pl.BlockSpec((tile_m, C), lambda i: (i, 0))],
        out_specs=(pl.BlockSpec((1, C), lambda i: (0, 0)),
                   pl.BlockSpec((1, C), lambda i: (0, 0))),
        compiler_params=pltpu.CompilerParams(
            dimension_semantics=("arbitrary",),
            vmem_limit_bytes=_VMEM_LIMIT),
    )(xp)
    return s[0], ss[0]


def _fold_bn(sum_, sumsq, count, gamma, beta, eps=1e-5):
    """Fold train-mode BatchNorm (biased batch var) into per-channel scale/bias."""
    mean = sum_ / count
    var = jnp.maximum(sumsq / count - mean * mean, 0.0)
    scale = gamma / jnp.sqrt(var + eps)
    bias = beta - mean * scale
    return scale, bias


# ----------------------- instance (AdaIN style) statistics ------------------

def _instance_stats_kernel(x_ref, mean_ref, std_ref, *, hw, eps):
    x = x_ref[0].astype(jnp.float32)                       # (HW, C)
    # TODO(synk): hw == 1 divides by zero (torch's unbiased var is NaN there too).
    mean = jnp.mean(x, axis=0, keepdims=True)
    var = jnp.sum((x - mean) ** 2, axis=0, keepdims=True) * (1.0 / (hw - 1))
    mean_ref[0] = mean
    std_ref[0] = jnp.sqrt(var + eps)


def pallas_instance_stats(feat, *, eps=1e-5):
    Ns, HW, C = feat.shape
    kern = functools.partial(_instance_stats_kernel, hw=HW, eps=eps)
    return pl.pallas_call(
        kern,
        out_shape=(jax.ShapeDtypeStruct((Ns, 1, C), jnp.float32),
                   jax.ShapeDtypeStruct((Ns, 1, C), jnp.float32)),
        grid=(Ns,),
        in_specs=[pl.BlockSpec((1, HW, C), lambda n: (n, 0, 0))],
        out_specs=(pl.BlockSpec((1, 1, C), lambda n: (n, 0, 0)),
                   pl.BlockSpec((1, 1, C), lambda n: (n, 0, 0))),
        compiler_params=pltpu.CompilerParams(
            dimension_semantics=("parallel",),
            vmem_limit_bytes=_VMEM_LIMIT),
    )(feat)


# -------------- fused AdaIN + shortcut-BN affine + residual + ReLU ----------
# Per sample: content samples get instance-normalised and re-scaled with the
# hoisted style stats; style samples pass through; then the (optionally
# BN-affined) shortcut is added and ReLU applied — one HBM read/write of the
# activation instead of three elementwise passes.  feat / sc may be bf16.

def _adain_add_relu_kernel(feat_ref, smean_ref, sstd_ref, sc_ref, scg_ref,
                           scb_ref, o_ref, *, n_content, hw, eps):
    f = feat_ref[0].astype(jnp.float32)                    # (HW, C)
    sc = sc_ref[0].astype(jnp.float32) * scg_ref[0] + scb_ref[0]
    mean = jnp.mean(f, axis=0, keepdims=True)
    var = jnp.sum((f - mean) ** 2, axis=0, keepdims=True) * (1.0 / (hw - 1))
    adain = (f - mean) * jax.lax.rsqrt(var + eps) * sstd_ref[0] + smean_ref[0]
    is_content = (pl.program_id(0) < n_content).astype(jnp.float32)
    out = is_content * adain + (1.0 - is_content) * f
    o_ref[0] = jnp.maximum(out + sc, 0.0).astype(o_ref.dtype)


def pallas_adain_add_relu(feat, s_mean, s_std, sc, sc_scale, sc_bias,
                          *, n_content, eps=1e-5):
    N, HW, C = feat.shape
    scg = sc_scale.reshape(1, 1, C).astype(jnp.float32)
    scb = sc_bias.reshape(1, 1, C).astype(jnp.float32)
    kern = functools.partial(_adain_add_relu_kernel, n_content=n_content,
                             hw=HW, eps=eps)
    # TODO(synk): for very large HW*C on v7x, split into a stats pass + an
    # HW-tiled normalize/add/ReLU pass to cap per-sample VMEM residency.
    return pl.pallas_call(
        kern,
        out_shape=jax.ShapeDtypeStruct((N, HW, C), jnp.float32),
        grid=(N,),
        in_specs=[pl.BlockSpec((1, HW, C), lambda n: (n, 0, 0)),
                  pl.BlockSpec((1, 1, C), lambda n: (0, 0, 0)),
                  pl.BlockSpec((1, 1, C), lambda n: (0, 0, 0)),
                  pl.BlockSpec((1, HW, C), lambda n: (n, 0, 0)),
                  pl.BlockSpec((1, 1, C), lambda n: (0, 0, 0)),
                  pl.BlockSpec((1, 1, C), lambda n: (0, 0, 0))],
        out_specs=pl.BlockSpec((1, HW, C), lambda n: (n, 0, 0)),
        compiler_params=pltpu.CompilerParams(
            dimension_semantics=("parallel",),
            vmem_limit_bytes=_VMEM_LIMIT),
    )(feat, s_mean, s_std, sc, scg, scb)


# ------------------------------ PostBlock ----------------------------------

def init_post_block_params(key, in_planes, planes, stride=1):
    k1, k2, k3, k4, k5 = jax.random.split(key, 5)

    def conv3_w(k, cin, cout):
        w = 0.1 * jax.random.normal(k, (cout, cin, 3, 3), jnp.float32)  # OIHW
        # fold the HWIO transpose + (ky,kx,ci) flatten into the stored param
        return jnp.transpose(w, (2, 3, 1, 0)).reshape(9 * cin, cout).astype(jnp.bfloat16)

    params = {
        "stride": stride, "in_planes": in_planes, "planes": planes,
        "conv1_w": conv3_w(k1, in_planes, planes),
        "conv2_w": conv3_w(k2, planes, planes),
        "bn_gamma": 1.0 + 0.1 * jax.random.normal(k3, (planes,), jnp.float32),
        "bn_beta": 0.1 * jax.random.normal(k4, (planes,), jnp.float32),
    }
    if stride != 1 or in_planes != planes:
        w = 0.1 * jax.random.normal(k5, (planes, in_planes, 1, 1), jnp.float32)
        params["sc_conv_w"] = w.reshape(planes, in_planes).T.astype(jnp.bfloat16)  # (Cin,Cout)
        params["sc_bn_gamma"] = jnp.ones((planes,), jnp.float32)
        params["sc_bn_beta"] = jnp.zeros((planes,), jnp.float32)
    return params


def post_block_forward(params, x_nchw, style_label, b):
    """Matches PostBlock.forward(x, style_label, b).  x_nchw: (N, Cin, H, W).
    The last `b` batch elements are style images; `style_label` (python int)
    selects which style sample's statistics drive AdaIN."""
    stride = params["stride"]
    planes = params["planes"]
    x = jnp.transpose(x_nchw, (0, 2, 3, 1)).astype(jnp.float32)   # NHWC
    N, H, W, Cin = x.shape
    Ho = (H - 1) // stride + 1
    Wo = (W - 1) // stride + 1
    m_count = N * Ho * Wo

    # conv1 with fused per-sample channel-stat partials (no stats re-read pass)
    out1, s1, ss1 = pallas_conv3x3(x, params["conv1_w"], stride=stride,
                                   with_stats=True)               # bf16
    bn_scale, bn_bias = _fold_bn(jnp.sum(s1, axis=(0, 1)),
                                 jnp.sum(ss1, axis=(0, 1)), m_count,
                                 params["bn_gamma"], params["bn_beta"])

    # conv2 with fused BatchNorm-apply + ReLU prologue
    feat = pallas_conv3x3(out1.reshape(N, Ho, Wo, planes), params["conv2_w"],
                          stride=1, prologue_scale=bn_scale,
                          prologue_bias=bn_bias)                  # (N,Ho*Wo,planes) bf16

    # hoisted AdaIN style statistics (selected style sample only)
    sidx = N - b + style_label
    s_mean, s_std = pallas_instance_stats(feat[sidx:sidx + 1])    # (1,1,C) each

    # shortcut: identity, or tiled-matmul 1x1 conv with BN folded to scale/bias
    if stride == 1 and Cin == planes:
        sc = x.reshape(N, H * W, Cin)
        sc_scale = jnp.ones((planes,), jnp.float32)
        sc_bias = jnp.zeros((planes,), jnp.float32)
    else:
        xs = x[:, ::stride, ::stride, :]                          # exact for 1x1/stride
        sc_raw = pallas_matmul(xs.reshape(N * Ho * Wo, Cin), params["sc_conv_w"])
        s2, ss2 = pallas_channel_stats(sc_raw)
        sc_scale, sc_bias = _fold_bn(s2, ss2, m_count,
                                     params["sc_bn_gamma"], params["sc_bn_beta"])
        sc = sc_raw.reshape(N, Ho * Wo, planes)

    # fused AdaIN + shortcut affine + residual add + ReLU
    out = pallas_adain_add_relu(feat, s_mean, s_std, sc, sc_scale, sc_bias,
                                n_content=N - b)
    out = out.reshape(N, Ho, Wo, planes)
    return jnp.transpose(out, (0, 3, 1, 2))                       # back to NCHW


if __name__ == "__main__":
    key = jax.random.PRNGKey(0)
    kx, kp1, kp2 = jax.random.split(key, 3)

    b = 1                   # number of style images appended to the batch
    N, Cin, H, W = 3, 4, 16, 16
    x = jax.random.normal(kx, (N, Cin, H, W), jnp.float32)

    # config 1: identity shortcut (in_planes == planes, stride 1)
    params1 = init_post_block_params(kp1, Cin, Cin, stride=1)
    out1 = jax.block_until_ready(post_block_forward(params1, x, style_label=0, b=b))
    assert out1.shape == (N, Cin, H, W)
    assert bool(jnp.all(jnp.isfinite(out1)))

    # config 2: projection shortcut (1x1 conv + BN) exercising the tiled matmul
    planes2 = 8
    params2 = init_post_block_params(kp2, Cin, planes2, stride=1)
    out2 = jax.block_until_ready(post_block_forward(params2, x, style_label=0, b=b))
    assert out2.shape == (N, planes2, H, W)
    assert bool(jnp.all(jnp.isfinite(out2)))

    print("KERNEL_OK")
</pallas_src>

<mosaic_0001>
module attributes {stable_mosaic.version = 11 : i64} {
  func.func @_conv3x3_kernel(%arg0: i32, %arg1: memref<1x16x16x4xf32, #tpu.memory_space<vmem>>, %arg2: memref<36x4xbf16, #tpu.memory_space<vmem>>, %arg3: memref<1x1x4xf32, #tpu.memory_space<vmem>>, %arg4: memref<1x1x4xf32, #tpu.memory_space<vmem>>, %arg5: memref<1x256x4xbf16, #tpu.memory_space<vmem>>, %arg6: memref<1x1x4xf32, #tpu.memory_space<vmem>>, %arg7: memref<1x1x4xf32, #tpu.memory_space<vmem>>, %arg8: memref<18x18x4xf32, #tpu.memory_space<vmem>>, %arg9: memref<16x16x36xbf16, #tpu.memory_space<vmem>>) attributes {dimension_semantics = [#tpu.dimension_semantics<parallel>], iteration_bounds = array<i64: 3>, scalar_prefetch = 0 : i64, scratch_operands = 2 : i64, tpu.core_type = #tpu.core_type<tc>, window_params = [{transform_indices = @transform_0, window_bounds = array<i64: 1, 16, 16, 4>}, {pipeline_mode = #tpu.pipeline_mode<synchronous>, transform_indices = @transform_1, window_bounds = array<i64: 36, 4>}, {pipeline_mode = #tpu.pipeline_mode<synchronous>, transform_indices = @transform_2, window_bounds = array<i64: 1, 1, 4>}, {pipeline_mode = #tpu.pipeline_mode<synchronous>, transform_indices = @transform_3, window_bounds = array<i64: 1, 1, 4>}, {transform_indices = @transform_4, window_bounds = array<i64: 1, 256, 4>}, {transform_indices = @transform_5, window_bounds = array<i64: 1, 1, 4>}, {transform_indices = @transform_6, window_bounds = array<i64: 1, 1, 4>}]} {
    %c0 = arith.constant 0 : index
    %c0_0 = arith.constant 0 : index
    %c0_1 = arith.constant 0 : index
    %c0_2 = arith.constant 0 : index
    %0 = vector.load %arg1[%c0, %c0_0, %c0_1, %c0_2] : memref<1x16x16x4xf32, #tpu.memory_space<vmem>>, vector<1x16x16x4xf32>
    %1 = vector.shape_cast %0 : vector<1x16x16x4xf32> to vector<16x16x4xf32>
    %cst = arith.constant 0.000000e+00 : f32
    %2 = vector.broadcast %cst : f32 to vector<1x18x4xf32>
    %c0_3 = arith.constant 0 : index
    %c0_4 = arith.constant 0 : index
    %c0_5 = arith.constant 0 : index
    %3 = vector.load %arg8[%c0_3, %c0_4, %c0_5] : memref<18x18x4xf32, #tpu.memory_space<vmem>>, vector<1x18x4xf32>
    tpu.vector_store %arg8[%c0_3, %c0_4, %c0_5], %2 {strides = array<i32>} : memref<18x18x4xf32, #tpu.memory_space<vmem>>, vector<1x18x4xf32>,
    %cst_6 = arith.constant 0.000000e+00 : f32
    %4 = vector.broadcast %cst_6 : f32 to vector<1x18x4xf32>
    %c17 = arith.constant 17 : index
    %c0_7 = arith.constant 0 : index
    %c0_8 = arith.constant 0 : index
    %5 = vector.load %arg8[%c17, %c0_7, %c0_8] : memref<18x18x4xf32, #tpu.memory_space<vmem>>, vector<1x18x4xf32>
    tpu.vector_store %arg8[%c17, %c0_7, %c0_8], %4 {strides = array<i32>} : memref<18x18x4xf32, #tpu.memory_space<vmem>>, vector<1x18x4xf32>,
    %cst_9 = arith.constant 0.000000e+00 : f32
    %6 = vector.broadcast %cst_9 : f32 to vector<18x1x4xf32>
    %c0_10 = arith.constant 0 : index
    %c0_11 = arith.constant 0 : index
    %c0_12 = arith.constant 0 : index
    %7 = vector.load %arg8[%c0_10, %c0_11, %c0_12] : memref<18x18x4xf32, #tpu.memory_space<vmem>>, vector<18x1x4xf32>
    tpu.vector_store %arg8[%c0_10, %c0_11, %c0_12], %6 {strides = array<i32>} : memref<18x18x4xf32, #tpu.memory_space<vmem>>, vector<18x1x4xf32>,
    %cst_13 = arith.constant 0.000000e+00 : f32
    %8 = vector.broadcast %cst_13 : f32 to vector<18x1x4xf32>
    %c0_14 = arith.constant 0 : index
    %c17_15 = arith.constant 17 : index
    %c0_16 = arith.constant 0 : index
    %9 = vector.load %arg8[%c0_14, %c17_15, %c0_16] : memref<18x18x4xf32, #tpu.memory_space<vmem>>, vector<18x1x4xf32>
    tpu.vector_store %arg8[%c0_14, %c17_15, %c0_16], %8 {strides = array<i32>} : memref<18x18x4xf32, #tpu.memory_space<vmem>>, vector<18x1x4xf32>,
    %c1 = arith.constant 1 : index
    %c1_17 = arith.constant 1 : index
    %c0_18 = arith.constant 0 : index
    %10 = vector.load %arg8[%c1, %c1_17, %c0_18] : memref<18x18x4xf32, #tpu.memory_space<vmem>>, vector<16x16x4xf32>
    tpu.vector_store %arg8[%c1, %c1_17, %c0_18], %1 {strides = array<i32>} : memref<18x18x4xf32, #tpu.memory_space<vmem>>, vector<16x16x4xf32>,
    %c0_19 = arith.constant 0 : index
    %c0_20 = arith.constant 0 : index
    %c0_21 = arith.constant 0 : index
    %11 = vector.load %arg8[%c0_19, %c0_20, %c0_21] : memref<18x18x4xf32, #tpu.memory_space<vmem>>, vector<16x16x4xf32>
    %12 = arith.truncf %11 : vector<16x16x4xf32> to vector<16x16x4xbf16>
    %c0_22 = arith.constant 0 : index
    %c0_23 = arith.constant 0 : index
    %c0_24 = arith.constant 0 : index
    %13 = vector.load %arg9[%c0_22, %c0_23, %c0_24] : memref<16x16x36xbf16, #tpu.memory_space<vmem>>, vector<16x16x4xbf16>
    tpu.vector_store %arg9[%c0_22, %c0_23, %c0_24], %12 {strides = array<i32>} : memref<16x16x36xbf16, #tpu.memory_space<vmem>>, vector<16x16x4xbf16>,
    %c0_25 = arith.constant 0 : index
    %c1_26 = arith.constant 1 : index
    %c0_27 = arith.constant 0 : index
    %14 = vector.load %arg8[%c0_25, %c1_26, %c0_27] : memref<18x18x4xf32, #tpu.memory_space<vmem>>, vector<16x16x4xf32>
    %15 = arith.truncf %14 : vector<16x16x4xf32> to vector<16x16x4xbf16>
    %c0_28 = arith.constant 0 : index
    %c0_29 = arith.constant 0 : index
    %c4 = arith.constant 4 : index
    %16 = vector.load %arg9[%c0_28, %c0_29, %c4] : memref<16x16x36xbf16, #tpu.memory_space<vmem>>, vector<16x16x4xbf16>
    tpu.vector_store %arg9[%c0_28, %c0_29, %c4], %15 {strides = array<i32>} : memref<16x16x36xbf16, #tpu.memory_space<vmem>>, vector<16x16x4xbf16>,
    %c0_30 = arith.constant 0 : index
    %c2 = arith.constant 2 : index
    %c0_31 = arith.constant 0 : index
    %17 = vector.load %arg8[%c0_30, %c2, %c0_31] : memref<18x18x4xf32, #tpu.memory_space<vmem>>, vector<16x16x4xf32>
    %18 = arith.truncf %17 : vector<16x16x4xf32> to vector<16x16x4xbf16>
    %c0_32 = arith.constant 0 : index
    %c0_33 = arith.constant 0 : index
    %c8 = arith.constant 8 : index
    %19 = vector.load %arg9[%c0_32, %c0_33, %c8] : memref<16x16x36xbf16, #tpu.memory_space<vmem>>, vector<16x16x4xbf16>
    tpu.vector_store %arg9[%c0_32, %c0_33, %c8], %18 {strides = array<i32>} : memref<16x16x36xbf16, #tpu.memory_space<vmem>>, vector<16x16x4xbf16>,
    %c1_34 = arith.constant 1 : index
    %c0_35 = arith.constant 0 : index
    %c0_36 = arith.constant 0 : index
    %20 = vector.load %arg8[%c1_34, %c0_35, %c0_36] : memref<18x18x4xf32, #tpu.memory_space<vmem>>, vector<16x16x4xf32>
    %21 = arith.truncf %20 : vector<16x16x4xf32> to vector<16x16x4xbf16>
    %c0_37 = arith.constant 0 : index
    %c0_38 = arith.constant 0 : index
    %c12 = arith.constant 12 : index
    %22 = vector.load %arg9[%c0_37, %c0_38, %c12] : memref<16x16x36xbf16, #tpu.memory_space<vmem>>, vector<16x16x4xbf16>
    tpu.vector_store %arg9[%c0_37, %c0_38, %c12], %21 {strides = array<i32>} : memref<16x16x36xbf16, #tpu.memory_space<vmem>>, vector<16x16x4xbf16>,
    %c1_39 = arith.constant 1 : index
    %c1_40 = arith.constant 1 : index
    %c0_41 = arith.constant 0 : index
    %23 = vector.load %arg8[%c1_39, %c1_40, %c0_41] : memref<18x18x4xf32, #tpu.memory_space<vmem>>, vector<16x16x4xf32>
    %24 = arith.truncf %23 : vector<16x16x4xf32> to vector<16x16x4xbf16>
    %c0_42 = arith.constant 0 : index
    %c0_43 = arith.constant 0 : index
    %c16 = arith.constant 16 : index
    %25 = vector.load %arg9[%c0_42, %c0_43, %c16] : memref<16x16x36xbf16, #tpu.memory_space<vmem>>, vector<16x16x4xbf16>
    tpu.vector_store %arg9[%c0_42, %c0_43, %c16], %24 {strides = array<i32>} : memref<16x16x36xbf16, #tpu.memory_space<vmem>>, vector<16x16x4xbf16>,
    %c1_44 = arith.constant 1 : index
    %c2_45 = arith.constant 2 : index
    %c0_46 = arith.constant 0 : index
    %26 = vector.load %arg8[%c1_44, %c2_45, %c0_46] : memref<18x18x4xf32, #tpu.memory_space<vmem>>, vector<16x16x4xf32>
    %27 = arith.truncf %26 : vector<16x16x4xf32> to vector<16x16x4xbf16>
    %c0_47 = arith.constant 0 : index
    %c0_48 = arith.constant 0 : index
    %c20 = arith.constant 20 : index
    %28 = vector.load %arg9[%c0_47, %c0_48, %c20] : memref<16x16x36xbf16, #tpu.memory_space<vmem>>, vector<16x16x4xbf16>
    tpu.vector_store %arg9[%c0_47, %c0_48, %c20], %27 {strides = array<i32>} : memref<16x16x36xbf16, #tpu.memory_space<vmem>>, vector<16x16x4xbf16>,
    %c2_49 = arith.constant 2 : index
    %c0_50 = arith.constant 0 : index
    %c0_51 = arith.constant 0 : index
    %29 = vector.load %arg8[%c2_49, %c0_50, %c0_51] : memref<18x18x4xf32, #tpu.memory_space<vmem>>, vector<16x16x4xf32>
    %30 = arith.truncf %29 : vector<16x16x4xf32> to vector<16x16x4xbf16>
    %c0_52 = arith.constant 0 : index
    %c0_53 = arith.constant 0 : index
    %c24 = arith.constant 24 : index
    %31 = vector.load %arg9[%c0_52, %c0_53, %c24] : memref<16x16x36xbf16, #tpu.memory_space<vmem>>, vector<16x16x4xbf16>
    tpu.vector_store %arg9[%c0_52, %c0_53, %c24], %30 {strides = array<i32>} : memref<16x16x36xbf16, #tpu.memory_space<vmem>>, vector<16x16x4xbf16>,
    %c2_54 = arith.constant 2 : index
    %c1_55 = arith.constant 1 : index
    %c0_56 = arith.constant 0 : index
    %32 = vector.load %arg8[%c2_54, %c1_55, %c0_56] : memref<18x18x4xf32, #tpu.memory_space<vmem>>, vector<16x16x4xf32>
    %33 = arith.truncf %32 : vector<16x16x4xf32> to vector<16x16x4xbf16>
    %c0_57 = arith.constant 0 : index
    %c0_58 = arith.constant 0 : index
    %c28 = arith.constant 28 : index
    %34 = vector.load %arg9[%c0_57, %c0_58, %c28] : memref<16x16x36xbf16, #tpu.memory_space<vmem>>, vector<16x16x4xbf16>
    tpu.vector_store %arg9[%c0_57, %c0_58, %c28], %33 {strides = array<i32>} : memref<16x16x36xbf16, #tpu.memory_space<vmem>>, vector<16x16x4xbf16>,
    %c2_59 = arith.constant 2 : index
    %c2_60 = arith.constant 2 : index
    %c0_61 = arith.constant 0 : index
    %35 = vector.load %arg8[%c2_59, %c2_60, %c0_61] : memref<18x18x4xf32, #tpu.memory_space<vmem>>, vector<16x16x4xf32>
    %36 = arith.truncf %35 : vector<16x16x4xf32> to vector<16x16x4xbf16>
    %c0_62 = arith.constant 0 : index
    %c0_63 = arith.constant 0 : index
    %c32 = arith.constant 32 : index
    %37 = vector.load %arg9[%c0_62, %c0_63, %c32] : memref<16x16x36xbf16, #tpu.memory_space<vmem>>, vector<16x16x4xbf16>
    tpu.vector_store %arg9[%c0_62, %c0_63, %c32], %36 {strides = array<i32>} : memref<16x16x36xbf16, #tpu.memory_space<vmem>>, vector<16x16x4xbf16>,
    %c0_64 = arith.constant 0 : index
    %c0_65 = arith.constant 0 : index
    %c0_66 = arith.constant 0 : index
    %38 = vector.load %arg9[%c0_64, %c0_65, %c0_66] : memref<16x16x36xbf16, #tpu.memory_space<vmem>>, vector<16x16x36xbf16>
    %39 = vector.shape_cast %38 : vector<16x16x36xbf16> to vector<256x36xbf16>
    %c0_67 = arith.constant 0 : index
    %c0_68 = arith.constant 0 : index
    %40 = vector.load %arg2[%c0_67, %c0_68] : memref<36x4xbf16, #tpu.memory_space<vmem>>, vector<36x4xbf16>
    %cst_69 = arith.constant dense<0.000000e+00> : vector<256x4xf32>
    %41 = tpu.matmul %39, %40, %cst_69 {dimension_numbers = #tpu.dot_dimension_numbers<[1], [0], [0], [1], [0, 0, 1, 1], [], []>} : vector<256x36xbf16>, vector<36x4xbf16>, vector<256x4xf32> -> vector<256x4xf32>
    %42 = arith.truncf %41 : vector<256x4xf32> to vector<256x4xbf16>
    %c0_70 = arith.constant 0 : index
    %c0_71 = arith.constant 0 : index
    %c0_72 = arith.constant 0 : index
    %43 = vector.load %arg5[%c0_70, %c0_71, %c0_72] : memref<1x256x4xbf16, #tpu.memory_space<vmem>>, vector<1x256x4xbf16>
    %44 = vector.shape_cast %43 : vector<1x256x4xbf16> to vector<256x4xbf16>
    %45 = vector.shape_cast %42 : vector<256x4xbf16> to vector<1x256x4xbf16>
    tpu.vector_store %arg5[%c0_70, %c0_71, %c0_72], %45 {strides = array<i32>} : memref<1x256x4xbf16, #tpu.memory_space<vmem>>, vector<1x256x4xbf16>,
    %cst_73 = arith.constant dense<0.000000e+00> : vector<4xf32>
    %46 = vector.multi_reduction <add>, %41, %cst_73 [0] : vector<256x4xf32> to vector<4xf32>
    %47 = vector.shape_cast %46 : vector<4xf32> to vector<1x4xf32>
    %c0_74 = arith.constant 0 : index
    %c0_75 = arith.constant 0 : index
    %c0_76 = arith.constant 0 : index
    %48 = vector.load %arg6[%c0_74, %c0_75, %c0_76] : memref<1x1x4xf32, #tpu.memory_space<vmem>>, vector<1x1x4xf32>
    %49 = vector.shape_cast %48 : vector<1x1x4xf32> to vector<1x4xf32>
    %50 = vector.shape_cast %47 : vector<1x4xf32> to vector<1x1x4xf32>
    tpu.vector_store %arg6[%c0_74, %c0_75, %c0_76], %50 {strides = array<i32>} : memref<1x1x4xf32, #tpu.memory_space<vmem>>, vector<1x1x4xf32>,
    %51 = arith.mulf %41, %41 : vector<256x4xf32>
    %cst_77 = arith.constant dense<0.000000e+00> : vector<4xf32>
    %52 = vector.multi_reduction <add>, %51, %cst_77 [0] : vector<256x4xf32> to vector<4xf32>
    %53 = vector.shape_cast %52 : vector<4xf32> to vector<1x4xf32>
    %c0_78 = arith.constant 0 : index
    %c0_79 = arith.constant 0 : index
    %c0_80 = arith.constant 0 : index
    %54 = vector.load %arg7[%c0_78, %c0_79, %c0_80] : memref<1x1x4xf32, #tpu.memory_space<vmem>>, vector<1x1x4xf32>
    %55 = vector.shape_cast %54 : vector<1x1x4xf32> to vector<1x4xf32>
    %56 = vector.shape_cast %53 : vector<1x4xf32> to vector<1x1x4xf32>
    tpu.vector_store %arg7[%c0_78, %c0_79, %c0_80], %56 {strides = array<i32>} : memref<1x1x4xf32, #tpu.memory_space<vmem>>, vector<1x1x4xf32>,
    return
  }
  func.func @transform_0(%arg0: i32) -> (i32, i32, i32, i32) {
    %c0_i32 = arith.constant 0 : i32
    %c0_i32_0 = arith.constant 0 : i32
    %c0_i32_1 = arith.constant 0 : i32
    %c0_i32_2 = arith.constant 0 : i32
    return %arg0, %c0_i32, %c0_i32_0, %c0_i32_1 : i32, i32, i32, i32
  }
  func.func @transform_1(%arg0: i32) -> (i32, i32) {
    %c0_i32 = arith.constant 0 : i32
    %c0_i32_0 = arith.constant 0 : i32
    %c0_i32_1 = arith.constant 0 : i32
    return %c0_i32, %c0_i32_0 : i32, i32
  }
  func.func @transform_2(%arg0: i32) -> (i32, i32, i32) {
    %c0_i32 = arith.constant 0 : i32
    %c0_i32_0 = arith.constant 0 : i32
    %c0_i32_1 = arith.constant 0 : i32
    %c0_i32_2 = arith.constant 0 : i32
    return %c0_i32, %c0_i32_0, %c0_i32_1 : i32, i32, i32
  }
  func.func @transform_3(%arg0: i32) -> (i32, i32, i32) {
    %c0_i32 = arith.constant 0 : i32
    %c0_i32_0 = arith.constant 0 : i32
    %c0_i32_1 = arith.constant 0 : i32
    %c0_i32_2 = arith.constant 0 : i32
    return %c0_i32, %c0_i32_0, %c0_i32_1 : i32, i32, i32
  }
  func.func @transform_4(%arg0: i32) -> (i32, i32, i32) {
    %c0_i32 = arith.constant 0 : i32
    %c0_i32_0 = arith.constant 0 : i32
    %c0_i32_1 = arith.constant 0 : i32
    return %arg0, %c0_i32, %c0_i32_0 : i32, i32, i32
  }
  func.func @transform_5(%arg0: i32) -> (i32, i32, i32) {
    %c0_i32 = arith.constant 0 : i32
    %c0_i32_0 = arith.constant 0 : i32
    %c0_i32_1 = arith.constant 0 : i32
    return %arg0, %c0_i32, %c0_i32_0 : i32, i32, i32
  }
  func.func @transform_6(%arg0: i32) -> (i32, i32, i32) {
    %c0_i32 = arith.constant 0 : i32
    %c0_i32_0 = arith.constant 0 : i32
    %c0_i32_1 = arith.constant 0 : i32
    return %arg0, %c0_i32, %c0_i32_0 : i32, i32, i32
  }
}

</mosaic_0001>

<bundles_post_ra>
// kernel: tpu_custom_call.1
= control target key start
LH: loop header
LB: loop body
LE: loop exit
PB: predicated region body
PF: predicated region fallthrough
CT: control target
= control target key end

     0   :  { %12 = vsyncpa [#allocation5], 0  ;;  %s4578_s0 = inlined_call_operand.vmem [shape: f32[3,16,16,4], index: 0, kind: input, shape index: {}]   ;;  %s4579_s1 = inlined_call_operand.vmem [shape: bf16[36,4], index: 1, kind: input, shape index: {}]   ;;  %s4580_s2 = inlined_call_operand.vmem [shape: f32[1,1,4], index: 2, kind: input, shape index: {}]   ;;  %s4581_s3 = inlined_call_operand.vmem [shape: f32[1,1,4], index: 3, kind: input, shape index: {}]   ;;  %s4582_s4 = inlined_call_operand.vmem [shape: bf16[3,256,4], index: 4, kind: output, shape index: {0}]   ;;  %s4583_s5 = inlined_call_operand.hbm [shape: f32[3,1,4], index: 5, kind: output, shape index: {1}]   ;;  %s4584_s6 = inlined_call_operand.hbm [shape: f32[3,1,4], index: 6, kind: output, shape index: {2}]  }
   0x1   :  { %14 = vsyncpa [#allocation5 + $0x1], 0 }
   0x2   :  { %15 = vsyncpa [#allocation7], 0 }
   0x3   :  { %17 = vsyncpa [#allocation7 + $0x1], 0  ;;  %s3257_s21 = smov 0   ;;  %s3259_s22 = smov 0  }
   0x4   :  { %s3261_s2 = smov 0   ;;  %s3263_s3 = smov 0  }
   0x5 LB: > { %s3278_s23 = sadd.s32 4294967295, %s3211_s3   ;;  %s2937_s24 = sadd.s32 4294967294, %s3211_s3   ;;  %s3211_s3 = sphi %s3263_s3, %s4590_s3   ;;  %s3207_s2 = sphi %s3261_s2, %s4589_s2   ;;  %s3203_s22 = sphi %s3259_s22, %s4588_s22   ;;  %s3199_s21 = sphi %s3257_s21, %s4587_s21  }
   0x6   : > { %s3282_s25 = sadd.s32 1, %s3211_s3   ;;  %s145_s26 = sadd.s32 1, %s3207_s2 }
   0x7   : > { %s142_s27 = ssub.s32 %s3211_s3, %s3282_s25  ;;  %p155_p0 = scmp.ne.s32.totalorder %s3207_s2, %s3203_s22 }
   0x8   : > { %p143_p1 = scmp.eq.s32.totalorder %s142_s27, 0  ;;  %p156_p2 = scmp.eq.s32.totalorder %s3278_s23, 2 }
   0x9   : > { %p161_p3 = scmp.ne.s32.totalorder %s3203_s22, %s3199_s21  ;;  %p162_p4 = scmp.eq.s32.totalorder %s2937_s24, 2 }
   0xa   : > { %s3293_s28 = scalar_select %p143_p1, %s3207_s2, %s145_s26  }
   0xb   : > { %p3295_p5 = por %p156_p2, %p155_p0  ;;  %p3299_p6 = por %p162_p4, %p161_p3 }
   0xc   : > { %p2940_p7 = scmp.ge.s32.totalorder %s3211_s3, 1  ;;  %p223_p8 = scmp.lt.s32.totalorder %s3211_s3, 4 }
   0xe   : > { %p224_p9 = pnand %p2940_p7, %p223_p8 }
   0xf   : > { %s3214_s7 = smov (!%p224_p9), 4   ;;  %p261_p10 = scmp.lt.s32.totalorder (!%p224_p9), %s3278_s23, 2 }
  0x10   : > { %227 = sbr.rel (%p224_p9) target bundleno = 1036 (0x40c), region = 36  ;;  %s3215_s13 = smov (!%p224_p9), 8  }
  0x11   : > { %s3216_s14 = smov (!%p224_p9), 12   ;;  %s3217_s15 = smov (!%p224_p9), 16  }
  0x12   : > { %s3218_s16 = smov (!%p224_p9), 20   ;;  %s3219_s17 = smov (!%p224_p9), 24  }
  0x13   : > { %s3220_s18 = smov (!%p224_p9), 28   ;;  %s3221_s19 = smov (!%p224_p9), 32  }
  0x15   : > { %vm304_vm0 = vcmask 31744   ;;  %v3213_v0 = vmov 0.0   ;;  %vm313_vm1 = vcmask 24576   ;;  %s3333_s8 = scalar_select %p261_p10, %s3278_s23, 2  ;;  %vm307_vm2 = vcmask 25600  }
  0x16   : > { %305 = vst.msk [vmem:[#allocation2] sm:$0xff] %vm304_vm0, %v3213_v0  ;;  %vm447_vm3 = vcmask 27648   ;;  %vm672_vm4 = vcmask 60448   ;;  %vm897_vm5 = vcmask 93248   ;;  %vm1122_vm6 = vcmask 126048  }
  0x17   : > { %306 = vst.msk [vmem:[#allocation2 + $0x8] sm:$0xff] %vm304_vm0, %v3213_v0  ;;  %s3035_s9 = sshll.u32 %s3333_s8, 8  ;;  %vm1347_vm7 = vcmask 158848   ;;  %vm1572_vm8 = vcmask 191648   ;;  %vm2462_vm9 = vcmask 1041408   ;;  %vm1798_vm10 = vcmask 224448  }
  0x18   : > { %314 = vst.msk [vmem:[#allocation2] sm:$0x1] %vm313_vm1, %v3213_v0  ;;  %s3346_s12 = scalar_lea.vmem %s4578_s0, %s3035_s9  ;;  %vm2023_vm11 = vcmask 257248   ;;  %vm2248_vm12 = vcmask 290048   ;;  %vm2413_vm13 = vcmask 293888   ;;  %s3036_s10 = sshll.u32 %s3333_s8, 7 }
  0x19   : > { %310 = vst.msk [vmem:[#allocation2 + $0x198] sm:$0xff] %vm304_vm0, %v3213_v0  ;;  %v272_v3 = vld [vmem:[%s3346_s12] sm:$0xff]  ;;  %v273_v4 = vld [vmem:[%s3346_s12 + $0x8] sm:$0xff]  ;;  %v279_v7 = vld [vmem:[%s3346_s12 + $0x38] sm:$0xff]  ;;  %s4507_s8 = sand.u32 1, %s3203_s22  }
  0x1a   : > { %311 = vst.msk [vmem:[#allocation2 + $0x1a0] sm:$0xff] %vm304_vm0, %v3213_v0  ;;  %v276_v5 = vld [vmem:[%s3346_s12 + $0x20] sm:$0xff]  ;;  %v277_v6 = vld [vmem:[%s3346_s12 + $0x28] sm:$0xff]  ;;  %v274_v9 = vld [vmem:[%s3346_s12 + $0x10] sm:$0xff]  ;;  %s254_s20 = scalar_lea.vmem [#allocation4], %s4507_s8  ;;  %s260_s27 = scalar_lea.vmem [#allocation6], %s4507_s8 }
  0x1b   : > { %315 = vst.msk [vmem:[#allocation2 + $0x18] sm:$0x1] %vm313_vm1, %v3213_v0  ;;  %v280_v11 = vld [vmem:[%s3346_s12 + $0x40] sm:$0xff]  ;;  %v282_v13 = vld [vmem:[%s3346_s12 + $0x50] sm:$0xff]  ;;  %v275_v15 = vld [vmem:[%s3346_s12 + $0x18] sm:$0xff]  ;;  %s4518_s24 = sshll.u32 %s254_s20, 4  ;;  %s2815_s24 = int_to_ptr.vmem [resolvable:$true] %s4518_s24 }
  0x1c   : > { %316 = vst.msk [vmem:[#allocation2 + $0x30] sm:$0x1] %vm313_vm1, %v3213_v0  ;;  %v283_v16 = vld [vmem:[%s3346_s12 + $0x58] sm:$0xff]  ;;  %v285_v17 = vld [vmem:[%s3346_s12 + $0x68] sm:$0xff]  ;;  %v278_v19 = vld [vmem:[%s3346_s12 + $0x30] sm:$0xff] }
  0x1d   : > { %317 = vst.msk [vmem:[#allocation2 + $0x48] sm:$0x1] %vm313_vm1, %v3213_v0  ;;  %v286_v22 = vld [vmem:[%s3346_s12 + $0x70] sm:$0xff]  ;;  %v288_v23 = vld [vmem:[%s3346_s12 + $0x80] sm:$0xff]  ;;  %v281_v25 = vld [vmem:[%s3346_s12 + $0x48] sm:$0xff] }
  0x1e   : > { %v480_v1 = vld [vmem:[#allocation2 + $0x1] sm:$0xff]  ;;  %318 = vst.msk [vmem:[#allocation2 + $0x60] sm:$0x1] %vm313_vm1, %v3213_v0  ;;  %v291_v29 = vld [vmem:[%s3346_s12 + $0x98] sm:$0xff]  ;;  %v294_v38 = vld [vmem:[%s3346_s12 + $0xb0] sm:$0xff] }
  0x1f   : > { %v512_v2 = vpack.c.bf16 %v480_v1, %v480_v1  ;;  %319 = vst.msk [vmem:[#allocation2 + $0x78] sm:$0x1] %vm313_vm1, %v3213_v0  ;;  %v289_v27 = vld [vmem:[%s3346_s12 + $0x88] sm:$0xff]  ;;  %v284_v34 = vld [vmem:[%s3346_s12 + $0x60] sm:$0xff]  ;;  %v287_v43 = vld [vmem:[%s3346_s12 + $0x78] sm:$0xff] }
  0x20   : > { %320 = vst.msk [vmem:[#allocation2 + $0x90] sm:$0x1] %vm313_vm1, %v3213_v0  ;;  %v292_v35 = vld [vmem:[%s3346_s12 + $0xa0] sm:$0xff]  ;;  %v295_v44 = vld [vmem:[%s3346_s12 + $0xb8] sm:$0xff]  ;;  %v297_v47 = vld [vmem:[%s3346_s12 + $0xc8] sm:$0xff] }
  0x21   : > { %576 = vrot.lane.b32.xlu0 %v512_v2, %s3214_s7  ;;  %321 = vst.msk [vmem:[#allocation2 + $0xa8] sm:$0x1] %vm313_vm1, %v3213_v0  ;;  %v290_v52 = vld [vmem:[%s3346_s12 + $0x90] sm:$0xff]  ;;  %v300_v56 = vld [vmem:[%s3346_s12 + $0xe0] sm:$0xff]  ;;  %v293_v61 = vld [vmem:[%s3346_s12 + $0xa8] sm:$0xff] }
  0x22   : > { %322 = vst.msk [vmem:[#allocation2 + $0xc0] sm:$0x1] %vm313_vm1, %v3213_v0  ;;  %v298_v53 = vld [vmem:[%s3346_s12 + $0xd0] sm:$0xff]  ;;  %v301_v62 = vld [vmem:[%s3346_s12 + $0xe8] sm:$0xff] }
  0x23   : > { %323 = vst.msk [vmem:[#allocation2 + $0xd8] sm:$0x1] %vm313_vm1, %v3213_v0 }
  0x24   : > { %324 = vst.msk [vmem:[#allocation2 + $0xf0] sm:$0x1] %vm313_vm1, %v3213_v0 }
  0x25   : > { %325 = vst.msk [vmem:[#allocation2 + $0x108] sm:$0x1] %vm313_vm1, %v3213_v0 }
  0x26   : > { %326 = vst.msk [vmem:[#allocation2 + $0x120] sm:$0x1] %vm313_vm1, %v3213_v0 }
  0x27   : > { %327 = vst.msk [vmem:[#allocation2 + $0x138] sm:$0x1] %vm313_vm1, %v3213_v0 }
  0x28   : > { %328 = vst.msk [vmem:[#allocation2 + $0x150] sm:$0x1] %vm313_vm1, %v3213_v0 }
  0x29   : > { %329 = vst.msk [vmem:[#allocation2 + $0x168] sm:$0x1] %vm313_vm1, %v3213_v0 }
  0x2a   : > { %330 = vst.msk [vmem:[#allocation2 + $0x180] sm:$0x1] %vm313_vm1, %v3213_v0 }
  0x2b   : > { %333 = vst.msk [vmem:[#allocation2 + $0x29] sm:$0x1] %vm313_vm1, %v3213_v0 }
  0x2c   : > { %334 = vst.msk [vmem:[#allocation2 + $0x41] sm:$0x1] %vm313_vm1, %v3213_v0 }
  0x2d   : > { %335 = vst.msk [vmem:[#allocation2 + $0x59] sm:$0x1] %vm313_vm1, %v3213_v0 }
  0x2e   : > { %336 = vst.msk [vmem:[#allocation2 + $0x71] sm:$0x1] %vm313_vm1, %v3213_v0 }
  0x2f   : > { %337 = vst.msk [vmem:[#allocation2 + $0x89] sm:$0x1] %vm313_vm1, %v3213_v0 }
  0x30   : > { %338 = vst.msk [vmem:[#allocation2 + $0xa1] sm:$0x1] %vm313_vm1, %v3213_v0 }
  0x31   : > { %339 = vst.msk [vmem:[#allocation2 + $0xb9] sm:$0x1] %vm313_vm1, %v3213_v0 }
  0x32   : > { %340 = vst.msk [vmem:[#allocation2 + $0xd1] sm:$0x1] %vm313_vm1, %v3213_v0 }
  0x33   : > { %341 = vst.msk [vmem:[#allocation2 + $0xe9] sm:$0x1] %vm313_vm1, %v3213_v0 }
  0x34   : > { %342 = vst.msk [vmem:[#allocation2 + $0x101] sm:$0x1] %vm313_vm1, %v3213_v0 }
  0x35   : > { %343 = vst.msk [vmem:[#allocation2 + $0x119] sm:$0x1] %vm313_vm1, %v3213_v0 }
  0x36   : > { %344 = vst.msk [vmem:[#allocation2 + $0x131] sm:$0x1] %vm313_vm1, %v3213_v0 }
  0x37   : > { %345 = vst.msk [vmem:[#allocation2 + $0x149] sm:$0x1] %vm313_vm1, %v3213_v0 }
  0x38   : > { %346 = vst.msk [vmem:[#allocation2 + $0x161] sm:$0x1] %vm313_vm1, %v3213_v0 }
  0x39   : > { %347 = vst.msk [vmem:[#allocation2 + $0x179] sm:$0x1] %vm313_vm1, %v3213_v0 }
  0x3a   : > { %348 = vst.msk [vmem:[#allocation2 + $0x191] sm:$0x1] %vm313_vm1, %v3213_v0 }
  0x3b   : > { %351 = vst.msk [vmem:[#allocation2 + $0x19] sm:$0xff] %vm304_vm0, %v272_v3 }
  0x3c   : > { %331 = vst.msk [vmem:[#allocation2 + $0x198] sm:$0x1] %vm313_vm1, %v3213_v0 }
  0x3d   : > { %308 = vst.msk [vmem:[#allocation2 + $0x10] sm:$0x3] %vm307_vm2, %v3213_v0 }
  0x3e   : > { %312 = vst.msk [vmem:[#allocation2 + $0x1a8] sm:$0x3] %vm307_vm2, %v3213_v0 }
  0x3f   : > { %332 = vst.msk [vmem:[#allocation2 + $0x11] sm:$0x1] %vm313_vm1, %v3213_v0 }
  0x40   : > { %349 = vst.msk [vmem:[#allocation2 + $0x1a9] sm:$0x1] %vm313_vm1, %v3213_v0 }
  0x41   : > { %352 = vst.msk [vmem:[#allocation2 + $0x21] sm:$0xff] %vm304_vm0, %v273_v4 }
  0x42   : > { %v482_v8 = vld [vmem:[#allocation2 + $0x19] sm:$0xff]  ;;  %355 = vst.msk [vmem:[#allocation2 + $0x49] sm:$0xff] %vm304_vm0, %v276_v5 }
  0x43   : > { %v514_v10 = vpack.c.bf16 %v482_v8, %v482_v8  ;;  %356 = vst.msk [vmem:[#allocation2 + $0x51] sm:$0xff] %vm304_vm0, %v277_v6  ;;  %v296_v5 = vld [vmem:[%s3346_s12 + $0xc0] sm:$0xff] }
  0x44   : > { %v481_v12 = vld [vmem:[#allocation2 + $0x9] sm:$0xff]  ;;  %358 = vst.msk [vmem:[#allocation2 + $0x69] sm:$0xff] %vm304_vm0, %v279_v7 }
  0x45   : > { %580 = vrot.lane.b32.xlu1 %v514_v10, %s3214_s7  ;;  %v513_v14 = vpack.c.bf16 %v481_v12, %v481_v12  ;;  %353 = vst.msk [vmem:[#allocation2 + $0x31] sm:$0xff] %vm304_vm0, %v274_v9  ;;  %v299_v12 = vld [vmem:[%s3346_s12 + $0xd8] sm:$0xff] }
  0x46   : > { %359 = vst.msk [vmem:[#allocation2 + $0x79] sm:$0xff] %vm304_vm0, %v280_v11 }
  0x47   : > { %578 = vrot.lane.b32.xlu0 %v513_v14, %s3214_s7  ;;  %361 = vst.msk [vmem:[#allocation2 + $0x91] sm:$0xff] %vm304_vm0, %v282_v13 }
  0x48   : > { %v483_v18 = vld [vmem:[#allocation2 + $0x21] sm:$0xff]  ;;  %354 = vst.msk [vmem:[#allocation2 + $0x39] sm:$0xff] %vm304_vm0, %v275_v15 }
  0x49   : > { %v515_v20 = vpack.c.bf16 %v483_v18, %v483_v18  ;;  %v486_v21 = vld [vmem:[#allocation2 + $0x49] sm:$0xff]  ;;  %362 = vst.msk [vmem:[#allocation2 + $0x99] sm:$0xff] %vm304_vm0, %v283_v16 }
  0x4a   : > { %364 = vst.msk [vmem:[#allocation2 + $0xb1] sm:$0xff] %vm304_vm0, %v285_v17  ;;  %v518_v24 = vpack.c.bf16 %v486_v21, %v486_v21  ;;  %v487_v30 = vld [vmem:[#allocation2 + $0x51] sm:$0xff] }
  0x4b   : > { %357 = vst.msk [vmem:[#allocation2 + $0x61] sm:$0xff] %vm304_vm0, %v278_v19  ;;  %v489_v31 = vld [vmem:[#allocation2 + $0x69] sm:$0xff]  ;;  %v519_v33 = vpack.c.bf16 %v487_v30, %v487_v30 }
  0x4c   : > { %v484_v26 = vld [vmem:[#allocation2 + $0x31] sm:$0xff]  ;;  %365 = vst.msk [vmem:[#allocation2 + $0xc1] sm:$0xff] %vm304_vm0, %v286_v22  ;;  %v521_v36 = vpack.c.bf16 %v489_v31, %v489_v31 }
  0x4d   : > { %582 = vrot.lane.b32.xlu1 %v515_v20, %s3214_s7  ;;  %v516_v28 = vpack.c.bf16 %v484_v26, %v484_v26  ;;  %367 = vst.msk [vmem:[#allocation2 + $0xd9] sm:$0xff] %vm304_vm0, %v288_v23  ;;  %v490_v39 = vld [vmem:[#allocation2 + $0x79] sm:$0xff]  ;;  %v706_v30 = vld [vmem:[#allocation2 + $0xa] sm:$0xff] }
  0x4e   : > { %360 = vst.msk [vmem:[#allocation2 + $0x81] sm:$0xff] %vm304_vm0, %v281_v25  ;;  %v492_v40 = vld [vmem:[#allocation2 + $0x91] sm:$0xff]  ;;  %v522_v42 = vpack.c.bf16 %v490_v39, %v490_v39 }
  0x4f   : > { %588 = vrot.lane.b32.xlu0 %v518_v24, %s3214_s7  ;;  %584 = vrot.lane.b32.xlu2 %v516_v28, %s3214_s7  ;;  %368 = vst.msk [vmem:[#allocation2 + $0xe1] sm:$0xff] %vm304_vm0, %v289_v27  ;;  %v485_v32 = vld [vmem:[#allocation2 + $0x39] sm:$0xff]  ;;  %v524_v45 = vpack.c.bf16 %v492_v40, %v492_v40  ;;  %v384_v40 = vld [vmem:[#allocation2 + $0x8] sm:$0xff] }
  0x50   : > { %370 = vst.msk [vmem:[#allocation2 + $0xf9] sm:$0xff] %vm304_vm0, %v291_v29  ;;  %v517_v37 = vpack.c.bf16 %v485_v32, %v485_v32  ;;  %v493_v48 = vld [vmem:[#allocation2 + $0x99] sm:$0xff] }
  0x51   : > { %363 = vst.msk [vmem:[#allocation2 + $0xa9] sm:$0xff] %vm304_vm0, %v284_v34  ;;  %v495_v49 = vld [vmem:[#allocation2 + $0xb1] sm:$0xff]  ;;  %v525_v51 = vpack.c.bf16 %v493_v48, %v493_v48  ;;  %v383_v28 = vld [vmem:[#allocation2] sm:$0xff] }
  0x52   : > { %371 = vst.msk [vmem:[#allocation2 + $0x109] sm:$0xff] %vm304_vm0, %v292_v35  ;;  %v488_v41 = vld [vmem:[#allocation2 + $0x61] sm:$0xff]  ;;  %v527_v54 = vpack.c.bf16 %v495_v49, %v495_v49  ;;  %v415_v29 = vpack.c.bf16 %v383_v28, %v383_v28 }
  0x53   : > { %373 = vst.msk [vmem:[#allocation2 + $0x121] sm:$0xff] %vm304_vm0, %v294_v38  ;;  %v520_v46 = vpack.c.bf16 %v488_v41, %v488_v41  ;;  %v496_v57 = vld [vmem:[#allocation2 + $0xc1] sm:$0xff]  ;;  %v387_v38 = vld [vmem:[#allocation2 + $0x30] sm:$0xff] }
  0x54   : > { %366 = vst.msk [vmem:[#allocation2 + $0xc9] sm:$0xff] %vm304_vm0, %v287_v43  ;;  %v498_v58 = vld [vmem:[#allocation2 + $0xd9] sm:$0xff]  ;;  %v528_v60 = vpack.c.bf16 %v496_v57, %v496_v57  ;;  %v3452_v41 = vpack.c.bf16 %v387_v38, %v387_v38 }
  0x55   : > { %590 = vrot.lane.b32.xlu1 %v519_v33, %s3214_s7  ;;  %374 = vst.msk [vmem:[#allocation2 + $0x129] sm:$0xff] %vm304_vm0, %v295_v44  ;;  %v491_v50 = vld [vmem:[#allocation2 + $0x81] sm:$0xff]  ;;  %v530_v63 = vpack.c.bf16 %v498_v58, %v498_v58  ;;  %v738_v33 = vpack.c.bf16 %v706_v30, %v706_v30  ;;  %v709_v43 = vld [vmem:[#allocation2 + $0x32] sm:$0xff] }
  0x56   : > { %376 = vst.msk [vmem:[#allocation2 + $0x141] sm:$0xff] %vm304_vm0, %v297_v47  ;;  %v523_v55 = vpack.c.bf16 %v491_v50, %v491_v50  ;;  %v499_v1 = vld [vmem:[#allocation2 + $0xe1] sm:$0xff]  ;;  %v388_v50 = vld [vmem:[#allocation2 + $0x38] sm:$0xff] }
  0x57   : > { %594 = vrot.lane.b32.xlu0 %v521_v36, %s3214_s7  ;;  %586 = vrot.lane.b32.xlu2 %v517_v37, %s3214_s7  ;;  %369 = vst.msk [vmem:[#allocation2 + $0xf1] sm:$0xff] %vm304_vm0, %v290_v52  ;;  %v501_v2 = vld [vmem:[#allocation2 + $0xf9] sm:$0xff]  ;;  %v531_v4 = vpack.c.bf16 %v499_v1, %v499_v1  ;;  %v705_v44 = vld [vmem:[#allocation2 + $0x2] sm:$0xff] }
  0x58   : > { %377 = vst.msk [vmem:[#allocation2 + $0x151] sm:$0xff] %vm304_vm0, %v298_v53  ;;  %v494_v59 = vld [vmem:[#allocation2 + $0xa9] sm:$0xff]  ;;  %v533_v6 = vpack.c.bf16 %v501_v2, %v501_v2  ;;  %v385_v36 = vld [vmem:[#allocation2 + $0x18] sm:$0xff]  ;;  %v737_v47 = vpack.c.bf16 %v705_v44, %v705_v44  ;;  %v386_v48 = vld [vmem:[#allocation2 + $0x20] sm:$0xff]  ;;  %v3464_v53 = vpack.c.bf16 %v388_v50, %v388_v50 }
  0x59   : > { %379 = vst.msk [vmem:[#allocation2 + $0x169] sm:$0xff] %vm304_vm0, %v300_v56  ;;  %v526_v0 = vpack.c.bf16 %v494_v59, %v494_v59  ;;  %v502_v8 = vld [vmem:[#allocation2 + $0x109] sm:$0xff]  ;;  %v707_v37 = vld [vmem:[#allocation2 + $0x1a] sm:$0xff]  ;;  %v3448_v39 = vpack.c.bf16 %v385_v36, %v385_v36 }
  0x5a   : > { %372 = vst.msk [vmem:[#allocation2 + $0x111] sm:$0xff] %vm304_vm0, %v293_v61  ;;  %v504_v9 = vld [vmem:[#allocation2 + $0x121] sm:$0xff]  ;;  %v534_v11 = vpack.c.bf16 %v502_v8, %v502_v8 }
  0x5b   : > { %380 = vst.msk [vmem:[#allocation2 + $0x171] sm:$0xff] %vm304_vm0, %v301_v62  ;;  %v497_v3 = vld [vmem:[#allocation2 + $0xc9] sm:$0xff]  ;;  %v536_v13 = vpack.c.bf16 %v504_v9, %v504_v9  ;;  %v710_v49 = vld [vmem:[#allocation2 + $0x3a] sm:$0xff] }
  0x5c   : > { %v529_v7 = vpack.c.bf16 %v497_v3, %v497_v3  ;;  %375 = vst.msk [vmem:[#allocation2 + $0x139] sm:$0xff] %vm304_vm0, %v296_v5  ;;  %v505_v15 = vld [vmem:[#allocation2 + $0x129] sm:$0xff]  ;;  %v742_v57 = vpack.c.bf16 %v710_v49, %v710_v49  ;;  %v391_v62 = vld [vmem:[#allocation2 + $0x60] sm:$0xff]  ;;  %v393_v9 = vld [vmem:[#allocation2 + $0x78] sm:$0xff] }
  0x5d   : > { %596 = vrot.lane.b32.xlu1 %v522_v42, %s3214_s7  ;;  %378 = vst.msk [vmem:[#allocation2 + $0x159] sm:$0xff] %vm304_vm0, %v299_v12  ;;  %v507_v16 = vld [vmem:[#allocation2 + $0x141] sm:$0xff]  ;;  %v537_v18 = vpack.c.bf16 %v505_v15, %v505_v15  ;;  %v416_v42 = vpack.c.bf16 %v384_v40, %v384_v40  ;;  %v3479_v1 = vpack.c.bf16 %v391_v62, %v391_v62  ;;  %v722_v38 = vld [vmem:[#allocation2 + $0xca] sm:$0xff] }
  0x5e   : > { %v500_v10 = vld [vmem:[#allocation2 + $0xf1] sm:$0xff]  ;;  %v539_v19 = vpack.c.bf16 %v507_v16, %v507_v16  ;;  %448 = vst.msk [vmem:[#allocation3] sm:$0xf] %vm447_vm3, %v415_v29  ;;  %v389_v52 = vld [vmem:[#allocation2 + $0x48] sm:$0xff]  ;;  %v715_v3 = vld [vmem:[#allocation2 + $0x7a] sm:$0xff]  ;;  %v3491_v12 = vpack.c.bf16 %v393_v9, %v393_v9  ;;  %v754_v49 = vpack.c.bf16 %v722_v38, %v722_v38 }
  0x5f   : > { %600 = vrot.lane.b32.xlu0 %v524_v45, %s3214_s7  ;;  %592 = vrot.lane.b32.xlu2 %v520_v46, %s3214_s7  ;;  %v532_v14 = vpack.c.bf16 %v500_v10, %v500_v10  ;;  %v508_v21 = vld [vmem:[#allocation2 + $0x151] sm:$0xff]  ;;  %450 = vst.msk [vmem:[#allocation3 + $0x8] sm:$0xf] %vm447_vm3, %v3448_v39  ;;  %v739_v45 = vpack.c.bf16 %v707_v37, %v707_v37  ;;  %v708_v56 = vld [vmem:[#allocation2 + $0x22] sm:$0xff]  ;;  %v718_v16 = vld [vmem:[#allocation2 + $0x9a] sm:$0xff] }
  0x60   : > { %v510_v22 = vld [vmem:[#allocation2 + $0x169] sm:$0xff]  ;;  %v540_v24 = vpack.c.bf16 %v508_v21, %v508_v21  ;;  %452 = vst.msk [vmem:[#allocation3 + $0x10] sm:$0xf] %vm447_vm3, %v3452_v41  ;;  %v741_v46 = vpack.c.bf16 %v709_v43, %v709_v43  ;;  %v740_v59 = vpack.c.bf16 %v708_v56, %v708_v56  ;;  %v717_v29 = vld [vmem:[#allocation2 + $0x92] sm:$0xff]  ;;  %v399_v37 = vld [vmem:[#allocation2 + $0xc0] sm:$0xff] }
  0x61   : > { %v503_v17 = vld [vmem:[#allocation2 + $0x111] sm:$0xff]  ;;  %v542_v25 = vpack.c.bf16 %v510_v22, %v510_v22  ;;  %449 = vst.msk [vmem:[#allocation3 + $0x4] sm:$0xf] %vm447_vm3, %v416_v42  ;;  %v713_v61 = vld [vmem:[#allocation2 + $0x62] sm:$0xff]  ;;  %v3523_v36 = vpack.c.bf16 %v717_v29, %v717_v29 }
  0x62   : > { %v535_v20 = vpack.c.bf16 %v503_v17, %v503_v17  ;;  %v511_v27 = vld [vmem:[#allocation2 + $0x171] sm:$0xff]  ;;  %453 = vst.msk [vmem:[#allocation3 + $0x14] sm:$0xf] %vm447_vm3, %v3464_v53  ;;  %v745_v5 = vpack.c.bf16 %v713_v61, %v713_v61  ;;  %v716_v10 = vld [vmem:[#allocation2 + $0x82] sm:$0xff] }
  0x63   : > { %v506_v23 = vld [vmem:[#allocation2 + $0x139] sm:$0xff]  ;;  %v543_v32 = vpack.c.bf16 %v511_v27, %v511_v27  ;;  %456 = vst.msk [vmem:[#allocation3 + $0x20] sm:$0xf] %vm447_vm3, %v3479_v1  ;;  %v714_v17 = vld [vmem:[#allocation2 + $0x6a] sm:$0xff]  ;;  %v721_v28 = vld [vmem:[#allocation2 + $0xc2] sm:$0xff] }
  0x64   : > { %v538_v26 = vpack.c.bf16 %v506_v23, %v506_v23  ;;  %v509_v31 = vld [vmem:[#allocation2 + $0x159] sm:$0xff]  ;;  %458 = vst.msk [vmem:[#allocation3 + $0x28] sm:$0xf] %vm447_vm3, %v3491_v12  ;;  %v3504_v21 = vpack.c.bf16 %v714_v17, %v714_v17  ;;  %v719_v23 = vld [vmem:[#allocation2 + $0xaa] sm:$0xff] }
  0x65   : > { %602 = vrot.lane.b32.xlu1 %v525_v51, %s3214_s7  ;;  %v541_v34 = vpack.c.bf16 %v509_v31, %v509_v31  ;;  %v3460_v51 = vpack.c.bf16 %v386_v48, %v386_v48  ;;  %v396_v22 = vld [vmem:[#allocation2 + $0x98] sm:$0xff]  ;;  %v400_v40 = vld [vmem:[#allocation2 + $0xc8] sm:$0xff]  ;;  %v407_v17 = vld [vmem:[#allocation2 + $0x120] sm:$0xff] }
  0x66   : > { %v3515_v30 = vpack.c.bf16 %v396_v22, %v396_v22  ;;  %v401_v42 = vld [vmem:[#allocation2 + $0xd8] sm:$0xff]  ;;  %v3533_v44 = vpack.c.bf16 %v400_v40, %v400_v40 }
  0x67   : > { %606 = vrot.lane.b32.xlu0 %v527_v54, %s3214_s7  ;;  %598 = vrot.lane.b32.xlu2 %v523_v55, %s3214_s7  ;;  %v3466_v54 = vpack.c.bf16 %v389_v52, %v389_v52  ;;  %v712_v55 = vld [vmem:[#allocation2 + $0x52] sm:$0xff]  ;;  %451 = vst.msk [vmem:[#allocation3 + $0xc] sm:$0xf] %vm447_vm3, %v3460_v51  ;;  %v3540_v52 = vpack.c.bf16 %v401_v42, %v401_v42  ;;  %v726_v22 = vld [vmem:[#allocation2 + $0xfa] sm:$0xff] }
  0x68   : > { %v744_v58 = vpack.c.bf16 %v712_v55, %v712_v55  ;;  %461 = vst.msk [vmem:[#allocation3 + $0x34] sm:$0xf] %vm447_vm3, %v3515_v30  ;;  %v733_v42 = vld [vmem:[#allocation2 + $0x152] sm:$0xff] }
  0x69   : > { %454 = vst.msk [vmem:[#allocation3 + $0x18] sm:$0xf] %vm447_vm3, %v3466_v54 }
  0x6a   : > { %465 = vst.msk [vmem:[#allocation3 + $0x44] sm:$0xf] %vm447_vm3, %v3533_v44 }
  0x6b   : > { %466 = vst.msk [vmem:[#allocation3 + $0x48] sm:$0xf] %vm447_vm3, %v3540_v52 }
  0x6d   : > { %608 = vrot.lane.b32.xlu1 %v528_v60, %s3214_s7  ;;  %v390_v60 = vld [vmem:[#allocation2 + $0x50] sm:$0xff] }
  0x6f   : > { %612 = vrot.lane.b32.xlu0 %v530_v63, %s3214_s7  ;;  %604 = vrot.lane.b32.xlu2 %v526_v0, %s3214_s7  ;;  %v3475_v63 = vpack.c.bf16 %v390_v60, %v390_v60  ;;  %v392_v0 = vld [vmem:[#allocation2 + $0x68] sm:$0xff]  ;;  %v404_v60 = vld [vmem:[#allocation2 + $0xf8] sm:$0xff] }
  0x70   : > { %v3481_v2 = vpack.c.bf16 %v392_v0, %v392_v0  ;;  %v727_v0 = vld [vmem:[#allocation2 + $0x10a] sm:$0xff] }
  0x71   : > { %455 = vst.msk [vmem:[#allocation3 + $0x1c] sm:$0xf] %vm447_vm3, %v3475_v63  ;;  %v759_v9 = vpack.c.bf16 %v727_v0, %v727_v0 }
  0x72   : > { %457 = vst.msk [vmem:[#allocation3 + $0x24] sm:$0xf] %vm447_vm3, %v3481_v2 }
  0x75   : > { %614 = vrot.lane.b32.xlu1 %v531_v4, %s3214_s7  ;;  %v711_v4 = vld [vmem:[#allocation2 + $0x4a] sm:$0xff] }
  0x76   : > { %v743_v8 = vpack.c.bf16 %v711_v4, %v711_v4 }
  0x77   : > { %618 = vrot.lane.b32.xlu0 %v533_v6, %s3214_s7  ;;  %610 = vrot.lane.b32.xlu2 %v529_v7, %s3214_s7  ;;  %v747_v7 = vpack.c.bf16 %v715_v3, %v715_v3  ;;  %v723_v3 = vld [vmem:[#allocation2 + $0xda] sm:$0xff] }
  0x7d   : > { %620 = vrot.lane.b32.xlu1 %v534_v11, %s3214_s7  ;;  %v394_v11 = vld [vmem:[#allocation2 + $0x80] sm:$0xff] }
  0x7f   : > { %624 = vrot.lane.b32.xlu0 %v536_v13, %s3214_s7  ;;  %616 = vrot.lane.b32.xlu2 %v532_v14, %s3214_s7  ;;  %v395_v13 = vld [vmem:[#allocation2 + $0x90] sm:$0xff]  ;;  %v3495_v14 = vpack.c.bf16 %v394_v11, %v394_v11  ;;  %v405_v11 = vld [vmem:[#allocation2 + $0x108] sm:$0xff] }
  0x80   : > { %v3497_v15 = vpack.c.bf16 %v395_v13, %v395_v13  ;;  %v728_v13 = vld [vmem:[#allocation2 + $0x112] sm:$0xff] }
  0x81   : > { %459 = vst.msk [vmem:[#allocation3 + $0x2c] sm:$0xf] %vm447_vm3, %v3495_v14 }
  0x82   : > { %460 = vst.msk [vmem:[#allocation3 + $0x30] sm:$0xf] %vm447_vm3, %v3497_v15 }
  0x85   : > { %626 = vrot.lane.b32.xlu1 %v537_v18, %s3214_s7  ;;  %v748_v18 = vpack.c.bf16 %v716_v10, %v716_v10  ;;  %v3565_v10 = vpack.c.bf16 %v723_v3, %v723_v3 }
  0x87   : > { %630 = vrot.lane.b32.xlu0 %v539_v19, %s3214_s7  ;;  %622 = vrot.lane.b32.xlu2 %v535_v20, %s3214_s7  ;;  %v750_v20 = vpack.c.bf16 %v718_v16, %v718_v16  ;;  %v406_v16 = vld [vmem:[#allocation2 + $0x110] sm:$0xff] }
  0x8d   : > { %632 = vrot.lane.b32.xlu1 %v540_v24, %s3214_s7  ;;  %v397_v24 = vld [vmem:[#allocation2 + $0xa8] sm:$0xff] }
  0x8e   : > { %v3512_v27 = vpack.c.bf16 %v397_v24, %v397_v24 }
  0x8f   : > { %636 = vrot.lane.b32.xlu0 %v542_v25, %s3214_s7  ;;  %628 = vrot.lane.b32.xlu2 %v538_v26, %s3214_s7  ;;  %v398_v25 = vld [vmem:[#allocation2 + $0xb0] sm:$0xff] }
  0x90   : > { %462 = vst.msk [vmem:[#allocation3 + $0x38] sm:$0xf] %vm447_vm3, %v3512_v27 }
  0x93   : > { %v577_v35 = vpop.permute.xlu0 %576 }
  0x94   : > { %673 = vst.msk [vmem:[#allocation3] sm:$0xf] %vm672_vm4, %v577_v35  ;;  %v753_v35 = vpack.c.bf16 %v721_v28, %v721_v28  ;;  %v3582_v28 = vpack.c.bf16 %v407_v17, %v407_v17 }
  0x95   : > { %638 = vrot.lane.b32.xlu1 %v543_v32, %s3214_s7  ;;  %v751_v32 = vpack.c.bf16 %v719_v23, %v719_v23  ;;  %v3578_v23 = vpack.c.bf16 %v405_v11, %v405_v11 }
  0x96   : > { %472 = vst.msk [vmem:[#allocation3 + $0x60] sm:$0xf] %vm447_vm3, %v3582_v28 }
  0x97   : > { %803 = vrot.lane.b32.xlu0 %v738_v33, %s3215_s13  ;;  %634 = vrot.lane.b32.xlu2 %v541_v34, %s3214_s7  ;;  %v3519_v34 = vpack.c.bf16 %v398_v25, %v398_v25  ;;  %v760_v25 = vpack.c.bf16 %v728_v13, %v728_v13  ;;  %470 = vst.msk [vmem:[#allocation3 + $0x58] sm:$0xf] %vm447_vm3, %v3578_v23  ;;  %s4523_s7 = sshll.u32 %s260_s27, 4  ;;  %s2828_s7 = int_to_ptr.vmem [resolvable:$true] %s4523_s7 }
  0x99   : > { %463 = vst.msk [vmem:[#allocation3 + $0x3c] sm:$0xf] %vm447_vm3, %v3519_v34 }
  0x9d   : > { %805 = vrot.lane.b32.xlu1 %v739_v45, %s3215_s13  ;;  %v724_v45 = vld [vmem:[#allocation2 + $0xe2] sm:$0xff] }
  0x9e   : > { %v756_v55 = vpack.c.bf16 %v724_v45, %v724_v45 }
  0x9f   : > { %809 = vrot.lane.b32.xlu0 %v741_v46, %s3215_s13  ;;  %801 = vrot.lane.b32.xlu2 %v737_v47, %s3215_s13  ;;  %v720_v46 = vld [vmem:[#allocation2 + $0xb2] sm:$0xff]  ;;  %v3536_v47 = vpack.c.bf16 %v399_v37, %v399_v37  ;;  %v410_v37 = vld [vmem:[#allocation2 + $0x140] sm:$0xff] }
  0xa0   : > { %v3544_v56 = vpack.c.bf16 %v720_v46, %v720_v46 }
  0xa1   : > { %464 = vst.msk [vmem:[#allocation3 + $0x40] sm:$0xf] %vm447_vm3, %v3536_v47 }
  0xa5   : > { %811 = vrot.lane.b32.xlu1 %v742_v57, %s3215_s13  ;;  %v402_v57 = vld [vmem:[#allocation2 + $0xe0] sm:$0xff] }
  0xa6   : > { %v3557_v4 = vpack.c.bf16 %v402_v57, %v402_v57 }
  0xa7   : > { %815 = vrot.lane.b32.xlu0 %v744_v58, %s3215_s13  ;;  %807 = vrot.lane.b32.xlu2 %v740_v59, %s3215_s13  ;;  %v725_v58 = vld [vmem:[#allocation2 + $0xf2] sm:$0xff] }
  0xa8   : > { %v403_v59 = vld [vmem:[#allocation2 + $0xf0] sm:$0xff]  ;;  %467 = vst.msk [vmem:[#allocation3 + $0x4c] sm:$0xf] %vm447_vm3, %v3557_v4 }
  0xa9   : > { %v585_v6 = vpop.permute.xlu2 %584  ;;  %v3554_v62 = vpack.c.bf16 %v403_v59, %v403_v59  ;;  %v734_v59 = vld [vmem:[#allocation2 + $0x15a] sm:$0xff] }
  0xaa   : > { %677 = vst.msk [vmem:[#allocation3 + $0x10] sm:$0xf] %vm672_vm4, %v585_v6  ;;  %v757_v6 = vpack.c.bf16 %v725_v58, %v725_v58  ;;  %v411_v58 = vld [vmem:[#allocation2 + $0x150] sm:$0xff]  ;;  %v766_v11 = vpack.c.bf16 %v734_v59, %v734_v59  ;;  %v1156_v59 = vld [vmem:[#allocation2 + $0x21] sm:$0xff] }
  0xab   : > { %468 = vst.msk [vmem:[#allocation3 + $0x50] sm:$0xf] %vm447_vm3, %v3554_v62 }
  0xad   : > { %817 = vrot.lane.b32.xlu1 %v745_v5, %s3215_s13 }
  0xaf   : > { %821 = vrot.lane.b32.xlu0 %v747_v7, %s3215_s13  ;;  %813 = vrot.lane.b32.xlu2 %v743_v8, %s3215_s13  ;;  %v3561_v8 = vpack.c.bf16 %v404_v60, %v404_v60  ;;  %v412_v60 = vld [vmem:[#allocation2 + $0x158] sm:$0xff] }
  0xb0   : > { %v3617_v3 = vpack.c.bf16 %v412_v60, %v412_v60 }
  0xb1   : > { %v587_v19 = vpop.permute.xlu2 %586  ;;  %469 = vst.msk [vmem:[#allocation3 + $0x54] sm:$0xf] %vm447_vm3, %v3561_v8 }
  0xb2   : > { %678 = vst.msk [vmem:[#allocation3 + $0x14] sm:$0xf] %vm672_vm4, %v587_v19  ;;  %v3575_v19 = vpack.c.bf16 %v406_v16, %v406_v16 }
  0xb3   : > { %477 = vst.msk [vmem:[#allocation3 + $0x74] sm:$0xf] %vm447_vm3, %v3617_v3 }
  0xb4   : > { %471 = vst.msk [vmem:[#allocation3 + $0x5c] sm:$0xf] %vm447_vm3, %v3575_v19 }
  0xb5   : > { %823 = vrot.lane.b32.xlu1 %v748_v18, %s3215_s13 }
  0xb7   : > { %827 = vrot.lane.b32.xlu0 %v750_v20, %s3215_s13  ;;  %v581_v26 = vpop.permute.xlu1 %580  ;;  %819 = vrot.lane.b32.xlu2 %v3504_v21, %s3215_s13  ;;  %v730_v20 = vld [vmem:[#allocation2 + $0x12a] sm:$0xff] }
  0xb8   : > { %675 = vst.msk [vmem:[#allocation3 + $0x8] sm:$0xf] %vm672_vm4, %v581_v26  ;;  %v762_v29 = vpack.c.bf16 %v730_v20, %v730_v20  ;;  %v414_v20 = vld [vmem:[#allocation2 + $0x170] sm:$0xff] }
  0xb9   : > { %v579_v31 = vpop.permute.xlu0 %578  ;;  %v593_v33 = vpop.permute.xlu2 %592 }
  0xba   : > { %674 = vst.msk [vmem:[#allocation3 + $0x4] sm:$0xf] %vm672_vm4, %v579_v31  ;;  %v3586_v31 = vpack.c.bf16 %v726_v22, %v726_v22  ;;  %v3635_v22 = vpack.c.bf16 %v414_v20, %v414_v20 }
  0xbb   : > { %681 = vst.msk [vmem:[#allocation3 + $0x20] sm:$0xf] %vm672_vm4, %v593_v33  ;;  %v731_v33 = vld [vmem:[#allocation2 + $0x13a] sm:$0xff] }
  0xbc   : > { %479 = vst.msk [vmem:[#allocation3 + $0x7c] sm:$0xf] %vm447_vm3, %v3635_v22 }
  0xbd   : > { %829 = vrot.lane.b32.xlu1 %v751_v32, %s3215_s13  ;;  %v408_v32 = vld [vmem:[#allocation2 + $0x128] sm:$0xff] }
  0xbe   : > { %v3599_v45 = vpack.c.bf16 %v408_v32, %v408_v32 }
  0xbf   : > { %833 = vrot.lane.b32.xlu0 %v753_v35, %s3215_s13  ;;  %v583_v43 = vpop.permute.xlu1 %582  ;;  %825 = vrot.lane.b32.xlu2 %v3523_v36, %s3215_s13  ;;  %v409_v35 = vld [vmem:[#allocation2 + $0x138] sm:$0xff] }
  0xc0   : > { %676 = vst.msk [vmem:[#allocation3 + $0xc] sm:$0xf] %vm672_vm4, %v583_v43  ;;  %v3596_v40 = vpack.c.bf16 %v409_v35, %v409_v35  ;;  %v729_v43 = vld [vmem:[#allocation2 + $0x122] sm:$0xff] }
  0xc1   : > { %v589_v48 = vpop.permute.xlu0 %588  ;;  %v599_v50 = vpop.permute.xlu2 %598  ;;  %v3607_v57 = vpack.c.bf16 %v729_v43, %v729_v43  ;;  %473 = vst.msk [vmem:[#allocation3 + $0x64] sm:$0xf] %vm447_vm3, %v3599_v45  ;;  %v303_v43 = vld [vmem:[%s3346_s12 + $0xf8] sm:$0xff] }
  0xc2   : > { %679 = vst.msk [vmem:[#allocation3 + $0x18] sm:$0xf] %vm672_vm4, %v589_v48  ;;  %v763_v48 = vpack.c.bf16 %v731_v33, %v731_v33 }
  0xc3   : > { %684 = vst.msk [vmem:[#allocation3 + $0x2c] sm:$0xf] %vm672_vm4, %v599_v50  ;;  %v3603_v50 = vpack.c.bf16 %v410_v37, %v410_v37 }
  0xc4   : > { %474 = vst.msk [vmem:[#allocation3 + $0x68] sm:$0xf] %vm447_vm3, %v3596_v40 }
  0xc5   : > { %835 = vrot.lane.b32.xlu1 %v754_v49, %s3215_s13  ;;  %475 = vst.msk [vmem:[#allocation3 + $0x6c] sm:$0xf] %vm447_vm3, %v3603_v50 }
  0xc6   : > { %382 = vst.msk [vmem:[#allocation2 + $0x189] sm:$0xff] %vm304_vm0, %v303_v43  ;;  %v1171_v43 = vld [vmem:[#allocation2 + $0xd9] sm:$0xff] }
  0xc7   : > { %839 = vrot.lane.b32.xlu0 %v756_v55, %s3215_s13  ;;  %v591_v61 = vpop.permute.xlu1 %590  ;;  %831 = vrot.lane.b32.xlu2 %v3544_v56, %s3215_s13  ;;  %v765_v55 = vpack.c.bf16 %v733_v42, %v733_v42  ;;  %v302_v42 = vld [vmem:[%s3346_s12 + $0xf0] sm:$0xff] }
  0xc8   : > { %680 = vst.msk [vmem:[#allocation3 + $0x1c] sm:$0xf] %vm672_vm4, %v591_v61  ;;  %v413_v61 = vld [vmem:[#allocation2 + $0x168] sm:$0xff] }
  0xc9   : > { %v595_v5 = vpop.permute.xlu0 %594  ;;  %v605_v7 = vpop.permute.xlu2 %604  ;;  %v3624_v16 = vpack.c.bf16 %v413_v61, %v413_v61  ;;  %381 = vst.msk [vmem:[#allocation2 + $0x181] sm:$0xff] %vm304_vm0, %v302_v42 }
  0xca   : > { %682 = vst.msk [vmem:[#allocation3 + $0x24] sm:$0xf] %vm672_vm4, %v595_v5  ;;  %v736_v5 = vld [vmem:[#allocation2 + $0x172] sm:$0xff] }
  0xcb   : > { %687 = vst.msk [vmem:[#allocation3 + $0x38] sm:$0xf] %vm672_vm4, %v605_v7  ;;  %v3620_v7 = vpack.c.bf16 %v411_v58, %v411_v58  ;;  %v768_v17 = vpack.c.bf16 %v736_v5, %v736_v5 }
  0xcc   : > { %478 = vst.msk [vmem:[#allocation3 + $0x78] sm:$0xf] %vm447_vm3, %v3624_v16 }
  0xcd   : > { %841 = vrot.lane.b32.xlu1 %v757_v6, %s3215_s13  ;;  %v732_v6 = vld [vmem:[#allocation2 + $0x142] sm:$0xff]  ;;  %476 = vst.msk [vmem:[#allocation3 + $0x70] sm:$0xf] %vm447_vm3, %v3620_v7 }
  0xcf   : > { %845 = vrot.lane.b32.xlu0 %v759_v9, %s3215_s13  ;;  %v597_v18 = vpop.permute.xlu1 %596  ;;  %837 = vrot.lane.b32.xlu2 %v3565_v10, %s3215_s13 }
  0xd0   : > { %683 = vst.msk [vmem:[#allocation3 + $0x28] sm:$0xf] %vm672_vm4, %v597_v18  ;;  %v3628_v18 = vpack.c.bf16 %v732_v6, %v732_v6  ;;  %v961_v61 = vld [vmem:[#allocation2 + $0x188] sm:$0xff] }
  0xd1   : > { %v601_v24 = vpop.permute.xlu0 %600  ;;  %v611_v26 = vpop.permute.xlu2 %610 }
  0xd2   : > { %685 = vst.msk [vmem:[#allocation3 + $0x30] sm:$0xf] %vm672_vm4, %v601_v24 }
  0xd3   : > { %690 = vst.msk [vmem:[#allocation3 + $0x44] sm:$0xf] %vm672_vm4, %v611_v26 }
  0xd5   : > { %847 = vrot.lane.b32.xlu1 %v760_v25, %s3215_s13  ;;  %v735_v25 = vld [vmem:[#allocation2 + $0x16a] sm:$0xff] }
  0xd6   : > { %v3645_v32 = vpack.c.bf16 %v735_v25, %v735_v25 }
  0xd7   : > { %851 = vrot.lane.b32.xlu0 %v762_v29, %s3215_s13  ;;  %v603_v38 = vpop.permute.xlu1 %602  ;;  %843 = vrot.lane.b32.xlu2 %v3586_v31, %s3215_s13 }
  0xd8   : > { %686 = vst.msk [vmem:[#allocation3 + $0x34] sm:$0xf] %vm672_vm4, %v603_v38 }
  0xd9   : > { %v607_v46 = vpop.permute.xlu0 %606  ;;  %v617_v49 = vpop.permute.xlu2 %616 }
  0xda   : > { %688 = vst.msk [vmem:[#allocation3 + $0x3c] sm:$0xf] %vm672_vm4, %v607_v46  ;;  %v960_v46 = vld [vmem:[#allocation2 + $0x180] sm:$0xff] }
  0xdb   : > { %693 = vst.msk [vmem:[#allocation3 + $0x50] sm:$0xf] %vm672_vm4, %v617_v49  ;;  %v992_v49 = vpack.c.bf16 %v960_v46, %v960_v46 }
  0xdd   : > { %853 = vrot.lane.b32.xlu1 %v763_v48, %s3215_s13 }
  0xdf   : > { %857 = vrot.lane.b32.xlu0 %v765_v55, %s3215_s13  ;;  %v609_v0 = vpop.permute.xlu1 %608  ;;  %849 = vrot.lane.b32.xlu2 %v3607_v57, %s3215_s13 }
  0xe0   : > { %689 = vst.msk [vmem:[#allocation3 + $0x40] sm:$0xf] %vm672_vm4, %v609_v0 }
  0xe1   : > { %v613_v9 = vpop.permute.xlu0 %612  ;;  %v623_v13 = vpop.permute.xlu2 %622 }
  0xe2   : > { %691 = vst.msk [vmem:[#allocation3 + $0x48] sm:$0xf] %vm672_vm4, %v613_v9  ;;  %v1159_v9 = vld [vmem:[#allocation2 + $0x49] sm:$0xff] }
  0xe3   : > { %696 = vst.msk [vmem:[#allocation3 + $0x5c] sm:$0xf] %vm672_vm4, %v623_v13  ;;  %v1161_v13 = vld [vmem:[#allocation2 + $0x61] sm:$0xff]  ;;  %v3755_v20 = vpack.c.bf16 %v1159_v9, %v1159_v9 }
  0xe5   : > { %859 = vrot.lane.b32.xlu1 %v766_v11, %s3215_s13 }
  0xe7   : > { %863 = vrot.lane.b32.xlu0 %v768_v17, %s3215_s13  ;;  %v615_v24 = vpop.permute.xlu1 %614  ;;  %855 = vrot.lane.b32.xlu2 %v3628_v18, %s3215_s13 }
  0xe8   : > { %692 = vst.msk [vmem:[#allocation3 + $0x4c] sm:$0xf] %vm672_vm4, %v615_v24  ;;  %v3758_v24 = vpack.c.bf16 %v1161_v13, %v1161_v13  ;;  %v1175_v13 = vld [vmem:[#allocation2 + $0x109] sm:$0xff] }
  0xe9   : > { %v619_v26 = vpop.permute.xlu0 %618  ;;  %v629_v29 = vpop.permute.xlu2 %628 }
  0xea   : > { %694 = vst.msk [vmem:[#allocation3 + $0x54] sm:$0xf] %vm672_vm4, %v619_v26  ;;  %v1162_v26 = vld [vmem:[#allocation2 + $0x69] sm:$0xff] }
  0xeb   : > { %699 = vst.msk [vmem:[#allocation3 + $0x68] sm:$0xf] %vm672_vm4, %v629_v29 }
  0xed   : > { %1026 = vrot.lane.b32.xlu1 %v3448_v39, %s3216_s14 }
  0xef   : > { %1030 = vrot.lane.b32.xlu0 %v3452_v41, %s3216_s14  ;;  %v621_v33 = vpop.permute.xlu1 %620  ;;  %861 = vrot.lane.b32.xlu2 %v3645_v32, %s3215_s13  ;;  %s4240_s13 = scalar_lea.vmem %s4582_s4, %s3036_s10 }
  0xf0   : > { %695 = vst.msk [vmem:[#allocation3 + $0x58] sm:$0xf] %vm672_vm4, %v621_v33  ;;  %v1164_v33 = vld [vmem:[#allocation2 + $0x81] sm:$0xff] }
  0xf1   : > { %v625_v35 = vpop.permute.xlu0 %624  ;;  %v635_v37 = vpop.permute.xlu2 %634 }
  0xf2   : > { %697 = vst.msk [vmem:[#allocation3 + $0x60] sm:$0xf] %vm672_vm4, %v625_v35  ;;  %v1160_v35 = vld [vmem:[#allocation2 + $0x51] sm:$0xff] }
  0xf3   : > { %702 = vst.msk [vmem:[#allocation3 + $0x74] sm:$0xf] %vm672_vm4, %v635_v37 }
  0xf5   : > { %1032 = vrot.lane.b32.xlu1 %v3464_v53, %s3216_s14 }
  0xf7   : > { %1036 = vrot.lane.b32.xlu0 %v3475_v63, %s3216_s14  ;;  %v627_v39 = vpop.permute.xlu1 %626  ;;  %1028 = vrot.lane.b32.xlu2 %v3460_v51, %s3216_s14 }
  0xf8   : > { %698 = vst.msk [vmem:[#allocation3 + $0x64] sm:$0xf] %vm672_vm4, %v627_v39  ;;  %v3770_v39 = vpack.c.bf16 %v1162_v26, %v1162_v26 }
  0xf9   : > { %v631_v41 = vpop.permute.xlu0 %630  ;;  %v802_v38 = vpop.permute.xlu2 %801 }
  0xfa   : > { %700 = vst.msk [vmem:[#allocation3 + $0x6c] sm:$0xf] %vm672_vm4, %v631_v41 }
  0xfb   : > { %898 = vst.msk [vmem:[#allocation3] sm:$0xf] %vm897_vm5, %v802_v38  ;;  %v1196_v38 = vpack.c.bf16 %v1164_v33, %v1164_v33  ;;  %v1180_v33 = vld [vmem:[#allocation2 + $0x141] sm:$0xff] }
  0xfd   : > { %1038 = vrot.lane.b32.xlu1 %v3479_v1, %s3216_s14 }
  0xff   : > { %1042 = vrot.lane.b32.xlu0 %v3491_v12, %s3216_s14  ;;  %v633_v53 = vpop.permute.xlu1 %632  ;;  %1034 = vrot.lane.b32.xlu2 %v3466_v54, %s3216_s14 }
 0x100   : > { %701 = vst.msk [vmem:[#allocation3 + $0x70] sm:$0xf] %vm672_vm4, %v633_v53  ;;  %v3774_v53 = vpack.c.bf16 %v1160_v35, %v1160_v35 }
 0x101   : > { %v637_v51 = vpop.permute.xlu0 %636  ;;  %v808_v63 = vpop.permute.xlu2 %807 }
 0x102   : > { %703 = vst.msk [vmem:[#allocation3 + $0x78] sm:$0xf] %vm672_vm4, %v637_v51  ;;  %v1165_v51 = vld [vmem:[#allocation2 + $0x91] sm:$0xff] }
 0x103   : > { %901 = vst.msk [vmem:[#allocation3 + $0xc] sm:$0xf] %vm897_vm5, %v808_v63 }
 0x105   : > { %1044 = vrot.lane.b32.xlu1 %v3495_v14, %s3216_s14 }
 0x107   : > { %1048 = vrot.lane.b32.xlu0 %v3515_v30, %s3216_s14  ;;  %v639_v1 = vpop.permute.xlu1 %638  ;;  %1040 = vrot.lane.b32.xlu2 %v3481_v2, %s3216_s14 }
 0x108   : > { %704 = vst.msk [vmem:[#allocation3 + $0x7c] sm:$0xf] %vm672_vm4, %v639_v1  ;;  %v1167_v1 = vld [vmem:[#allocation2 + $0xa9] sm:$0xff] }
 0x109   : > { %v804_v54 = vpop.permute.xlu0 %803  ;;  %v814_v12 = vpop.permute.xlu2 %813 }
 0x10a   : > { %899 = vst.msk [vmem:[#allocation3 + $0x4] sm:$0xf] %vm897_vm5, %v804_v54  ;;  %v1163_v54 = vld [vmem:[#allocation2 + $0x79] sm:$0xff] }
 0x10b   : > { %904 = vst.msk [vmem:[#allocation3 + $0x18] sm:$0xf] %vm897_vm5, %v814_v12  ;;  %v1195_v42 = vpack.c.bf16 %v1163_v54, %v1163_v54 }
 0x10d   : > { %1050 = vrot.lane.b32.xlu1 %v3512_v27, %s3216_s14 }
 0x10f   : > { %1054 = vrot.lane.b32.xlu0 %v3536_v47, %s3216_s14  ;;  %v806_v14 = vpop.permute.xlu1 %805  ;;  %1046 = vrot.lane.b32.xlu2 %v3497_v15, %s3216_s14 }
 0x110   : > { %900 = vst.msk [vmem:[#allocation3 + $0x8] sm:$0xf] %vm897_vm5, %v806_v14  ;;  %v3782_v14 = vpack.c.bf16 %v1165_v51, %v1165_v51  ;;  %v1212_v51 = vpack.c.bf16 %v1180_v33, %v1180_v33 }
 0x111   : > { %v810_v2 = vpop.permute.xlu0 %809  ;;  %v820_v30 = vpop.permute.xlu2 %819 }
 0x112   : > { %902 = vst.msk [vmem:[#allocation3 + $0x10] sm:$0xf] %vm897_vm5, %v810_v2 }
 0x113   : > { %907 = vst.msk [vmem:[#allocation3 + $0x24] sm:$0xf] %vm897_vm5, %v820_v30  ;;  %v3785_v30 = vpack.c.bf16 %v1167_v1, %v1167_v1 }
 0x115   : > { %1056 = vrot.lane.b32.xlu1 %v3533_v44, %s3216_s14 }
 0x117   : > { %1060 = vrot.lane.b32.xlu0 %v3557_v4, %s3216_s14  ;;  %v812_v27 = vpop.permute.xlu1 %811  ;;  %1052 = vrot.lane.b32.xlu2 %v3519_v34, %s3216_s14 }
 0x118   : > { %903 = vst.msk [vmem:[#allocation3 + $0x14] sm:$0xf] %vm897_vm5, %v812_v27  ;;  %v1168_v27 = vld [vmem:[#allocation2 + $0xb1] sm:$0xff] }
 0x119   : > { %v816_v15 = vpop.permute.xlu0 %815  ;;  %v826_v47 = vpop.permute.xlu2 %825 }
 0x11a   : > { %905 = vst.msk [vmem:[#allocation3 + $0x1c] sm:$0xf] %vm897_vm5, %v816_v15 }
 0x11b   : > { %910 = vst.msk [vmem:[#allocation3 + $0x30] sm:$0xf] %vm897_vm5, %v826_v47  ;;  %v1170_v47 = vld [vmem:[#allocation2 + $0xc9] sm:$0xff] }
 0x11d   : > { %1062 = vrot.lane.b32.xlu1 %v3554_v62, %s3216_s14 }
 0x11f   : > { %1066 = vrot.lane.b32.xlu0 %v3578_v23, %s3216_s14  ;;  %v818_v44 = vpop.permute.xlu1 %817  ;;  %1058 = vrot.lane.b32.xlu2 %v3540_v52, %s3216_s14 }
 0x120   : > { %906 = vst.msk [vmem:[#allocation3 + $0x20] sm:$0xf] %vm897_vm5, %v818_v44  ;;  %v1166_v44 = vld [vmem:[#allocation2 + $0x99] sm:$0xff] }
 0x121   : > { %v822_v34 = vpop.permute.xlu0 %821  ;;  %v832_v4 = vpop.permute.xlu2 %831 }
 0x122   : > { %908 = vst.msk [vmem:[#allocation3 + $0x28] sm:$0xf] %vm897_vm5, %v822_v34 }
 0x123   : > { %913 = vst.msk [vmem:[#allocation3 + $0x3c] sm:$0xf] %vm897_vm5, %v832_v4  ;;  %v3794_v4 = vpack.c.bf16 %v1168_v27, %v1168_v27  ;;  %v1181_v27 = vld [vmem:[#allocation2 + $0x151] sm:$0xff] }
 0x125   : > { %1068 = vrot.lane.b32.xlu1 %v3575_v19, %s3216_s14 }
 0x127   : > { %1072 = vrot.lane.b32.xlu0 %v3599_v45, %s3216_s14  ;;  %v824_v62 = vpop.permute.xlu1 %823  ;;  %1064 = vrot.lane.b32.xlu2 %v3561_v8, %s3216_s14 }
 0x128   : > { %909 = vst.msk [vmem:[#allocation3 + $0x2c] sm:$0xf] %vm897_vm5, %v824_v62 }
 0x129   : > { %v828_v52 = vpop.permute.xlu0 %827  ;;  %v838_v23 = vpop.permute.xlu2 %837 }
 0x12a   : > { %911 = vst.msk [vmem:[#allocation3 + $0x34] sm:$0xf] %vm897_vm5, %v828_v52  ;;  %v1202_v52 = vpack.c.bf16 %v1170_v47, %v1170_v47 }
 0x12b   : > { %916 = vst.msk [vmem:[#allocation3 + $0x48] sm:$0xf] %vm897_vm5, %v838_v23  ;;  %v3798_v23 = vpack.c.bf16 %v1166_v44, %v1166_v44 }
 0x12d   : > { %1074 = vrot.lane.b32.xlu1 %v3596_v40, %s3216_s14 }
 0x12f   : > { %1078 = vrot.lane.b32.xlu0 %v3620_v7, %s3216_s14  ;;  %v830_v19 = vpop.permute.xlu1 %829  ;;  %1070 = vrot.lane.b32.xlu2 %v3582_v28, %s3216_s14  ;;  %v1155_v28 = vld [vmem:[#allocation2 + $0x19] sm:$0xff]  ;;  %v993_v7 = vpack.c.bf16 %v961_v61, %v961_v61 }
 0x130   : > { %912 = vst.msk [vmem:[#allocation3 + $0x38] sm:$0xf] %vm897_vm5, %v830_v19  ;;  %v1187_v58 = vpack.c.bf16 %v1155_v28, %v1155_v28 }
 0x131   : > { %v834_v8 = vpop.permute.xlu0 %833  ;;  %v844_v45 = vpop.permute.xlu2 %843 }
 0x132   : > { %914 = vst.msk [vmem:[#allocation3 + $0x40] sm:$0xf] %vm897_vm5, %v834_v8  ;;  %v1173_v8 = vld [vmem:[#allocation2 + $0xf1] sm:$0xff] }
 0x133   : > { %919 = vst.msk [vmem:[#allocation3 + $0x54] sm:$0xf] %vm897_vm5, %v844_v45  ;;  %v1169_v45 = vld [vmem:[#allocation2 + $0xc1] sm:$0xff] }
 0x135   : > { %1080 = vrot.lane.b32.xlu1 %v3617_v3, %s3216_s14  ;;  %v1188_v3 = vpack.c.bf16 %v1156_v59, %v1156_v59  ;;  %v1176_v59 = vld [vmem:[#allocation2 + $0x111] sm:$0xff] }
 0x137   : > { %1084 = vrot.lane.b32.xlu0 %v3635_v22, %s3216_s14  ;;  %v836_v40 = vpop.permute.xlu1 %835  ;;  %1076 = vrot.lane.b32.xlu2 %v3603_v50, %s3216_s14  ;;  %v1158_v50 = vld [vmem:[#allocation2 + $0x39] sm:$0xff] }
 0x138   : > { %915 = vst.msk [vmem:[#allocation3 + $0x44] sm:$0xf] %vm897_vm5, %v836_v40  ;;  %v3747_v6 = vpack.c.bf16 %v1158_v50, %v1158_v50  ;;  %v1203_v40 = vpack.c.bf16 %v1171_v43, %v1171_v43 }
 0x139   : > { %v840_v48 = vpop.permute.xlu0 %839  ;;  %v850_v55 = vpop.permute.xlu2 %849 }
 0x13a   : > { %917 = vst.msk [vmem:[#allocation3 + $0x4c] sm:$0xf] %vm897_vm5, %v840_v48  ;;  %v3807_v48 = vpack.c.bf16 %v1173_v8, %v1173_v8  ;;  %v1184_v8 = vld [vmem:[#allocation2 + $0x171] sm:$0xff] }
 0x13b   : > { %922 = vst.msk [vmem:[#allocation3 + $0x60] sm:$0xf] %vm897_vm5, %v850_v55  ;;  %v1174_v55 = vld [vmem:[#allocation2 + $0xf9] sm:$0xff] }
 0x13c   : > { %v3818_v61 = vpack.c.bf16 %v1174_v55, %v1174_v55  ;;  %v1216_v55 = vpack.c.bf16 %v1184_v8, %v1184_v8 }
 0x13d   : > { %1086 = vrot.lane.b32.xlu1 %v992_v49, %s3216_s14  ;;  %v3810_v49 = vpack.c.bf16 %v1169_v45, %v1169_v45 }
 0x13f   : > { %1251 = vrot.lane.b32.xlu0 %v1187_v58, %s3217_s15  ;;  %v842_v60 = vpop.permute.xlu1 %841  ;;  %1082 = vrot.lane.b32.xlu2 %v3624_v16, %s3216_s14  ;;  %v1157_v16 = vld [vmem:[#allocation2 + $0x31] sm:$0xff] }
 0x140   : > { %918 = vst.msk [vmem:[#allocation3 + $0x50] sm:$0xf] %vm897_vm5, %v842_v60  ;;  %v3761_v25 = vpack.c.bf16 %v1157_v16, %v1157_v16  ;;  %v1172_v60 = vld [vmem:[#allocation2 + $0xe1] sm:$0xff] }
 0x141   : > { %v846_v0 = vpop.permute.xlu0 %845  ;;  %v856_v5 = vpop.permute.xlu2 %855 }
 0x142   : > { %920 = vst.msk [vmem:[#allocation3 + $0x58] sm:$0xf] %vm897_vm5, %v846_v0 }
 0x143   : > { %925 = vst.msk [vmem:[#allocation3 + $0x6c] sm:$0xf] %vm897_vm5, %v856_v5  ;;  %v1204_v5 = vpack.c.bf16 %v1172_v60, %v1172_v60  ;;  %v1384_v60 = vld [vmem:[#allocation2 + $0x4a] sm:$0xff] }
 0x145   : > { %1253 = vrot.lane.b32.xlu1 %v1188_v3, %s3217_s15  ;;  %v3821_v3 = vpack.c.bf16 %v1176_v59, %v1176_v59 }
 0x147   : > { %1257 = vrot.lane.b32.xlu0 %v3747_v6, %s3217_s15  ;;  %v848_v11 = vpop.permute.xlu1 %847  ;;  %1088 = vrot.lane.b32.xlu2 %v993_v7, %s3216_s14  ;;  %v1177_v7 = vld [vmem:[#allocation2 + $0x121] sm:$0xff]  ;;  %s3137_s14 = scalar_lea.hbm %s4583_s5, 3 }
 0x148   : > { %921 = vst.msk [vmem:[#allocation3 + $0x5c] sm:$0xf] %vm897_vm5, %v848_v11  ;;  %v1179_v11 = vld [vmem:[#allocation2 + $0x139] sm:$0xff] }
 0x149   : > { %v852_v17 = vpop.permute.xlu0 %851  ;;  %v862_v22 = vpop.permute.xlu2 %861  ;;  %v1211_v26 = vpack.c.bf16 %v1179_v11, %v1179_v11 }
 0x14a   : > { %923 = vst.msk [vmem:[#allocation3 + $0x64] sm:$0xf] %vm897_vm5, %v852_v17  ;;  %v1209_v17 = vpack.c.bf16 %v1177_v7, %v1177_v7 }
 0x14b   : > { %928 = vst.msk [vmem:[#allocation3 + $0x78] sm:$0xf] %vm897_vm5, %v862_v22 }
 0x14d   : > { %1259 = vrot.lane.b32.xlu1 %v3755_v20, %s3217_s15 }
 0x14f   : > { %1263 = vrot.lane.b32.xlu0 %v3758_v24, %s3217_s15  ;;  %v854_v29 = vpop.permute.xlu1 %853  ;;  %1255 = vrot.lane.b32.xlu2 %v3761_v25, %s3217_s15 }
 0x150   : > { %924 = vst.msk [vmem:[#allocation3 + $0x68] sm:$0xf] %vm897_vm5, %v854_v29  ;;  %v3832_v29 = vpack.c.bf16 %v1175_v13, %v1175_v13  ;;  %v1385_v13 = vld [vmem:[#allocation2 + $0x52] sm:$0xff] }
 0x151   : > { %v858_v37 = vpop.permute.xlu0 %857  ;;  %v1029_v41 = vpop.permute.xlu2 %1028 }
 0x152   : > { %926 = vst.msk [vmem:[#allocation3 + $0x70] sm:$0xf] %vm897_vm5, %v858_v37  ;;  %v1182_v37 = vld [vmem:[#allocation2 + $0x159] sm:$0xff] }
 0x153   : > { %1124 = vst.msk [vmem:[#allocation3 + $0x4] sm:$0xf] %vm1122_vm6, %v1029_v41  ;;  %v1178_v41 = vld [vmem:[#allocation2 + $0x129] sm:$0xff]  ;;  %v3840_v1 = vpack.c.bf16 %v1182_v37, %v1182_v37  ;;  %v1388_v37 = vld [vmem:[#allocation2 + $0x7a] sm:$0xff] }
 0x154   : > { %v3843_v54 = vpack.c.bf16 %v1178_v41, %v1178_v41 }
 0x155   : > { %1265 = vrot.lane.b32.xlu1 %v3770_v39, %s3217_s15 }
 0x157   : > { %1269 = vrot.lane.b32.xlu0 %v1196_v38, %s3217_s15  ;;  %v860_v63 = vpop.permute.xlu1 %859  ;;  %1261 = vrot.lane.b32.xlu2 %v3774_v53, %s3217_s15 }
 0x158   : > { %927 = vst.msk [vmem:[#allocation3 + $0x74] sm:$0xf] %vm897_vm5, %v860_v63 }
 0x159   : > { %v864_v12 = vpop.permute.xlu0 %863  ;;  %v1035_v2 = vpop.permute.xlu2 %1034 }
 0x15a   : > { %929 = vst.msk [vmem:[#allocation3 + $0x7c] sm:$0xf] %vm897_vm5, %v864_v12  ;;  %v1183_v12 = vld [vmem:[#allocation2 + $0x169] sm:$0xff] }
 0x15b   : > { %1127 = vst.msk [vmem:[#allocation3 + $0x10] sm:$0xf] %vm1122_vm6, %v1035_v2  ;;  %v1215_v47 = vpack.c.bf16 %v1183_v12, %v1183_v12 }
 0x15d   : > { %1271 = vrot.lane.b32.xlu1 %v3782_v14, %s3217_s15 }
 0x15f   : > { %1275 = vrot.lane.b32.xlu0 %v3785_v30, %s3217_s15  ;;  %v1027_v15 = vpop.permute.xlu1 %1026  ;;  %1267 = vrot.lane.b32.xlu2 %v1195_v42, %s3217_s15  ;;  %v1185_v42 = vld [vmem:[#allocation2 + $0x181] sm:$0xff] }
 0x160   : > { %1123 = vst.msk [vmem:[#allocation3] sm:$0xf] %vm1122_vm6, %v1027_v15 }
 0x161   : > { %v1031_v34 = vpop.permute.xlu0 %1030  ;;  %v1041_v62 = vpop.permute.xlu2 %1040 }
 0x162   : > { %1125 = vst.msk [vmem:[#allocation3 + $0x8] sm:$0xf] %vm1122_vm6, %v1031_v34  ;;  %v1217_v34 = vpack.c.bf16 %v1185_v42, %v1185_v42 }
 0x163   : > { %1130 = vst.msk [vmem:[#allocation3 + $0x1c] sm:$0xf] %vm1122_vm6, %v1041_v62  ;;  %v3853_v62 = vpack.c.bf16 %v1181_v27, %v1181_v27  ;;  %v1389_v27 = vld [vmem:[#allocation2 + $0x82] sm:$0xff] }
 0x165   : > { %1277 = vrot.lane.b32.xlu1 %v3794_v4, %s3217_s15 }
 0x167   : > { %1281 = vrot.lane.b32.xlu0 %v1202_v52, %s3217_s15  ;;  %v1033_v19 = vpop.permute.xlu1 %1032  ;;  %1273 = vrot.lane.b32.xlu2 %v3798_v23, %s3217_s15  ;;  %v1186_v52 = vld [vmem:[#allocation2 + $0x189] sm:$0xff] }
 0x168   : > { %1126 = vst.msk [vmem:[#allocation3 + $0xc] sm:$0xf] %vm1122_vm6, %v1033_v19  ;;  %v1381_v19 = vld [vmem:[#allocation2 + $0x22] sm:$0xff] }
 0x169   : > { %v1037_v46 = vpop.permute.xlu0 %1036  ;;  %v1047_v28 = vpop.permute.xlu2 %1046 }
 0x16a   : > { %1128 = vst.msk [vmem:[#allocation3 + $0x14] sm:$0xf] %vm1122_vm6, %v1037_v46  ;;  %v1218_v46 = vpack.c.bf16 %v1186_v52, %v1186_v52 }
 0x16b   : > { %1133 = vst.msk [vmem:[#allocation3 + $0x28] sm:$0xf] %vm1122_vm6, %v1047_v28  ;;  %v1413_v28 = vpack.c.bf16 %v1381_v19, %v1381_v19 }
 0x16d   : > { %1283 = vrot.lane.b32.xlu1 %v1203_v40, %s3217_s15 }
 0x16f   : > { %1287 = vrot.lane.b32.xlu0 %v3807_v48, %s3217_s15  ;;  %v1039_v58 = vpop.permute.xlu1 %1038  ;;  %1279 = vrot.lane.b32.xlu2 %v3810_v49, %s3217_s15 }
 0x170   : > { %1129 = vst.msk [vmem:[#allocation3 + $0x18] sm:$0xf] %vm1122_vm6, %v1039_v58  ;;  %v1382_v58 = vld [vmem:[#allocation2 + $0x32] sm:$0xff] }
 0x171   : > { %v1043_v50 = vpop.permute.xlu0 %1042  ;;  %v1053_v0 = vpop.permute.xlu2 %1052 }
 0x172   : > { %1131 = vst.msk [vmem:[#allocation3 + $0x20] sm:$0xf] %vm1122_vm6, %v1043_v50  ;;  %v1380_v50 = vld [vmem:[#allocation2 + $0x1a] sm:$0xff] }
 0x173   : > { %1136 = vst.msk [vmem:[#allocation3 + $0x34] sm:$0xf] %vm1122_vm6, %v1053_v0  ;;  %v1412_v11 = vpack.c.bf16 %v1380_v50, %v1380_v50 }
 0x175   : > { %1289 = vrot.lane.b32.xlu1 %v3818_v61, %s3217_s15 }
 0x177   : > { %1293 = vrot.lane.b32.xlu0 %v3821_v3, %s3217_s15  ;;  %v1045_v9 = vpop.permute.xlu1 %1044  ;;  %1285 = vrot.lane.b32.xlu2 %v1204_v5, %s3217_s15  ;;  %v3866_v5 = vpack.c.bf16 %v1382_v58, %v1382_v58 }
 0x178   : > { %1132 = vst.msk [vmem:[#allocation3 + $0x24] sm:$0xf] %vm1122_vm6, %v1045_v9  ;;  %v3869_v9 = vpack.c.bf16 %v1384_v60, %v1384_v60 }
 0x179   : > { %v1049_v16 = vpop.permute.xlu0 %1048  ;;  %v1059_v22 = vpop.permute.xlu2 %1058 }
 0x17a   : > { %1134 = vst.msk [vmem:[#allocation3 + $0x2c] sm:$0xf] %vm1122_vm6, %v1049_v16 }
 0x17b   : > { %1139 = vst.msk [vmem:[#allocation3 + $0x40] sm:$0xf] %vm1122_vm6, %v1059_v22 }
 0x17d   : > { %1295 = vrot.lane.b32.xlu1 %v1209_v17, %s3217_s15  ;;  %v1383_v17 = vld [vmem:[#allocation2 + $0x3a] sm:$0xff] }
 0x17f   : > { %1299 = vrot.lane.b32.xlu0 %v1211_v26, %s3217_s15  ;;  %v1051_v35 = vpop.permute.xlu1 %1050  ;;  %1291 = vrot.lane.b32.xlu2 %v3832_v29, %s3217_s15  ;;  %v3878_v26 = vpack.c.bf16 %v1385_v13, %v1385_v13 }
 0x180   : > { %1135 = vst.msk [vmem:[#allocation3 + $0x30] sm:$0xf] %vm1122_vm6, %v1051_v35  ;;  %v3882_v35 = vpack.c.bf16 %v1383_v17, %v1383_v17 }
 0x181   : > { %v1055_v38 = vpop.permute.xlu0 %1054  ;;  %v1065_v63 = vpop.permute.xlu2 %1064 }
 0x182   : > { %1137 = vst.msk [vmem:[#allocation3 + $0x38] sm:$0xf] %vm1122_vm6, %v1055_v38  ;;  %v1386_v38 = vld [vmem:[#allocation2 + $0x62] sm:$0xff] }
 0x183   : > { %1142 = vst.msk [vmem:[#allocation3 + $0x4c] sm:$0xf] %vm1122_vm6, %v1065_v63  ;;  %v3891_v63 = vpack.c.bf16 %v1388_v37, %v1388_v37 }
 0x185   : > { %1301 = vrot.lane.b32.xlu1 %v1212_v51, %s3217_s15 }
 0x187   : > { %1305 = vrot.lane.b32.xlu0 %v3840_v1, %s3217_s15  ;;  %v1057_v2 = vpop.permute.xlu1 %1056  ;;  %1297 = vrot.lane.b32.xlu2 %v3843_v54, %s3217_s15 }
 0x188   : > { %1138 = vst.msk [vmem:[#allocation3 + $0x3c] sm:$0xf] %vm1122_vm6, %v1057_v2  ;;  %v3895_v2 = vpack.c.bf16 %v1386_v38, %v1386_v38 }
 0x189   : > { %v1061_v15 = vpop.permute.xlu0 %1060  ;;  %v1071_v44 = vpop.permute.xlu2 %1070 }
 0x18a   : > { %1140 = vst.msk [vmem:[#allocation3 + $0x44] sm:$0xf] %vm1122_vm6, %v1061_v15 }
 0x18b   : > { %1145 = vst.msk [vmem:[#allocation3 + $0x58] sm:$0xf] %vm1122_vm6, %v1071_v44 }
 0x18d   : > { %1307 = vrot.lane.b32.xlu1 %v1215_v47, %s3217_s15 }
 0x18f   : > { %1311 = vrot.lane.b32.xlu0 %v1217_v34, %s3217_s15  ;;  %v1063_v43 = vpop.permute.xlu1 %1062  ;;  %1303 = vrot.lane.b32.xlu2 %v3853_v62, %s3217_s15  ;;  %v3908_v34 = vpack.c.bf16 %v1389_v27, %v1389_v27 }
 0x190   : > { %1141 = vst.msk [vmem:[#allocation3 + $0x48] sm:$0xf] %vm1122_vm6, %v1063_v43  ;;  %v1392_v43 = vld [vmem:[#allocation2 + $0xaa] sm:$0xff] }
 0x191   : > { %v1067_v45 = vpop.permute.xlu0 %1066  ;;  %v1077_v40 = vpop.permute.xlu2 %1076 }
 0x192   : > { %1143 = vst.msk [vmem:[#allocation3 + $0x50] sm:$0xf] %vm1122_vm6, %v1067_v45 }
 0x193   : > { %1148 = vst.msk [vmem:[#allocation3 + $0x64] sm:$0xf] %vm1122_vm6, %v1077_v40 }
 0x195   : > { %1313 = vrot.lane.b32.xlu1 %v1218_v46, %s3217_s15  ;;  %v3921_v46 = vpack.c.bf16 %v1392_v43, %v1392_v43 }
 0x197   : > { %1478 = vrot.lane.b32.xlu0 %v1413_v28, %s3218_s16  ;;  %v1069_v59 = vpop.permute.xlu1 %1068  ;;  %1309 = vrot.lane.b32.xlu2 %v1216_v55, %s3217_s15  ;;  %v1395_v28 = vld [vmem:[#allocation2 + $0xca] sm:$0xff] }
 0x198   : > { %1144 = vst.msk [vmem:[#allocation3 + $0x54] sm:$0xf] %vm1122_vm6, %v1069_v59  ;;  %v3934_v60 = vpack.c.bf16 %v1395_v28, %v1395_v28 }
 0x199   : > { %v1073_v0 = vpop.permute.xlu0 %1072  ;;  %v1083_v7 = vpop.permute.xlu2 %1082 }
 0x19a   : > { %1146 = vst.msk [vmem:[#allocation3 + $0x5c] sm:$0xf] %vm1122_vm6, %v1073_v0  ;;  %v1398_v0 = vld [vmem:[#allocation2 + $0xf2] sm:$0xff] }
 0x19b   : > { %1151 = vst.msk [vmem:[#allocation3 + $0x70] sm:$0xf] %vm1122_vm6, %v1083_v7 }
 0x19d   : > { %1480 = vrot.lane.b32.xlu1 %v3866_v5, %s3218_s16 }
 0x19f   : > { %1484 = vrot.lane.b32.xlu0 %v3869_v9, %s3218_s16  ;;  %v1075_v16 = vpop.permute.xlu1 %1074  ;;  %1476 = vrot.lane.b32.xlu2 %v1412_v11, %s3218_s16 }
 0x1a0   : > { %1147 = vst.msk [vmem:[#allocation3 + $0x60] sm:$0xf] %vm1122_vm6, %v1075_v16  ;;  %v3947_v16 = vpack.c.bf16 %v1398_v0, %v1398_v0 }
 0x1a1   : > { %v1079_v22 = vpop.permute.xlu0 %1078  ;;  %v1089_v33 = vpop.permute.xlu2 %1088 }
 0x1a2   : > { %1149 = vst.msk [vmem:[#allocation3 + $0x68] sm:$0xf] %vm1122_vm6, %v1079_v22  ;;  %v1401_v22 = vld [vmem:[#allocation2 + $0x112] sm:$0xff] }
 0x1a3   : > { %1154 = vst.msk [vmem:[#allocation3 + $0x7c] sm:$0xf] %vm1122_vm6, %v1089_v33  ;;  %v3960_v38 = vpack.c.bf16 %v1401_v22, %v1401_v22 }
 0x1a5   : > { %1486 = vrot.lane.b32.xlu1 %v3878_v26, %s3218_s16 }
 0x1a7   : > { %1490 = vrot.lane.b32.xlu0 %v3504_v21, %s3218_s16  ;;  %v1081_v41 = vpop.permute.xlu1 %1080  ;;  %1482 = vrot.lane.b32.xlu2 %v3882_v35, %s3218_s16  ;;  %v1391_v21 = vld [vmem:[#allocation2 + $0x9a] sm:$0xff] }
 0x1a8   : > { %1150 = vst.msk [vmem:[#allocation3 + $0x6c] sm:$0xf] %vm1122_vm6, %v1081_v41  ;;  %v3904_v47 = vpack.c.bf16 %v1391_v21, %v1391_v21 }
 0x1a9   : > { %v1085_v51 = vpop.permute.xlu0 %1084  ;;  %v1256_v12 = vpop.permute.xlu2 %1255 }
 0x1aa   : > { %1152 = vst.msk [vmem:[#allocation3 + $0x74] sm:$0xf] %vm1122_vm6, %v1085_v51 }
 0x1ab   : > { %1350 = vst.msk [vmem:[#allocation3 + $0x8] sm:$0xf] %vm1347_vm7, %v1256_v12  ;;  %v1404_v12 = vld [vmem:[#allocation2 + $0x13a] sm:$0xff] }
 0x1ad   : > { %1492 = vrot.lane.b32.xlu1 %v3891_v63, %s3218_s16 }
 0x1af   : > { %1496 = vrot.lane.b32.xlu0 %v3523_v36, %s3218_s16  ;;  %v1087_v42 = vpop.permute.xlu1 %1086  ;;  %1488 = vrot.lane.b32.xlu2 %v3895_v2, %s3218_s16  ;;  %v1394_v36 = vld [vmem:[#allocation2 + $0xc2] sm:$0xff] }
 0x1b0   : > { %1153 = vst.msk [vmem:[#allocation3 + $0x78] sm:$0xf] %vm1122_vm6, %v1087_v42  ;;  %v3917_v8 = vpack.c.bf16 %v1394_v36, %v1394_v36  ;;  %v1407_v36 = vld [vmem:[#allocation2 + $0x15a] sm:$0xff] }
 0x1b1   : > { %v1252_v15 = vpop.permute.xlu0 %1251  ;;  %v1262_v44 = vpop.permute.xlu2 %1261 }
 0x1b2   : > { %1348 = vst.msk [vmem:[#allocation3] sm:$0xf] %vm1347_vm7, %v1252_v15  ;;  %v3973_v15 = vpack.c.bf16 %v1404_v12, %v1404_v12 }
 0x1b3   : > { %1353 = vst.msk [vmem:[#allocation3 + $0x14] sm:$0xf] %vm1347_vm7, %v1262_v44 }
 0x1b5   : > { %1498 = vrot.lane.b32.xlu1 %v3904_v47, %s3218_s16 }
 0x1b7   : > { %1502 = vrot.lane.b32.xlu0 %v3544_v56, %s3218_s16  ;;  %v1254_v52 = vpop.permute.xlu1 %1253  ;;  %1494 = vrot.lane.b32.xlu2 %v3908_v34, %s3218_s16  ;;  %v1397_v56 = vld [vmem:[#allocation2 + $0xe2] sm:$0xff] }
 0x1b8   : > { %1349 = vst.msk [vmem:[#allocation3 + $0x4] sm:$0xf] %vm1347_vm7, %v1254_v52  ;;  %v3930_v58 = vpack.c.bf16 %v1397_v56, %v1397_v56  ;;  %v1607_v56 = vld [vmem:[#allocation2 + $0x38] sm:$0xff] }
 0x1b9   : > { %v1258_v19 = vpop.permute.xlu0 %1257  ;;  %v1268_v45 = vpop.permute.xlu2 %1267 }
 0x1ba   : > { %1351 = vst.msk [vmem:[#allocation3 + $0xc] sm:$0xf] %vm1347_vm7, %v1258_v19 }
 0x1bb   : > { %1356 = vst.msk [vmem:[#allocation3 + $0x20] sm:$0xf] %vm1347_vm7, %v1268_v45  ;;  %v3984_v45 = vpack.c.bf16 %v1407_v36, %v1407_v36 }
 0x1bd   : > { %1504 = vrot.lane.b32.xlu1 %v3917_v8, %s3218_s16 }
 0x1bf   : > { %1508 = vrot.lane.b32.xlu0 %v3565_v10, %s3218_s16  ;;  %v1260_v40 = vpop.permute.xlu1 %1259  ;;  %1500 = vrot.lane.b32.xlu2 %v3921_v46, %s3218_s16  ;;  %v1400_v10 = vld [vmem:[#allocation2 + $0x10a] sm:$0xff] }
 0x1c0   : > { %1352 = vst.msk [vmem:[#allocation3 + $0x10] sm:$0xf] %vm1347_vm7, %v1260_v40  ;;  %v3943_v11 = vpack.c.bf16 %v1400_v10, %v1400_v10  ;;  %v1614_v10 = vld [vmem:[#allocation2 + $0x90] sm:$0xff] }
 0x1c1   : > { %v1264_v55 = vpop.permute.xlu0 %1263  ;;  %v1274_v59 = vpop.permute.xlu2 %1273 }
 0x1c2   : > { %1354 = vst.msk [vmem:[#allocation3 + $0x18] sm:$0xf] %vm1347_vm7, %v1264_v55  ;;  %v1639_v55 = vpack.c.bf16 %v1607_v56, %v1607_v56  ;;  %v1610_v56 = vld [vmem:[#allocation2 + $0x60] sm:$0xff] }
 0x1c3   : > { %1359 = vst.msk [vmem:[#allocation3 + $0x2c] sm:$0xf] %vm1347_vm7, %v1274_v59  ;;  %v1608_v59 = vld [vmem:[#allocation2 + $0x48] sm:$0xff] }
 0x1c4   : > { %v1640_v0 = vpack.c.bf16 %v1608_v59, %v1608_v59 }
 0x1c5   : > { %1510 = vrot.lane.b32.xlu1 %v3930_v58, %s3218_s16 }
 0x1c7   : > { %1514 = vrot.lane.b32.xlu0 %v3586_v31, %s3218_s16  ;;  %v1266_v50 = vpop.permute.xlu1 %1265  ;;  %1506 = vrot.lane.b32.xlu2 %v3934_v60, %s3218_s16  ;;  %v1403_v31 = vld [vmem:[#allocation2 + $0x12a] sm:$0xff] }
 0x1c8   : > { %1355 = vst.msk [vmem:[#allocation3 + $0x1c] sm:$0xf] %vm1347_vm7, %v1266_v50  ;;  %v3956_v37 = vpack.c.bf16 %v1403_v31, %v1403_v31  ;;  %v1609_v31 = vld [vmem:[#allocation2 + $0x50] sm:$0xff] }
 0x1c9   : > { %v1270_v7 = vpop.permute.xlu0 %1269  ;;  %v1280_v13 = vpop.permute.xlu2 %1279 }
 0x1ca   : > { %1357 = vst.msk [vmem:[#allocation3 + $0x24] sm:$0xf] %vm1347_vm7, %v1270_v7 }
 0x1cb   : > { %1362 = vst.msk [vmem:[#allocation3 + $0x38] sm:$0xf] %vm1347_vm7, %v1280_v13  ;;  %v1646_v13 = vpack.c.bf16 %v1614_v10, %v1614_v10 }
 0x1cd   : > { %1516 = vrot.lane.b32.xlu1 %v3943_v11, %s3218_s16 }
 0x1cf   : > { %1520 = vrot.lane.b32.xlu0 %v3607_v57, %s3218_s16  ;;  %v1272_v17 = vpop.permute.xlu1 %1271  ;;  %1512 = vrot.lane.b32.xlu2 %v3947_v16, %s3218_s16  ;;  %v1406_v57 = vld [vmem:[#allocation2 + $0x152] sm:$0xff] }
 0x1d0   : > { %1358 = vst.msk [vmem:[#allocation3 + $0x28] sm:$0xf] %vm1347_vm7, %v1272_v17  ;;  %v3969_v42 = vpack.c.bf16 %v1406_v57, %v1406_v57 }
 0x1d1   : > { %v1276_v33 = vpop.permute.xlu0 %1275  ;;  %v1286_v41 = vpop.permute.xlu2 %1285 }
 0x1d2   : > { %1360 = vst.msk [vmem:[#allocation3 + $0x30] sm:$0xf] %vm1347_vm7, %v1276_v33 }
 0x1d3   : > { %1365 = vst.msk [vmem:[#allocation3 + $0x44] sm:$0xf] %vm1347_vm7, %v1286_v41  ;;  %v1641_v41 = vpack.c.bf16 %v1609_v31, %v1609_v31 }
 0x1d5   : > { %1522 = vrot.lane.b32.xlu1 %v3956_v37, %s3218_s16 }
 0x1d7   : > { %1526 = vrot.lane.b32.xlu0 %v3628_v18, %s3218_s16  ;;  %v1278_v51 = vpop.permute.xlu1 %1277  ;;  %1518 = vrot.lane.b32.xlu2 %v3960_v38, %s3218_s16  ;;  %v1606_v18 = vld [vmem:[#allocation2 + $0x30] sm:$0xff] }
 0x1d8   : > { %1361 = vst.msk [vmem:[#allocation3 + $0x34] sm:$0xf] %vm1347_vm7, %v1278_v51  ;;  %v1638_v43 = vpack.c.bf16 %v1606_v18, %v1606_v18 }
 0x1d9   : > { %v1282_v21 = vpop.permute.xlu0 %1281  ;;  %v1292_v27 = vpop.permute.xlu2 %1291 }
 0x1da   : > { %1363 = vst.msk [vmem:[#allocation3 + $0x3c] sm:$0xf] %vm1347_vm7, %v1282_v21 }
 0x1db   : > { %1368 = vst.msk [vmem:[#allocation3 + $0x50] sm:$0xf] %vm1347_vm7, %v1292_v27  ;;  %v1622_v27 = vld [vmem:[#allocation2 + $0xf0] sm:$0xff] }
 0x1dc   : > { %v1654_v18 = vpack.c.bf16 %v1622_v27, %v1622_v27 }
 0x1dd   : > { %1528 = vrot.lane.b32.xlu1 %v3969_v42, %s3218_s16 }
 0x1df   : > { %1532 = vrot.lane.b32.xlu0 %v3645_v32, %s3218_s16  ;;  %v1284_v44 = vpop.permute.xlu1 %1283  ;;  %1524 = vrot.lane.b32.xlu2 %v3973_v15, %s3218_s16 }
 0x1e0   : > { %1364 = vst.msk [vmem:[#allocation3 + $0x40] sm:$0xf] %vm1347_vm7, %v1284_v44 }
 0x1e1   : > { %v1288_v52 = vpop.permute.xlu0 %1287  ;;  %v1298_v19 = vpop.permute.xlu2 %1297 }
 0x1e2   : > { %1366 = vst.msk [vmem:[#allocation3 + $0x48] sm:$0xf] %vm1347_vm7, %v1288_v52 }
 0x1e3   : > { %1371 = vst.msk [vmem:[#allocation3 + $0x5c] sm:$0xf] %vm1347_vm7, %v1298_v19 }
 0x1e5   : > { %1702 = vrot.lane.b32.xlu1 %v1638_v43, %s3219_s17 }
 0x1e7   : > { %1927 = vrot.lane.b32.xlu0 %v3761_v25, %s3220_s18  ;;  %v1290_v32 = vpop.permute.xlu1 %1289  ;;  %1530 = vrot.lane.b32.xlu2 %v3984_v45, %s3218_s16 }
 0x1e8   : > { %1367 = vst.msk [vmem:[#allocation3 + $0x4c] sm:$0xf] %vm1347_vm7, %v1290_v32 }
 0x1e9   : > { %v1294_v40 = vpop.permute.xlu0 %1293  ;;  %v1304_v28 = vpop.permute.xlu2 %1303 }
 0x1ea   : > { %1369 = vst.msk [vmem:[#allocation3 + $0x54] sm:$0xf] %vm1347_vm7, %v1294_v40  ;;  %v1616_v40 = vld [vmem:[#allocation2 + $0xa8] sm:$0xff] }
 0x1eb   : > { %1374 = vst.msk [vmem:[#allocation3 + $0x68] sm:$0xf] %vm1347_vm7, %v1304_v28 }
 0x1ed   : > { %1929 = vrot.lane.b32.xlu1 %v3747_v6, %s3220_s18  ;;  %v1615_v6 = vld [vmem:[#allocation2 + $0x98] sm:$0xff] }
 0x1ee   : > { %v1647_v22 = vpack.c.bf16 %v1615_v6, %v1615_v6 }
 0x1ef   : > { %2154 = vrot.lane.b32.xlu0 %v3882_v35, %s3221_s19  ;;  %v1296_v25 = vpop.permute.xlu1 %1295  ;;  %1704 = vrot.lane.b32.xlu2 %v1639_v55, %s3219_s17  ;;  %v1642_v55 = vpack.c.bf16 %v1610_v56, %v1610_v56 }
 0x1f0   : > { %1370 = vst.msk [vmem:[#allocation3 + $0x58] sm:$0xf] %vm1347_vm7, %v1296_v25  ;;  %v1648_v25 = vpack.c.bf16 %v1616_v40, %v1616_v40 }
 0x1f1   : > { %v1300_v50 = vpop.permute.xlu0 %1299  ;;  %v1310_v7 = vpop.permute.xlu2 %1309 }
 0x1f2   : > { %1372 = vst.msk [vmem:[#allocation3 + $0x60] sm:$0xf] %vm1347_vm7, %v1300_v50  ;;  %v1611_v50 = vld [vmem:[#allocation2 + $0x68] sm:$0xff] }
 0x1f3   : > { %1377 = vst.msk [vmem:[#allocation3 + $0x74] sm:$0xf] %vm1347_vm7, %v1310_v7  ;;  %v1643_v6 = vpack.c.bf16 %v1611_v50, %v1611_v50 }
 0x1f5   : > { %1706 = vrot.lane.b32.xlu1 %v1640_v0, %s3219_s17 }
 0x1f7   : > { %1718 = vrot.lane.b32.xlu0 %v1646_v13, %s3219_s17  ;;  %v1302_v35 = vpop.permute.xlu1 %1301  ;;  %2152 = vrot.lane.b32.xlu2 %v3866_v5, %s3221_s19 }
 0x1f8   : > { %1373 = vst.msk [vmem:[#allocation3 + $0x64] sm:$0xf] %vm1347_vm7, %v1302_v35 }
 0x1f9   : > { %v1306_v17 = vpop.permute.xlu0 %1305  ;;  %v1477_v33 = vpop.permute.xlu2 %1476 }
 0x1fa   : > { %1375 = vst.msk [vmem:[#allocation3 + $0x6c] sm:$0xf] %vm1347_vm7, %v1306_v17  ;;  %v2061_v17 = vld [vmem:[#allocation2 + $0x6a] sm:$0xff] }
 0x1fb   : > { %1573 = vst.msk [vmem:[#allocation3] sm:$0xf] %vm1572_vm8, %v1477_v33 }
 0x1fd   : > { %1720 = vrot.lane.b32.xlu1 %v1647_v22, %s3219_s17 }
 0x1ff   : > { %1933 = vrot.lane.b32.xlu0 %v3774_v53, %s3220_s18  ;;  %v1308_v57 = vpop.permute.xlu1 %1307  ;;  %1708 = vrot.lane.b32.xlu2 %v1641_v41, %s3219_s17  ;;  %v2093_v41 = vpack.c.bf16 %v2061_v17, %v2061_v17 }
 0x200   : > { %1376 = vst.msk [vmem:[#allocation3 + $0x70] sm:$0xf] %vm1347_vm7, %v1308_v57 }
 0x201   : > { %v1312_v5 = vpop.permute.xlu0 %1311  ;;  %v1483_v51 = vpop.permute.xlu2 %1482 }
 0x202   : > { %1378 = vst.msk [vmem:[#allocation3 + $0x78] sm:$0xf] %vm1347_vm7, %v1312_v5 }
 0x203   : > { %1576 = vst.msk [vmem:[#allocation3 + $0xc] sm:$0xf] %vm1572_vm8, %v1483_v51 }
 0x205   : > { %1943 = vrot.lane.b32.xlu1 %v3782_v14, %s3220_s18 }
 0x207   : > { %2156 = vrot.lane.b32.xlu0 %v3869_v9, %s3221_s19  ;;  %v1314_v12 = vpop.permute.xlu1 %1313  ;;  %1931 = vrot.lane.b32.xlu2 %v3755_v20, %s3220_s18  ;;  %v2064_v20 = vld [vmem:[#allocation2 + $0x92] sm:$0xff] }
 0x208   : > { %1379 = vst.msk [vmem:[#allocation3 + $0x7c] sm:$0xf] %vm1347_vm7, %v1314_v12  ;;  %v2096_v36 = vpack.c.bf16 %v2064_v20, %v2064_v20 }
 0x209   : > { %v1479_v53 = vpop.permute.xlu0 %1478  ;;  %v1489_v21 = vpop.permute.xlu2 %1488 }
 0x20a   : > { %1574 = vst.msk [vmem:[#allocation3 + $0x4] sm:$0xf] %vm1572_vm8, %v1479_v53 }
 0x20b   : > { %1579 = vst.msk [vmem:[#allocation3 + $0x18] sm:$0xf] %vm1572_vm8, %v1489_v21  ;;  %v1630_v21 = vld [vmem:[#allocation2 + $0x150] sm:$0xff] }
 0x20d   : > { %2158 = vrot.lane.b32.xlu1 %v3878_v26, %s3221_s19 }
 0x20f   : > { %2170 = vrot.lane.b32.xlu0 %v3904_v47, %s3221_s19  ;;  %v1481_v14 = vpop.permute.xlu1 %1480  ;;  %1945 = vrot.lane.b32.xlu2 %v3798_v23, %s3220_s18  ;;  %v2073_v23 = vld [vmem:[#allocation2 + $0xfa] sm:$0xff] }
 0x210   : > { %1575 = vst.msk [vmem:[#allocation3 + $0x8] sm:$0xf] %vm1572_vm8, %v1481_v14  ;;  %v1623_v47 = vld [vmem:[#allocation2 + $0xf8] sm:$0xff]  ;;  %v2105_v19 = vpack.c.bf16 %v2073_v23, %v2073_v23 }
 0x211   : > { %v1485_v9 = vpop.permute.xlu0 %1484  ;;  %v1495_v44 = vpop.permute.xlu2 %1494  ;;  %v1655_v32 = vpack.c.bf16 %v1623_v47, %v1623_v47 }
 0x212   : > { %1577 = vst.msk [vmem:[#allocation3 + $0x10] sm:$0xf] %vm1572_vm8, %v1485_v9  ;;  %v3054_v9 = vld [vmem:[%s4579_s1 + $0x8] sm:$0xff] }
 0x213   : > { %1582 = vst.msk [vmem:[#allocation3 + $0x24] sm:$0xf] %vm1572_vm8, %v1495_v44  ;;  %v3053_v44 = vld [vmem:[%s4579_s1] sm:$0xff] }
 0x215   : > { %1734 = vrot.lane.b32.xlu1 %v1654_v18, %s3219_s17  ;;  %v1662_v18 = vpack.c.bf16 %v1630_v21, %v1630_v21 }
 0x217   : > { %1959 = vrot.lane.b32.xlu0 %v3807_v48, %s3220_s18  ;;  %v1487_v26 = vpop.permute.xlu1 %1486  ;;  %2168 = vrot.lane.b32.xlu2 %v2096_v36, %s3221_s19 }
 0x218   : > { %1578 = vst.msk [vmem:[#allocation3 + $0x14] sm:$0xf] %vm1572_vm8, %v1487_v26  ;;  %v1625_v26 = vld [vmem:[#allocation2 + $0x110] sm:$0xff] }
 0x219   : > { %v1491_v52 = vpop.permute.xlu0 %1490  ;;  %v1501_v43 = vpop.permute.xlu2 %1500 }
 0x21a   : > { %1580 = vst.msk [vmem:[#allocation3 + $0x1c] sm:$0xf] %vm1572_vm8, %v1491_v52 }
 0x21b   : > { %1585 = vst.msk [vmem:[#allocation3 + $0x30] sm:$0xf] %vm1572_vm8, %v1501_v43  ;;  %v1657_v43 = vpack.c.bf16 %v1625_v26, %v1625_v26 }
 0x21d   : > { %1961 = vrot.lane.b32.xlu1 %v3818_v61, %s3220_s18  ;;  %v1617_v61 = vld [vmem:[#allocation2 + $0xb0] sm:$0xff] }
 0x21e   : > { %v1649_v7 = vpack.c.bf16 %v1617_v61, %v1617_v61 }
 0x21f   : > { %2186 = vrot.lane.b32.xlu0 %v2105_v19, %s3221_s19  ;;  %v1493_v48 = vpop.permute.xlu1 %1492  ;;  %1736 = vrot.lane.b32.xlu2 %v1655_v32, %s3219_s17 }
 0x220   : > { %1581 = vst.msk [vmem:[#allocation3 + $0x20] sm:$0xf] %vm1572_vm8, %v1493_v48 }
 0x221   : > { %v1497_v28 = vpop.permute.xlu0 %1496  ;;  %v1507_v59 = vpop.permute.xlu2 %1506 }
 0x222   : > { %1583 = vst.msk [vmem:[#allocation3 + $0x28] sm:$0xf] %vm1572_vm8, %v1497_v28 }
 0x223   : > { %1588 = vst.msk [vmem:[#allocation3 + $0x3c] sm:$0xf] %vm1572_vm8, %v1507_v59 }
 0x225   : > { %1710 = vrot.lane.b32.xlu1 %v1642_v55, %s3219_s17 }
 0x227   : > { %1722 = vrot.lane.b32.xlu0 %v1648_v25, %s3219_s17  ;;  %v1499_v10 = vpop.permute.xlu1 %1498  ;;  %2184 = vrot.lane.b32.xlu2 %v3947_v16, %s3221_s19 }
 0x228   : > { %1584 = vst.msk [vmem:[#allocation3 + $0x2c] sm:$0xf] %vm1572_vm8, %v1499_v10 }
 0x229   : > { %v1503_v0 = vpop.permute.xlu0 %1502  ;;  %v1513_v13 = vpop.permute.xlu2 %1512 }
 0x22a   : > { %1586 = vst.msk [vmem:[#allocation3 + $0x34] sm:$0xf] %vm1572_vm8, %v1503_v0 }
 0x22b   : > { %1591 = vst.msk [vmem:[#allocation3 + $0x48] sm:$0xf] %vm1572_vm8, %v1513_v13 }
 0x22d   : > { %1724 = vrot.lane.b32.xlu1 %v1649_v7, %s3219_s17 }
 0x22f   : > { %1937 = vrot.lane.b32.xlu0 %v3770_v39, %s3220_s18  ;;  %v1505_v35 = vpop.permute.xlu1 %1504  ;;  %1712 = vrot.lane.b32.xlu2 %v1643_v6, %s3219_s17  ;;  %v2067_v39 = vld [vmem:[#allocation2 + $0xb2] sm:$0xff] }
 0x230   : > { %1587 = vst.msk [vmem:[#allocation3 + $0x38] sm:$0xf] %vm1572_vm8, %v1505_v35  ;;  %v2099_v5 = vpack.c.bf16 %v2067_v39, %v2067_v39  ;;  %v1837_v6 = vld [vmem:[#allocation2 + $0x79] sm:$0xff] }
 0x231   : > { %v1509_v16 = vpop.permute.xlu0 %1508  ;;  %v1519_v31 = vpop.permute.xlu2 %1518 }
 0x232   : > { %1589 = vst.msk [vmem:[#allocation3 + $0x40] sm:$0xf] %vm1572_vm8, %v1509_v16 }
 0x233   : > { %1594 = vst.msk [vmem:[#allocation3 + $0x54] sm:$0xf] %vm1572_vm8, %v1519_v31  ;;  %v1869_v31 = vpack.c.bf16 %v1837_v6, %v1837_v6 }
 0x235   : > { %1947 = vrot.lane.b32.xlu1 %v3785_v30, %s3220_s18  ;;  %v2317_v30 = vld [vmem:[%s4579_s1 + $0x10] sm:$0x3] }
 0x237   : > { %2160 = vrot.lane.b32.xlu0 %v3895_v2, %s3221_s19  ;;  %v1511_v22 = vpop.permute.xlu1 %1510  ;;  %1935 = vrot.lane.b32.xlu2 %v3758_v24, %s3220_s18  ;;  %v2407_v2 = vunpack.c.l.b16 %v2317_v30  ;;  %v1624_v24 = vld [vmem:[#allocation2 + $0x108] sm:$0xff] }
 0x238   : > { %1590 = vst.msk [vmem:[#allocation3 + $0x44] sm:$0xf] %vm1572_vm8, %v1511_v22  ;;  %v1656_v14 = vpack.c.bf16 %v1624_v24, %v1624_v24  ;;  %v1844_v22 = vld [vmem:[#allocation2 + $0xc9] sm:$0xff] }
 0x239   : > { %v1515_v33 = vpop.permute.xlu0 %1514  ;;  %v1525_v57 = vpop.permute.xlu2 %1524  ;;  %v2410_v51 = vpack.c.b16 %v2407_v2, %v2407_v2  ;;  %v1633_v24 = vld [vmem:[#allocation2 + $0x170] sm:$0xff] }
 0x23a   : > { %1592 = vst.msk [vmem:[#allocation3 + $0x4c] sm:$0xf] %vm1572_vm8, %v1515_v33 }
 0x23b   : > { %1597 = vst.msk [vmem:[#allocation3 + $0x60] sm:$0xf] %vm1572_vm8, %v1525_v57  ;;  %v2464_v53 = vsel %vm2462_vm9, %v2410_v51, 0  ;;  %v1632_v57 = vld [vmem:[#allocation2 + $0x168] sm:$0xff] }
 0x23c   : > { %2471 = vmatpush.bf16.msra.mxu0 %v2464_v53  ;;  %3055 = vmatpush.bf16.msra.mxu1 %v2464_v53  ;;  %v1664_v51 = vpack.c.bf16 %v1632_v57, %v1632_v57 }
 0x23d   : > { %2162 = vrot.lane.b32.xlu1 %v2093_v41, %s3221_s19  ;;  %3056 = vmatpush.bf16.msra.mxu2 %v2464_v53  ;;  %v1876_v41 = vpack.c.bf16 %v1844_v22, %v1844_v22  ;;  %v1853_v22 = vld [vmem:[#allocation2 + $0x139] sm:$0xff] }
 0x23e   : > { %3057 = vmatpush.bf16.msra.mxu3 %v2464_v53  ;;  %v1885_v57 = vpack.c.bf16 %v1853_v22, %v1853_v22 }
 0x23f   : > { %2174 = vrot.lane.b32.xlu0 %v2099_v5, %s3221_s19  ;;  %v1517_v12 = vpop.permute.xlu1 %1516  ;;  %1949 = vrot.lane.b32.xlu2 %v3794_v4, %s3220_s18  ;;  %v1631_v4 = vld [vmem:[#allocation2 + $0x158] sm:$0xff] }
 0x240   : > { %1593 = vst.msk [vmem:[#allocation3 + $0x50] sm:$0xf] %vm1572_vm8, %v1517_v12  ;;  %2472 = vmatpush.bf16.msra.mxu0 %v3054_v9  ;;  %3058 = vmatpush.bf16.msra.mxu1 %v3054_v9  ;;  %v1663_v47 = vpack.c.bf16 %v1631_v4, %v1631_v4  ;;  %v1851_v4 = vld [vmem:[#allocation2 + $0x121] sm:$0xff] }
 0x241   : > { %v1521_v27 = vpop.permute.xlu0 %1520  ;;  %v1531_v20 = vpop.permute.xlu2 %1530  ;;  %3059 = vmatpush.bf16.msra.mxu2 %v3054_v9 }
 0x242   : > { %1595 = vst.msk [vmem:[#allocation3 + $0x58] sm:$0xf] %vm1572_vm8, %v1521_v27  ;;  %3060 = vmatpush.bf16.msra.mxu3 %v3054_v9  ;;  %v1665_v27 = vpack.c.bf16 %v1633_v24, %v1633_v24  ;;  %v1635_v24 = vld [vmem:[#allocation2 + $0x188] sm:$0xff] }
 0x243   : > { %1600 = vst.msk [vmem:[#allocation3 + $0x6c] sm:$0xf] %vm1572_vm8, %v1531_v20 }
 0x244   : > { %2473 = vmatpush.bf16.msra.mxu0 %v3053_v44  ;;  %3061 = vmatpush.bf16.msra.mxu1 %v3053_v44 }
 0x245   : > { %1738 = vrot.lane.b32.xlu1 %v1656_v14, %s3219_s17  ;;  %3062 = vmatpush.bf16.msra.mxu2 %v3053_v44 }
 0x246   : > { %3063 = vmatpush.bf16.msra.mxu3 %v3053_v44 }
 0x247   : > { %1750 = vrot.lane.b32.xlu0 %v1662_v18, %s3219_s17  ;;  %v1523_v36 = vpop.permute.xlu1 %1522  ;;  %2172 = vrot.lane.b32.xlu2 %v3921_v46, %s3221_s19  ;;  %v2076_v18 = vld [vmem:[#allocation2 + $0x122] sm:$0xff] }
 0x248   : > { %1596 = vst.msk [vmem:[#allocation3 + $0x5c] sm:$0xf] %vm1572_vm8, %v1523_v36 }
 0x249   : > { %v1527_v23 = vpop.permute.xlu0 %1526  ;;  %v1705_v52 = vpop.permute.xlu2 %1704 }
 0x24a   : > { %1598 = vst.msk [vmem:[#allocation3 + $0x64] sm:$0xf] %vm1572_vm8, %v1527_v23  ;;  %v2108_v23 = vpack.c.bf16 %v2076_v18, %v2076_v18 }
 0x24b   : > { %1800 = vst.msk [vmem:[#allocation3 + $0x4] sm:$0xf] %vm1798_vm10, %v1705_v52 }
 0x24d   : > { %1752 = vrot.lane.b32.xlu1 %v1663_v47, %s3219_s17  ;;  %v1883_v47 = vpack.c.bf16 %v1851_v4, %v1851_v4 }
 0x24f   : > { %1965 = vrot.lane.b32.xlu0 %v3821_v3, %s3220_s18  ;;  %v1529_v46 = vpop.permute.xlu1 %1528  ;;  %1740 = vrot.lane.b32.xlu2 %v1657_v43, %s3219_s17  ;;  %v1858_v43 = vld [vmem:[#allocation2 + $0x171] sm:$0xff] }
 0x250   : > { %1599 = vst.msk [vmem:[#allocation3 + $0x68] sm:$0xf] %vm1572_vm8, %v1529_v46 }
 0x251   : > { %v1533_v19 = vpop.permute.xlu0 %1532  ;;  %v2153_v32 = vpop.permute.xlu2 %2152 }
 0x252   : > { %1601 = vst.msk [vmem:[#allocation3 + $0x70] sm:$0xf] %vm1572_vm8, %v1533_v19 }
 0x255   : > { %1975 = vrot.lane.b32.xlu1 %v3853_v62, %s3220_s18  ;;  %v1612_v62 = vld [vmem:[#allocation2 + $0x78] sm:$0xff] }
 0x256   : > { %v1644_v28 = vpack.c.bf16 %v1612_v62, %v1612_v62 }
 0x257   : > { %2188 = vrot.lane.b32.xlu0 %v3943_v11, %s3221_s19  ;;  %v1703_v56 = vpop.permute.xlu1 %1702  ;;  %1963 = vrot.lane.b32.xlu2 %v3832_v29, %s3220_s18  ;;  %v1618_v29 = vld [vmem:[#allocation2 + $0xc0] sm:$0xff] }
 0x258   : > { %1799 = vst.msk [vmem:[#allocation3] sm:$0xf] %vm1798_vm10, %v1703_v56  ;;  %v1650_v59 = vpack.c.bf16 %v1618_v29, %v1618_v29  ;;  %v2082_v29 = vld [vmem:[#allocation2 + $0x16a] sm:$0xff] }
 0x259   : > { %v1928_v3 = vpop.permute.xlu0 %1927  ;;  %v1709_v48 = vpop.permute.xlu2 %1708 }
 0x25a   : > { %2024 = vst.msk [vmem:[#allocation3] sm:$0xf] %vm2023_vm11, %v1928_v3  ;;  %v1890_v3 = vpack.c.bf16 %v1858_v43, %v1858_v43  ;;  %v1636_v43 = vld [vmem:[#allocation2 + $0x198] sm:$0xff] }
 0x25b   : > { %2249 = vst.msk [vmem:[#allocation3] sm:$0xf] %vm2248_vm12, %v2153_v32 }
 0x25c   : > { %1802 = vst.msk [vmem:[#allocation3 + $0xc] sm:$0xf] %vm1798_vm10, %v1709_v48  ;;  %v1620_v48 = vld [vmem:[#allocation2 + $0xd8] sm:$0xff] }
 0x25d   : > { %2190 = vrot.lane.b32.xlu1 %v3960_v38, %s3221_s19  ;;  %v1619_v38 = vld [vmem:[#allocation2 + $0xc8] sm:$0xff] }
 0x25e   : > { %v1651_v50 = vpack.c.bf16 %v1619_v38, %v1619_v38  ;;  %v2114_v38 = vpack.c.bf16 %v2082_v29, %v2082_v29 }
 0x25f   : > { %2202 = vrot.lane.b32.xlu0 %v3984_v45, %s3221_s19  ;;  %v1930_v11 = vpop.permute.xlu1 %1929  ;;  %1977 = vrot.lane.b32.xlu2 %v3840_v1, %s3220_s18  ;;  %v1838_v1 = vld [vmem:[#allocation2 + $0x81] sm:$0xff] }
 0x260   : > { %2025 = vst.msk [vmem:[#allocation3 + $0x4] sm:$0xf] %vm2023_vm11, %v1930_v11  ;;  %v1613_v45 = vld [vmem:[#allocation2 + $0x80] sm:$0xff]  ;;  %v1870_v7 = vpack.c.bf16 %v1838_v1, %v1838_v1 }
 0x261   : > { %v2155_v40 = vpop.permute.xlu0 %2154  ;;  %v1932_v55 = vpop.permute.xlu2 %1931  ;;  %v1645_v13 = vpack.c.bf16 %v1613_v45, %v1613_v45  ;;  %v1845_v11 = vld [vmem:[#allocation2 + $0xd9] sm:$0xff] }
 0x262   : > { %2250 = vst.msk [vmem:[#allocation3 + $0x4] sm:$0xf] %vm2248_vm12, %v2155_v40  ;;  %v1621_v1 = vld [vmem:[#allocation2 + $0xe0] sm:$0xff] }
 0x265   : > { %1714 = vrot.lane.b32.xlu1 %v1644_v28, %s3219_s17  ;;  %v1652_v28 = vpack.c.bf16 %v1620_v48, %v1620_v48 }
 0x267   : > { %1726 = vrot.lane.b32.xlu0 %v1650_v59, %s3219_s17  ;;  %v1707_v25 = vpop.permute.xlu1 %1706  ;;  %2200 = vrot.lane.b32.xlu2 %v3969_v42, %s3221_s19  ;;  %v1877_v59 = vpack.c.bf16 %v1845_v11, %v1845_v11  ;;  %v1862_v11 = vld [vmem:[#allocation2 + $0x1a1] sm:$0xff] }
 0x268   : > { %1801 = vst.msk [vmem:[#allocation3 + $0x8] sm:$0xf] %vm1798_vm10, %v1707_v25 }
 0x269   : > { %v1719_v61 = vpop.permute.xlu0 %1718  ;;  %v3037_v10 = vld [vmem:[#allocation3] sm:$0xff]  ;;  %2026 = vst.msk [vmem:[#allocation3 + $0x8] sm:$0xf] %vm2023_vm11, %v1932_v55  ;;  %v1946_v0 = vpop.permute.xlu2 %1945 }
 0x26a   : > { %1807 = vst.msk [vmem:[#allocation3 + $0x20] sm:$0xf] %vm1798_vm10, %v1719_v61  ;;  %3017 = vmatmul.msk.bf16.vlgmr.msra.gmra.mxu0 %vm2413_vm13, %v3037_v10 }
 0x26d   : > { %1728 = vrot.lane.b32.xlu1 %v1651_v50, %s3219_s17  ;;  %v1653_v50 = vpack.c.bf16 %v1621_v1, %v1621_v1 }
 0x26f   : > { %1941 = vrot.lane.b32.xlu0 %v1870_v7, %s3220_s18  ;;  %v1721_v42 = vpop.permute.xlu1 %1720  ;;  %1716 = vrot.lane.b32.xlu2 %v1645_v13, %s3219_s17  ;;  %v1629_v7 = vld [vmem:[#allocation2 + $0x140] sm:$0xff] }
 0x270   : > { %1808 = vst.msk [vmem:[#allocation3 + $0x24] sm:$0xf] %vm1798_vm10, %v1721_v42  ;;  %v2070_v13 = vld [vmem:[#allocation2 + $0xda] sm:$0xff] }
 0x271   : > { %v1934_v35 = vpop.permute.xlu0 %1933  ;;  %2033 = vst.msk [vmem:[#allocation3 + $0x24] sm:$0xf] %vm2023_vm11, %v1946_v0  ;;  %v2169_v16 = vpop.permute.xlu2 %2168 }
 0x272   : > { %2027 = vst.msk [vmem:[#allocation3 + $0xc] sm:$0xf] %vm2023_vm11, %v1934_v35  ;;  %v1661_v35 = vpack.c.bf16 %v1629_v7, %v1629_v7 }
 0x275   : > { %1951 = vrot.lane.b32.xlu1 %v3810_v49, %s3220_s18  ;;  %v1626_v49 = vld [vmem:[#allocation2 + $0x120] sm:$0xff] }
 0x276   : > { %v1658_v5 = vpack.c.bf16 %v1626_v49, %v1626_v49 }
 0x277   : > { %2164 = vrot.lane.b32.xlu0 %v3891_v63, %s3221_s19  ;;  %v1944_v17 = vpop.permute.xlu1 %1943  ;;  %1939 = vrot.lane.b32.xlu2 %v1869_v31, %s3220_s18  ;;  %v1634_v31 = vld [vmem:[#allocation2 + $0x180] sm:$0xff] }
 0x278   : > { %2032 = vst.msk [vmem:[#allocation3 + $0x20] sm:$0xf] %vm2023_vm11, %v1944_v17  ;;  %v1666_v49 = vpack.c.bf16 %v1634_v31, %v1634_v31 }
 0x279   : > { %v2157_v39 = vpop.permute.xlu0 %2156  ;;  %2257 = vst.msk [vmem:[#allocation3 + $0x20] sm:$0xf] %vm2248_vm12, %v2169_v16  ;;  %v1737_v33 = vpop.permute.xlu2 %1736  ;;  %v2102_v16 = vpack.c.bf16 %v2070_v13, %v2070_v13 }
 0x27a   : > { %2251 = vst.msk [vmem:[#allocation3 + $0x8] sm:$0xf] %vm2248_vm12, %v2157_v39  ;;  %v1628_v39 = vld [vmem:[#allocation2 + $0x138] sm:$0xff] }
 0x27b   : > { %1816 = vst.msk [vmem:[#allocation3 + $0x44] sm:$0xf] %vm1798_vm10, %v1737_v33 }
 0x27d   : > { %2166 = vrot.lane.b32.xlu1 %v3908_v34, %s3221_s19 }
 0x27f   : > { %2178 = vrot.lane.b32.xlu0 %v3934_v60, %s3221_s19  ;;  %v2159_v63 = vpop.permute.xlu1 %2158  ;;  %1953 = vrot.lane.b32.xlu2 %v1876_v41, %s3220_s18  ;;  %v1627_v60 = vld [vmem:[#allocation2 + $0x128] sm:$0xff] }
 0x280   : > { %2252 = vst.msk [vmem:[#allocation3 + $0xc] sm:$0xf] %vm2248_vm12, %v2159_v63  ;;  %v1659_v20 = vpack.c.bf16 %v1627_v60, %v1627_v60 }
 0x281   : > { %v2171_v30 = vpop.permute.xlu0 %2170  ;;  %v2185_v2 = vpop.permute.xlu2 %2184 }
 0x282   : > { %2258 = vst.msk [vmem:[#allocation3 + $0x24] sm:$0xf] %vm2248_vm12, %v2171_v30  ;;  %v1660_v30 = vpack.c.bf16 %v1628_v39, %v1628_v39 }
 0x285   : > { %1742 = vrot.lane.b32.xlu1 %v1658_v5, %s3219_s17  ;;  %v1854_v5 = vld [vmem:[#allocation2 + $0x141] sm:$0xff] }
 0x287   : > { %1754 = vrot.lane.b32.xlu0 %v1664_v51, %s3219_s17  ;;  %v1735_v34 = vpop.permute.xlu1 %1734  ;;  %v3038_v12 = vld [vmem:[#allocation3 + $0x8] sm:$0xff]  ;;  %2176 = vrot.lane.b32.xlu2 %v3917_v8, %s3221_s19  ;;  %v1857_v8 = vld [vmem:[#allocation2 + $0x169] sm:$0xff] }
 0x288   : > { %1815 = vst.msk [vmem:[#allocation3 + $0x40] sm:$0xf] %vm1798_vm10, %v1735_v34  ;;  %3018 = vmatmul.msk.bf16.gmra.mxu0 %vm2413_vm13, %v3038_v12  ;;  %v1889_v36 = vpack.c.bf16 %v1857_v8, %v1857_v8  ;;  %v1860_v51 = vld [vmem:[#allocation2 + $0x189] sm:$0xff]  ;;  %v1886_v12 = vpack.c.bf16 %v1854_v5, %v1854_v5 }
 0x289   : > { %v1960_v53 = vpop.permute.xlu0 %1959  ;;  %v3041_v21 = vld [vmem:[#allocation3 + $0x20] sm:$0xff]  ;;  %v1713_v14 = vpop.permute.xlu2 %1712 }
 0x28a   : > { %2040 = vst.msk [vmem:[#allocation3 + $0x40] sm:$0xf] %vm2023_vm11, %v1960_v53  ;;  %3021 = vmatmul.msk.bf16.vlgmr.msra.gmra.mxu1 %vm2413_vm13, %v3041_v21  ;;  %v1892_v53 = vpack.c.bf16 %v1860_v51, %v1860_v51  ;;  %v1667_v21 = vpack.c.bf16 %v1635_v24, %v1635_v24 }
 0x28b   : > { %2265 = vst.msk [vmem:[#allocation3 + $0x40] sm:$0xf] %vm2248_vm12, %v2185_v2 }
 0x28c   : > { %1804 = vst.msk [vmem:[#allocation3 + $0x14] sm:$0xf] %vm1798_vm10, %v1713_v14  ;;  %v2084_v14 = vld [vmem:[#allocation2 + $0x182] sm:$0xff] }
 0x28d   : > { %1756 = vrot.lane.b32.xlu1 %v1665_v27, %s3219_s17  ;;  %v2116_v18 = vpack.c.bf16 %v2084_v14, %v2084_v14 }
 0x28f   : > { %1969 = vrot.lane.b32.xlu0 %v3843_v54, %s3220_s18  ;;  %v1962_v9 = vpop.permute.xlu1 %1961  ;;  %1744 = vrot.lane.b32.xlu2 %v1659_v20, %s3219_s17  ;;  %v2083_v54 = vld [vmem:[#allocation2 + $0x172] sm:$0xff]  ;;  %v1859_v20 = vld [vmem:[#allocation2 + $0x181] sm:$0xff] }
 0x290   : > { %2041 = vst.msk [vmem:[#allocation3 + $0x44] sm:$0xf] %vm2023_vm11, %v1962_v9  ;;  %v2115_v56 = vpack.c.bf16 %v2083_v54, %v2083_v54  ;;  %v1891_v4 = vpack.c.bf16 %v1859_v20, %v1859_v20 }
 0x291   : > { %v2187_v44 = vpop.permute.xlu0 %2186  ;;  %v1936_v26 = vpop.permute.xlu2 %1935 }
 0x292   : > { %2266 = vst.msk [vmem:[#allocation3 + $0x44] sm:$0xf] %vm2248_vm12, %v2187_v44  ;;  %v2085_v44 = vld [vmem:[#allocation2 + $0x18a] sm:$0xff] }
 0x295   : > { %1979 = vrot.lane.b32.xlu1 %v1889_v36, %s3220_s18 }
 0x297   : > { %2192 = vrot.lane.b32.xlu0 %v2108_v23, %s3221_s19  ;;  %v1711_v52 = vpop.permute.xlu1 %1710  ;;  %1967 = vrot.lane.b32.xlu2 %v1883_v47, %s3220_s18  ;;  %v2117_v47 = vpack.c.bf16 %v2085_v44, %v2085_v44 }
 0x298   : > { %1803 = vst.msk [vmem:[#allocation3 + $0x10] sm:$0xf] %vm1798_vm10, %v1711_v52 }
 0x299   : > { %v1723_v46 = vpop.permute.xlu0 %1722  ;;  %v3045_v19 = vld [vmem:[#allocation3 + $0x40] sm:$0xff]  ;;  %2028 = vst.msk [vmem:[#allocation3 + $0x10] sm:$0xf] %vm2023_vm11, %v1936_v26  ;;  %v1950_v32 = vpop.permute.xlu2 %1949  ;;  %v2079_v26 = vld [vmem:[#allocation2 + $0x142] sm:$0xff] }
 0x29a   : > { %1809 = vst.msk [vmem:[#allocation3 + $0x28] sm:$0xf] %vm1798_vm10, %v1723_v46  ;;  %3025 = vmatmul.msk.bf16.vlgmr.msra.gmra.mxu2 %vm2413_vm13, %v3045_v19  ;;  %v2111_v54 = vpack.c.bf16 %v2079_v26, %v2079_v26  ;;  %v1861_v19 = vld [vmem:[#allocation2 + $0x199] sm:$0xff] }
 0x29d   : > { %2194 = vrot.lane.b32.xlu1 %v3956_v37, %s3221_s19  ;;  %v1846_v37 = vld [vmem:[#allocation2 + $0xe1] sm:$0xff] }
 0x29e   : > { %v1878_v61 = vpack.c.bf16 %v1846_v37, %v1846_v37 }
 0x29f   : > { %2206 = vrot.lane.b32.xlu0 %v2115_v56, %s3221_s19  ;;  %v1725_v62 = vpop.permute.xlu1 %1724  ;;  %1981 = vrot.lane.b32.xlu2 %v1890_v3, %s3220_s18  ;;  %v1668_v3 = vpack.c.bf16 %v1636_v43, %v1636_v43 }
 0x2a0   : > { %1810 = vst.msk [vmem:[#allocation3 + $0x2c] sm:$0xf] %vm1798_vm10, %v1725_v62  ;;  %v1893_v62 = vpack.c.bf16 %v1861_v19, %v1861_v19 }
 0x2a1   : > { %v1938_v40 = vpop.permute.xlu0 %1937  ;;  %2035 = vst.msk [vmem:[#allocation3 + $0x2c] sm:$0xf] %vm2023_vm11, %v1950_v32  ;;  %v2173_v55 = vpop.permute.xlu2 %2172 }
 0x2a2   : > { %2029 = vst.msk [vmem:[#allocation3 + $0x14] sm:$0xf] %vm2023_vm11, %v1938_v40  ;;  %v2087_v40 = vld [vmem:[#allocation2 + $0x1a2] sm:$0xff] }
 0x2a3   : > { %v2119_v37 = vpack.c.bf16 %v2087_v40, %v2087_v40 }
 0x2a5   : > { %1730 = vrot.lane.b32.xlu1 %v1652_v28, %s3219_s17  ;;  %v1637_v28 = vld [vmem:[#allocation2 + $0x1a0] sm:$0xff] }
 0x2a7   : > { %1955 = vrot.lane.b32.xlu0 %v1877_v59, %s3220_s18  ;;  %v1948_v25 = vpop.permute.xlu1 %1947  ;;  %2204 = vrot.lane.b32.xlu2 %v2114_v38, %s3221_s19  ;;  %v1894_v59 = vpack.c.bf16 %v1862_v11, %v1862_v11 }
 0x2a8   : > { %2034 = vst.msk [vmem:[#allocation3 + $0x28] sm:$0xf] %vm2023_vm11, %v1948_v25  ;;  %v1669_v25 = vpack.c.bf16 %v1637_v28, %v1637_v28 }
 0x2a9   : > { %v2161_v45 = vpop.permute.xlu0 %2160  ;;  %2259 = vst.msk [vmem:[#allocation3 + $0x28] sm:$0xf] %vm2248_vm12, %v2173_v55  ;;  %v1741_v10 = vpop.permute.xlu2 %1740 }
 0x2aa   : > { %2253 = vst.msk [vmem:[#allocation3 + $0x10] sm:$0xf] %vm2248_vm12, %v2161_v45 }
 0x2ab   : > { %1818 = vst.msk [vmem:[#allocation3 + $0x4c] sm:$0xf] %vm1798_vm10, %v1741_v10 }
 0x2ad   : > { %1957 = vrot.lane.b32.xlu1 %v1878_v61, %s3220_s18  ;;  %v2086_v61 = vld [vmem:[#allocation2 + $0x19a] sm:$0xff] }
 0x2ae   : > { %v2118_v7 = vpack.c.bf16 %v2086_v61, %v2086_v61 }
 0x2af   : > { %2182 = vrot.lane.b32.xlu0 %v3930_v58, %s3221_s19  ;;  %v2163_v0 = vpop.permute.xlu1 %2162  ;;  %1732 = vrot.lane.b32.xlu2 %v1653_v50, %s3219_s17 }
 0x2b0   : > { %2254 = vst.msk [vmem:[#allocation3 + $0x14] sm:$0xf] %vm2248_vm12, %v2163_v0 }
 0x2b1   : > { %v2175_v42 = vpop.permute.xlu0 %2174  ;;  %v1964_v6 = vpop.permute.xlu2 %1963 }
 0x2b2   : > { %2260 = vst.msk [vmem:[#allocation3 + $0x2c] sm:$0xf] %vm2248_vm12, %v2175_v42 }
 0x2b5   : > { %1534 = vrot.lane.b32.xlu1 %v2115_v56, %s3218_s16 }
 0x2b7   : > { %1748 = vrot.lane.b32.xlu0 %v1661_v35, %s3219_s17  ;;  %v1739_v17 = vpop.permute.xlu1 %1738  ;;  %v3039_v58 = vld [vmem:[#allocation3 + $0x10] sm:$0xff]  ;;  %2180 = vrot.lane.b32.xlu2 %v2102_v16, %s3221_s19 }
 0x2b8   : > { %1817 = vst.msk [vmem:[#allocation3 + $0x48] sm:$0xf] %vm1798_vm10, %v1739_v17  ;;  %3019 = vmatmul.msk.bf16.gmra.mxu0 %vm2413_vm13, %v3039_v58 }
 0x2b9   : > { %v1751_v33 = vpop.permute.xlu0 %1750  ;;  %v3042_v41 = vld [vmem:[#allocation3 + $0x28] sm:$0xff]  ;;  %2042 = vst.msk [vmem:[#allocation3 + $0x48] sm:$0xf] %vm2023_vm11, %v1964_v6  ;;  %v1978_v63 = vpop.permute.xlu2 %1977 }
 0x2ba   : > { %1823 = vst.msk [vmem:[#allocation3 + $0x60] sm:$0xf] %vm1798_vm10, %v1751_v33  ;;  %3022 = vmatmul.msk.bf16.gmra.mxu1 %vm2413_vm13, %v3042_v41 }
 0x2bd   : > { %1758 = vrot.lane.b32.xlu1 %v1666_v49, %s3219_s17 }
 0x2bf   : > { %1971 = vrot.lane.b32.xlu0 %v1885_v57, %s3220_s18  ;;  %v1753_v2 = vpop.permute.xlu1 %1752  ;;  %1746 = vrot.lane.b32.xlu2 %v1660_v30, %s3219_s17 }
 0x2c0   : > { %1824 = vst.msk [vmem:[#allocation3 + $0x64] sm:$0xf] %vm1798_vm10, %v1753_v2 }
 0x2c1   : > { %v1966_v34 = vpop.permute.xlu0 %1965  ;;  %2049 = vst.msk [vmem:[#allocation3 + $0x64] sm:$0xf] %vm2023_vm11, %v1978_v63  ;;  %v2201_v60 = vpop.permute.xlu2 %2200 }
 0x2c2   : > { %2043 = vst.msk [vmem:[#allocation3 + $0x4c] sm:$0xf] %vm2023_vm11, %v1966_v34 }
 0x2c5   : > { %1973 = vrot.lane.b32.xlu1 %v1886_v12, %s3220_s18 }
 0x2c7   : > { %1985 = vrot.lane.b32.xlu0 %v1892_v53, %s3220_s18  ;;  %v1976_v27 = vpop.permute.xlu1 %1975  ;;  %1760 = vrot.lane.b32.xlu2 %v1667_v21, %s3219_s17 }
 0x2c8   : > { %2048 = vst.msk [vmem:[#allocation3 + $0x60] sm:$0xf] %vm2023_vm11, %v1976_v27 }
 0x2c9   : > { %v2189_v8 = vpop.permute.xlu0 %2188  ;;  %2273 = vst.msk [vmem:[#allocation3 + $0x60] sm:$0xf] %vm2248_vm12, %v2201_v60  ;;  %v1717_v9 = vpop.permute.xlu2 %1716 }
 0x2ca   : > { %2267 = vst.msk [vmem:[#allocation3 + $0x48] sm:$0xf] %vm2248_vm12, %v2189_v8 }
 0x2cb   : > { %1806 = vst.msk [vmem:[#allocation3 + $0x1c] sm:$0xf] %vm1798_vm10, %v1717_v9 }
 0x2cd   : > { %2196 = vrot.lane.b32.xlu1 %v3973_v15, %s3221_s19 }
 0x2cf   : > { %2208 = vrot.lane.b32.xlu0 %v2116_v18, %s3221_s19  ;;  %v2191_v36 = vpop.permute.xlu1 %2190  ;;  %1983 = vrot.lane.b32.xlu2 %v1891_v4, %s3220_s18 }
 0x2d0   : > { %2268 = vst.msk [vmem:[#allocation3 + $0x4c] sm:$0xf] %vm2248_vm12, %v2191_v36 }
 0x2d1   : > { %v2203_v23 = vpop.permute.xlu0 %2202  ;;  %v1940_v52 = vpop.permute.xlu2 %1939 }
 0x2d2   : > { %2274 = vst.msk [vmem:[#allocation3 + $0x64] sm:$0xf] %vm2248_vm12, %v2203_v23 }
 0x2d5   : > { %2210 = vrot.lane.b32.xlu1 %v2117_v47, %s3221_s19 }
 0x2d7   : > { %1538 = vrot.lane.b32.xlu0 %v2117_v47, %s3218_s16  ;;  %v1715_v15 = vpop.permute.xlu1 %1714  ;;  %v3046_v46 = vld [vmem:[#allocation3 + $0x48] sm:$0xff]  ;;  %2198 = vrot.lane.b32.xlu2 %v2111_v54, %s3221_s19 }
 0x2d8   : > { %1805 = vst.msk [vmem:[#allocation3 + $0x18] sm:$0xf] %vm1798_vm10, %v1715_v15  ;;  %3026 = vmatmul.msk.bf16.gmra.mxu2 %vm2413_vm13, %v3046_v46 }
 0x2d9   : > { %v1727_v32 = vpop.permute.xlu0 %1726  ;;  %v3049_v56 = vld [vmem:[#allocation3 + $0x60] sm:$0xff]  ;;  %2030 = vst.msk [vmem:[#allocation3 + $0x18] sm:$0xf] %vm2023_vm11, %v1940_v52  ;;  %v1954_v48 = vpop.permute.xlu2 %1953 }
 0x2da   : > { %1811 = vst.msk [vmem:[#allocation3 + $0x30] sm:$0xf] %vm1798_vm10, %v1727_v32  ;;  %3029 = vmatmul.msk.bf16.vlgmr.msra.gmra.mxu3 %vm2413_vm13, %v3049_v56 }
 0x2dd   : > { %1762 = vrot.lane.b32.xlu1 %v1668_v3, %s3219_s17 }
 0x2df   : > { %1987 = vrot.lane.b32.xlu0 %v1893_v62, %s3220_s18  ;;  %v1729_v29 = vpop.permute.xlu1 %1728  ;;  %1536 = vrot.lane.b32.xlu2 %v2116_v18, %s3218_s16  ;;  %s2812_s16 = scalar_lea.hbm %s4583_s5, %s3278_s23 }
 0x2e0   : > { %1812 = vst.msk [vmem:[#allocation3 + $0x34] sm:$0xf] %vm1798_vm10, %v1729_v29  ;;  %s4520_s26 = sshll.u32 %s2812_s16, 4  ;;  %s2817_s26 = int_to_ptr.hbm [resolvable:$true] %s4520_s26 }
 0x2e1   : > { %v1942_v55 = vpop.permute.xlu0 %1941  ;;  %2037 = vst.msk [vmem:[#allocation3 + $0x34] sm:$0xf] %vm2023_vm11, %v1954_v48  ;;  %v2177_v38 = vpop.permute.xlu2 %2176  ;;  %s3131_s10 = sshra.s32 %s2817_s26, 4  ;;  %s3132_s10 = int_to_ptr.hbm [resolvable:$true] %s3131_s10 }
 0x2e2   : > { %2031 = vst.msk [vmem:[#allocation3 + $0x1c] sm:$0xf] %vm2023_vm11, %v1942_v55  ;;  %s3133_s11 = scalar_lea.hbm %s3132_s10, 1  ;;  %p3138_p0 = scmp.lt.s32.totalorder %s3132_s10, %s4583_s5 }
 0x2e3   : > { %p3134_p11 = scmp.ne.s32.totalorder %s3132_s10, %s3133_s11  ;;  %p3139_p1 = scmp.lt.s32.totalorder %s3137_s14, %s3133_s11 }
 0x2e5   : > { %1989 = vrot.lane.b32.xlu1 %v1894_v59, %s3220_s18  ;;  %p3135_p12 = pnand %p3134_p11, %p3295_p5  ;;  %p3140_p2 = por %p3139_p1, %p3138_p0 }
 0x2e7   : > { %2214 = vrot.lane.b32.xlu0 %v2119_v37, %s3221_s19  ;;  %v1952_v1 = vpop.permute.xlu1 %1951  ;;  %1764 = vrot.lane.b32.xlu2 %v1669_v25, %s3219_s17  ;;  %v2475_v45 = vpop.f32.mrf.mxu0  ;;  %p3136_p13 = pneg %p3135_p12 }
 0x2e8   : > { %2036 = vst.msk [vmem:[#allocation3 + $0x30] sm:$0xf] %vm2023_vm11, %v1952_v1  ;;  %v2555_v50 = vpack.c.bf16 %v2475_v45, %v2475_v45  ;;  %v2689_v13 = vmul.f32 %v2475_v45, %v2475_v45  ;;  %v2619_v35 = vsel %vm304_vm0, %v2475_v45, 0.0 }
 0x2e9   : > { %v2165_v10 = vpop.permute.xlu0 %2164  ;;  %2261 = vst.msk [vmem:[#allocation3 + $0x30] sm:$0xf] %vm2248_vm12, %v2177_v38  ;;  %v1745_v0 = vpop.permute.xlu2 %1744  ;;  %p3141_p3 = pnand %p3140_p2, %p3136_p13 }
 0x2ea   : > { %2255 = vst.msk [vmem:[#allocation3 + $0x18] sm:$0xf] %vm2248_vm12, %v2165_v10  ;;  %v2721_v33 = vsel %vm304_vm0, %v2689_v13, 0.0 }
 0x2eb   : > { %2587 = vst.msk [vmem:[%s4240_s13] sm:$0xf] %vm447_vm3, %v2555_v50 }
 0x2ec   : > { %1820 = vst.msk [vmem:[#allocation3 + $0x54] sm:$0xf] %vm1798_vm10, %v1745_v0 }
 0x2ef   : > { %v2167_v42 = vpop.permute.xlu1 %2166  ;;  %2212 = vrot.lane.b32.xlu2 %v2118_v7, %s3221_s19  ;;  %v2477_v6 = vpop.f32.mrf.mxu0  ;;  %s2825_s19 = scalar_lea.hbm %s4584_s6, %s3278_s23  ;;  %s2797_s23 = scalar_lea.sflag [#allocation5], %s4507_s8 }
 0x2f0   : > { %2256 = vst.msk [vmem:[#allocation3 + $0x1c] sm:$0xf] %vm2248_vm12, %v2167_v42  ;;  %v2556_v31 = vpack.c.bf16 %v2477_v6, %v2477_v6  ;;  %v2620_v17 = vsel %vm304_vm0, %v2477_v6, 0.0  ;;  %v2690_v58 = vmul.f32 %v2477_v6, %v2477_v6  ;;  %s4525_s9 = sshll.u32 %s2825_s19, 4  ;;  %s2830_s9 = int_to_ptr.hbm [resolvable:$true] %s4525_s9 }
 0x2f1   : > { %v2179_v16 = vpop.permute.xlu0 %2178  ;;  %v1968_v22 = vpop.permute.xlu2 %1967  ;;  %v2621_v39 = vadd.f32 %v2620_v17, %v2619_v35 }
 0x2f2   : > { %2262 = vst.msk [vmem:[#allocation3 + $0x34] sm:$0xf] %vm2248_vm12, %v2179_v16  ;;  %v2722_v41 = vsel %vm304_vm0, %v2690_v58, 0.0 }
 0x2f3   : > { %2588 = vst.msk [vmem:[%s4240_s13 + $0x4] sm:$0xf] %vm447_vm3, %v2556_v31  ;;  %v2723_v49 = vadd.f32 %v2722_v41, %v2721_v33 }
 0x2f7   : > { %v1743_v63 = vpop.permute.xlu1 %1742  ;;  %v3040_v57 = vld [vmem:[#allocation3 + $0x18] sm:$0xff] }
 0x2f8   : > { %1819 = vst.msk [vmem:[#allocation3 + $0x50] sm:$0xf] %vm1798_vm10, %v1743_v63  ;;  %3020 = vmatmul.msk.bf16.gmra.mxu0 %vm2413_vm13, %v3040_v57 }
 0x2f9   : > { %v1755_v30 = vpop.permute.xlu0 %1754  ;;  %v3043_v5 = vld [vmem:[#allocation3 + $0x30] sm:$0xff]  ;;  %2044 = vst.msk [vmem:[#allocation3 + $0x50] sm:$0xf] %vm2023_vm11, %v1968_v22  ;;  %v1982_v2 = vpop.permute.xlu2 %1981 }
 0x2fa   : > { %1825 = vst.msk [vmem:[#allocation3 + $0x68] sm:$0xf] %vm1798_vm10, %v1755_v30  ;;  %3023 = vmatmul.msk.bf16.gmra.mxu1 %vm2413_vm13, %v3043_v5 }
 0x2ff   : > { %v1757_v51 = vpop.permute.xlu1 %1756 }
 0x300   : > { %1826 = vst.msk [vmem:[#allocation3 + $0x6c] sm:$0xf] %vm1798_vm10, %v1757_v51 }
 0x301   : > { %v1970_v24 = vpop.permute.xlu0 %1969  ;;  %2051 = vst.msk [vmem:[#allocation3 + $0x6c] sm:$0xf] %vm2023_vm11, %v1982_v2  ;;  %v2205_v34 = vpop.permute.xlu2 %2204 }
 0x302   : > { %2045 = vst.msk [vmem:[#allocation3 + $0x54] sm:$0xf] %vm2023_vm11, %v1970_v24 }
 0x305   : > { %v2480_v12 = vpop.f32.mrf.mxu0 }
 0x306   : > { %v2557_v53 = vpack.c.bf16 %v2480_v12, %v2480_v12  ;;  %v2622_v21 = vsel %vm304_vm0, %v2480_v12, 0.0  ;;  %v2691_v27 = vmul.f32 %v2480_v12, %v2480_v12 }
 0x307   : > { %v1980_v60 = vpop.permute.xlu1 %1979  ;;  %v2623_v14 = vadd.f32 %v2622_v21, %v2621_v39  ;;  %v4266_v20 = vpop.f32.mrf.mxu1 }
 0x308   : > { %2050 = vst.msk [vmem:[#allocation3 + $0x68] sm:$0xf] %vm2023_vm11, %v1980_v60  ;;  %v2724_v8 = vsel %vm304_vm0, %v2691_v27, 0.0  ;;  %v2563_v18 = vpack.c.bf16 %v4266_v20, %v4266_v20 }
 0x309   : > { %2589 = vst.msk [vmem:[%s4240_s13 + $0x8] sm:$0xf] %vm447_vm3, %v2557_v53  ;;  %v2193_v9 = vpop.permute.xlu0 %2192  ;;  %v1733_v4 = vpop.permute.xlu2 %1732  ;;  %v2725_v44 = vadd.f32 %v2724_v8, %v2723_v49 }
 0x30a   : > { %2269 = vst.msk [vmem:[#allocation3 + $0x50] sm:$0xf] %vm2248_vm12, %v2193_v9 }
 0x30b   : > { %2595 = vst.msk [vmem:[%s4240_s13 + $0x20] sm:$0xf] %vm447_vm3, %v2563_v18 }
 0x30c   : > { %2275 = vst.msk [vmem:[#allocation3 + $0x68] sm:$0xf] %vm2248_vm12, %v2205_v34 }
 0x30d   : > { %1814 = vst.msk [vmem:[#allocation3 + $0x3c] sm:$0xf] %vm1798_vm10, %v1733_v4  ;;  %v2482_v36 = vpop.f32.mrf.mxu0 }
 0x30e   : > { %v2558_v23 = vpack.c.bf16 %v2482_v36, %v2482_v36  ;;  %v2624_v47 = vsel %vm304_vm0, %v2482_v36, 0.0  ;;  %v2692_v52 = vmul.f32 %v2482_v36, %v2482_v36 }
 0x30f   : > { %v2195_v26 = vpop.permute.xlu1 %2194  ;;  %v2625_v54 = vadd.f32 %v2624_v47, %v2623_v14  ;;  %v4280_v43 = vpop.f32.mrf.mxu1 }
 0x310   : > { %2270 = vst.msk [vmem:[#allocation3 + $0x54] sm:$0xf] %vm2248_vm12, %v2195_v26  ;;  %v2726_v15 = vsel %vm304_vm0, %v2692_v52, 0.0  ;;  %v2564_v19 = vpack.c.bf16 %v4280_v43, %v4280_v43 }
 0x311   : > { %2590 = vst.msk [vmem:[%s4240_s13 + $0xc] sm:$0xf] %vm447_vm3, %v2558_v23  ;;  %v2207_v46 = vpop.permute.xlu0 %2206  ;;  %v2181_v32 = vpop.permute.xlu2 %2180  ;;  %v2727_v56 = vadd.f32 %v2726_v15, %v2725_v44 }
 0x312   : > { %2276 = vst.msk [vmem:[#allocation3 + $0x6c] sm:$0xf] %vm2248_vm12, %v2207_v46 }
 0x313   : > { %2596 = vst.msk [vmem:[%s4240_s13 + $0x24] sm:$0xf] %vm447_vm3, %v2564_v19 }
 0x317   : > { %v1731_v3 = vpop.permute.xlu1 %1730  ;;  %v3047_v48 = vld [vmem:[#allocation3 + $0x50] sm:$0xff] }
 0x318   : > { %1813 = vst.msk [vmem:[#allocation3 + $0x38] sm:$0xf] %vm1798_vm10, %v1731_v3  ;;  %3027 = vmatmul.msk.bf16.gmra.mxu2 %vm2413_vm13, %v3047_v48 }
 0x319   : > { %v1956_v62 = vpop.permute.xlu0 %1955  ;;  %v3050_v11 = vld [vmem:[#allocation3 + $0x68] sm:$0xff]  ;;  %v1747_v29 = vpop.permute.xlu2 %1746 }
 0x31a   : > { %2038 = vst.msk [vmem:[#allocation3 + $0x38] sm:$0xf] %vm2023_vm11, %v1956_v62  ;;  %3030 = vmatmul.msk.bf16.gmra.mxu3 %vm2413_vm13, %v3050_v11 }
 0x31b   : > { %2263 = vst.msk [vmem:[#allocation3 + $0x38] sm:$0xf] %vm2248_vm12, %v2181_v32 }
 0x31c   : > { %1821 = vst.msk [vmem:[#allocation3 + $0x58] sm:$0xf] %vm1798_vm10, %v1747_v29 }
 0x31d   : > { %v4296_v40 = vpop.f32.mrf.mxu2 }
 0x31e   : > { %v2571_v28 = vpack.c.bf16 %v4296_v40, %v4296_v40 }
 0x31f   : > { %v1958_v55 = vpop.permute.xlu1 %1957 }
 0x320   : > { %2039 = vst.msk [vmem:[#allocation3 + $0x3c] sm:$0xf] %vm2023_vm11, %v1958_v55 }
 0x321   : > { %2603 = vst.msk [vmem:[%s4240_s13 + $0x40] sm:$0xf] %vm447_vm3, %v2571_v28  ;;  %v2183_v59 = vpop.permute.xlu0 %2182  ;;  %v1761_v38 = vpop.permute.xlu2 %1760 }
 0x322   : > { %2264 = vst.msk [vmem:[#allocation3 + $0x3c] sm:$0xf] %vm2248_vm12, %v2183_v59 }
 0x325   : > { %v4304_v37 = vpop.f32.mrf.mxu2 }
 0x326   : > { %v2572_v25 = vpack.c.bf16 %v4304_v37, %v4304_v37 }
 0x327   : > { %v1535_v1 = vpop.permute.xlu1 %1534 }
 0x328   : > { %1602 = vst.msk [vmem:[#allocation3 + $0x74] sm:$0xf] %vm1572_vm8, %v1535_v1 }
 0x329   : > { %2604 = vst.msk [vmem:[%s4240_s13 + $0x44] sm:$0xf] %vm447_vm3, %v2572_v25  ;;  %v1749_v45 = vpop.permute.xlu0 %1748  ;;  %v3044_v61 = vld [vmem:[#allocation3 + $0x38] sm:$0xff]  ;;  %v1984_v10 = vpop.permute.xlu2 %1983  ;;  %v2697_v25 = vmul.f32 %v4266_v20, %v4266_v20 }
 0x32a   : > { %1822 = vst.msk [vmem:[#allocation3 + $0x5c] sm:$0xf] %vm1798_vm10, %v1749_v45  ;;  %3024 = vmatmul.msk.bf16.gmra.mxu1 %vm2413_vm13, %v3044_v61 }
 0x32b   : > { %1828 = vst.msk [vmem:[#allocation3 + $0x74] sm:$0xf] %vm1798_vm10, %v1761_v38 }
 0x32f   : > { %v1759_v50 = vpop.permute.xlu1 %1758 }
 0x330   : > { %1827 = vst.msk [vmem:[#allocation3 + $0x70] sm:$0xf] %vm1798_vm10, %v1759_v50 }
 0x331   : > { %v1972_v0 = vpop.permute.xlu0 %1971  ;;  %2052 = vst.msk [vmem:[#allocation3 + $0x70] sm:$0xf] %vm2023_vm11, %v1984_v10  ;;  %v2199_v7 = vpop.permute.xlu2 %2198 }
 0x332   : > { %2046 = vst.msk [vmem:[#allocation3 + $0x58] sm:$0xf] %vm2023_vm11, %v1972_v0  ;;  %v2634_v0 = vsel %vm304_vm0, %v4266_v20, 0.0 }
 0x335   : > { %v2485_v13 = vpop.f32.mrf.mxu0 }
 0x336   : > { %v2559_v6 = vpack.c.bf16 %v2485_v13, %v2485_v13  ;;  %v2626_v35 = vsel %vm304_vm0, %v2485_v13, 0.0  ;;  %v2693_v16 = vmul.f32 %v2485_v13, %v2485_v13 }
 0x337   : > { %v1974_v42 = vpop.permute.xlu1 %1973  ;;  %v2627_v31 = vadd.f32 %v2626_v35, %v2625_v54  ;;  %v4319_v17 = vpop.f32.mrf.mxu1 }
 0x338   : > { %2047 = vst.msk [vmem:[#allocation3 + $0x5c] sm:$0xf] %vm2023_vm11, %v1974_v42  ;;  %v2728_v58 = vsel %vm304_vm0, %v2693_v16, 0.0  ;;  %v2565_v39 = vpack.c.bf16 %v4319_v17, %v4319_v17  ;;  %v2736_v16 = vsel %vm304_vm0, %v2697_v25, 0.0 }
 0x339   : > { %2591 = vst.msk [vmem:[%s4240_s13 + $0x10] sm:$0xf] %vm447_vm3, %v2559_v6  ;;  %v1986_v22 = vpop.permute.xlu0 %1985  ;;  %v2729_v33 = vadd.f32 %v2728_v58, %v2727_v56  ;;  %v1537_v41 = vpop.permute.xlu2 %1536  ;;  %v2699_v58 = vmul.f32 %v4319_v17, %v4319_v17 }
 0x33a   : > { %2053 = vst.msk [vmem:[#allocation3 + $0x74] sm:$0xf] %vm2023_vm11, %v1986_v22 }
 0x33b   : > { %2597 = vst.msk [vmem:[%s4240_s13 + $0x28] sm:$0xf] %vm447_vm3, %v2565_v39 }
 0x33c   : > { %2272 = vst.msk [vmem:[#allocation3 + $0x5c] sm:$0xf] %vm2248_vm12, %v2199_v7  ;;  %v2698_v7 = vmul.f32 %v4280_v43, %v4280_v43 }
 0x33d   : > { %1603 = vst.msk [vmem:[#allocation3 + $0x78] sm:$0xf] %vm1572_vm8, %v1537_v41  ;;  %v2487_v49 = vpop.f32.mrf.mxu0 }
 0x33e   : > { %v2560_v57 = vpack.c.bf16 %v2487_v49, %v2487_v49  ;;  %v2628_v30 = vsel %vm304_vm0, %v2487_v49, 0.0  ;;  %v2694_v5 = vmul.f32 %v2487_v49, %v2487_v49  ;;  %v2738_v39 = vsel %vm304_vm0, %v2698_v7, 0.0 }
 0x33f   : > { %v2197_v63 = vpop.permute.xlu1 %2196  ;;  %v2629_v2 = vadd.f32 %v2628_v30, %v2627_v31  ;;  %v4333_v51 = vpop.f32.mrf.mxu1  ;;  %v2636_v31 = vsel %vm304_vm0, %v4280_v43, 0.0  ;;  %v2652_v7 = vsel %vm304_vm0, %v4304_v37, 0.0 }
 0x340   : > { %2271 = vst.msk [vmem:[#allocation3 + $0x58] sm:$0xf] %vm2248_vm12, %v2197_v63  ;;  %v2730_v24 = vsel %vm304_vm0, %v2694_v5, 0.0  ;;  %v2566_v12 = vpack.c.bf16 %v4333_v51, %v4333_v51  ;;  %v2700_v41 = vmul.f32 %v4333_v51, %v4333_v51  ;;  %v2640_v43 = vsel %vm304_vm0, %v4333_v51, 0.0 }
 0x341   : > { %2592 = vst.msk [vmem:[%s4240_s13 + $0x14] sm:$0xf] %vm447_vm3, %v2560_v57  ;;  %v2209_v34 = vpop.permute.xlu0 %2208  ;;  %v2731_v60 = vadd.f32 %v2730_v24, %v2729_v33  ;;  %v1765_v53 = vpop.permute.xlu2 %1764  ;;  %v2638_v33 = vsel %vm304_vm0, %v4319_v17, 0.0  ;;  %v2740_v57 = vsel %vm304_vm0, %v2699_v58, 0.0 }
 0x342   : > { %2277 = vst.msk [vmem:[#allocation3 + $0x70] sm:$0xf] %vm2248_vm12, %v2209_v34  ;;  %v2742_v24 = vsel %vm304_vm0, %v2700_v41, 0.0 }
 0x343   : > { %2598 = vst.msk [vmem:[%s4240_s13 + $0x2c] sm:$0xf] %vm447_vm3, %v2566_v12 }
 0x347   : > { %v2211_v21 = vpop.permute.xlu1 %2210  ;;  %v3048_v27 = vld [vmem:[#allocation3 + $0x58] sm:$0xff] }
 0x348   : > { %2278 = vst.msk [vmem:[#allocation3 + $0x74] sm:$0xf] %vm2248_vm12, %v2211_v21  ;;  %3028 = vmatmul.msk.bf16.gmra.mxu2 %vm2413_vm13, %v3048_v27 }
 0x349   : > { %v1539_v14 = vpop.permute.xlu0 %1538  ;;  %v2213_v18 = vpop.permute.xlu2 %2212 }
 0x34a   : > { %1604 = vst.msk [vmem:[#allocation3 + $0x7c] sm:$0xf] %vm1572_vm8, %v1539_v14 }
 0x34b   : > { %1830 = vst.msk [vmem:[#allocation3 + $0x7c] sm:$0xf] %vm1798_vm10, %v1765_v53 }
 0x34f   : > { %v1763_v8 = vpop.permute.xlu1 %1762  ;;  %v3051_v9 = vld [vmem:[#allocation3 + $0x70] sm:$0xff] }
 0x350   : > { %1829 = vst.msk [vmem:[#allocation3 + $0x78] sm:$0xf] %vm1798_vm10, %v1763_v8  ;;  %3031 = vmatmul.msk.bf16.gmra.mxu3 %vm2413_vm13, %v3051_v9 }
 0x351   : > { %v1988_v4 = vpop.permute.xlu0 %1987 }
 0x352   : > { %2054 = vst.msk [vmem:[#allocation3 + $0x78] sm:$0xf] %vm2023_vm11, %v1988_v4 }
 0x353   : > { %2279 = vst.msk [vmem:[#allocation3 + $0x78] sm:$0xf] %vm2248_vm12, %v2213_v18 }
 0x357   : > { %v1990_v44 = vpop.permute.xlu1 %1989 }
 0x358   : > { %2055 = vst.msk [vmem:[#allocation3 + $0x7c] sm:$0xf] %vm2023_vm11, %v1990_v44 }
 0x359   : > { %v2215_v36 = vpop.permute.xlu0 %2214 }
 0x35a   : > { %2280 = vst.msk [vmem:[#allocation3 + $0x7c] sm:$0xf] %vm2248_vm12, %v2215_v36 }
 0x35b   : > { %v4353_v26 = vpop.f32.mrf.mxu2 }
 0x35c   : > { %v2573_v23 = vpack.c.bf16 %v4353_v26, %v4353_v26 }
 0x35d   : > { %v4357_v47 = vpop.f32.mrf.mxu3 }
 0x35e   : > { %2605 = vst.msk [vmem:[%s4240_s13 + $0x48] sm:$0xf] %vm447_vm3, %v2573_v23  ;;  %v2579_v52 = vpack.c.bf16 %v4357_v47, %v4357_v47 }
 0x360   : > { %2611 = vst.msk [vmem:[%s4240_s13 + $0x60] sm:$0xf] %vm447_vm3, %v2579_v52 }
 0x361   : > { %v3052_v54 = vld [vmem:[#allocation3 + $0x78] sm:$0xff] }
 0x362   : > { %3032 = vmatmul.msk.bf16.gmra.mxu3 %vm2413_vm13, %v3052_v54 }
 0x363   : > { %v4366_v15 = vpop.f32.mrf.mxu2 }
 0x364   : > { %v2574_v46 = vpack.c.bf16 %v4366_v15, %v4366_v15 }
 0x365   : > { %v4370_v19 = vpop.f32.mrf.mxu3 }
 0x366   : > { %2606 = vst.msk [vmem:[%s4240_s13 + $0x4c] sm:$0xf] %vm447_vm3, %v2574_v46  ;;  %v2580_v32 = vpack.c.bf16 %v4370_v19, %v4370_v19 }
 0x368   : > { %2612 = vst.msk [vmem:[%s4240_s13 + $0x64] sm:$0xf] %vm447_vm3, %v2580_v32 }
 0x375   : > { %v2490_v56 = vpop.f32.mrf.mxu0 }
 0x376   : > { %v2561_v3 = vpack.c.bf16 %v2490_v56, %v2490_v56  ;;  %v2630_v48 = vsel %vm304_vm0, %v2490_v56, 0.0  ;;  %v2695_v62 = vmul.f32 %v2490_v56, %v2490_v56 }
 0x377   : > { %v2631_v11 = vadd.f32 %v2630_v48, %v2629_v2  ;;  %v2505_v29 = vpop.f32.mrf.mxu1 }
 0x378   : > { %2593 = vst.msk [vmem:[%s4240_s13 + $0x18] sm:$0xf] %vm447_vm3, %v2561_v3  ;;  %v2732_v28 = vsel %vm304_vm0, %v2695_v62, 0.0  ;;  %v2567_v55 = vpack.c.bf16 %v2505_v29, %v2505_v29  ;;  %v2701_v30 = vmul.f32 %v2505_v29, %v2505_v29  ;;  %v2642_v34 = vsel %vm304_vm0, %v2505_v29, 0.0 }
 0x379   : > { %v2733_v59 = vadd.f32 %v2732_v28, %v2731_v60  ;;  %v2705_v29 = vmul.f32 %v4296_v40, %v4296_v40 }
 0x37a   : > { %2599 = vst.msk [vmem:[%s4240_s13 + $0x30] sm:$0xf] %vm447_vm3, %v2567_v55  ;;  %v2744_v53 = vsel %vm304_vm0, %v2701_v30, 0.0 }
 0x37d   : > { %v2492_v38 = vpop.f32.mrf.mxu0 }
 0x37e   : > { %v2562_v1 = vpack.c.bf16 %v2492_v38, %v2492_v38  ;;  %v2632_v45 = vsel %vm304_vm0, %v2492_v38, 0.0  ;;  %v2696_v61 = vmul.f32 %v2492_v38, %v2492_v38 }
 0x37f   : > { %v2633_v10 = vadd.f32 %v2632_v45, %v2631_v11  ;;  %v2507_v50 = vpop.f32.mrf.mxu1  ;;  %v2706_v45 = vmul.f32 %v4304_v37, %v4304_v37  ;;  %v2656_v37 = vsel %vm304_vm0, %v4366_v15, 0.0 }
 0x380   : > { %2594 = vst.msk [vmem:[%s4240_s13 + $0x1c] sm:$0xf] %vm447_vm3, %v2562_v1  ;;  %v2734_v13 = vsel %vm304_vm0, %v2696_v61, 0.0  ;;  %v2568_v42 = vpack.c.bf16 %v2507_v50, %v2507_v50  ;;  %v2702_v17 = vmul.f32 %v2507_v50, %v2507_v50  ;;  %v2644_v21 = vsel %vm304_vm0, %v2507_v50, 0.0 }
 0x381   : > { %v2635_v6 = vadd.f32 %v2634_v0, %v2633_v10  ;;  %v2735_v35 = vadd.f32 %v2734_v13, %v2733_v59  ;;  %v2650_v1 = vsel %vm304_vm0, %v4296_v40, 0.0  ;;  %v2752_v0 = vsel %vm304_vm0, %v2705_v29, 0.0 }
 0x382   : > { %2600 = vst.msk [vmem:[%s4240_s13 + $0x34] sm:$0xf] %vm447_vm3, %v2568_v42  ;;  %v2746_v14 = vsel %vm304_vm0, %v2702_v17, 0.0  ;;  %v2707_v13 = vmul.f32 %v4353_v26, %v4353_v26  ;;  %v2754_v40 = vsel %vm304_vm0, %v2706_v45, 0.0 }
 0x383   : > { %v2637_v20 = vadd.f32 %v2636_v31, %v2635_v6  ;;  %v2737_v22 = vadd.f32 %v2736_v16, %v2735_v35  ;;  %v2654_v35 = vsel %vm304_vm0, %v4353_v26, 0.0  ;;  %v2708_v16 = vmul.f32 %v4366_v15, %v4366_v15 }
 0x385   : > { %v2639_v49 = vadd.f32 %v2638_v33, %v2637_v20  ;;  %v2739_v63 = vadd.f32 %v2738_v39, %v2737_v22  ;;  %v2756_v20 = vsel %vm304_vm0, %v2707_v13, 0.0  ;;  %v2758_v33 = vsel %vm304_vm0, %v2708_v16, 0.0 }
 0x387   : > { %v2741_v5 = vadd.f32 %v2740_v57, %v2739_v63  ;;  %v2641_v2 = vadd.f32 %v2640_v43, %v2639_v49 }
 0x389   : > { %v2643_v12 = vadd.f32 %v2642_v34, %v2641_v2  ;;  %v2743_v60 = vadd.f32 %v2742_v24, %v2741_v5 }
 0x38b   : > { %v2645_v27 = vadd.f32 %v2644_v21, %v2643_v12  ;;  %v2745_v51 = vadd.f32 %v2744_v53, %v2743_v60  ;;  %v2713_v53 = vmul.f32 %v4357_v47, %v4357_v47 }
 0x38d   : > { %v2747_v8 = vadd.f32 %v2746_v14, %v2745_v51 }
 0x39b   : > { %v2525_v9 = vpop.f32.mrf.mxu2 }
 0x39c   : > { %v2575_v18 = vpack.c.bf16 %v2525_v9, %v2525_v9  ;;  %v2709_v49 = vmul.f32 %v2525_v9, %v2525_v9  ;;  %v2658_v26 = vsel %vm304_vm0, %v2525_v9, 0.0 }
 0x39d   : > { %v4414_v4 = vpop.f32.mrf.mxu3 }
 0x39e   : > { %2607 = vst.msk [vmem:[%s4240_s13 + $0x50] sm:$0xf] %vm447_vm3, %v2575_v18  ;;  %v2581_v44 = vpack.c.bf16 %v4414_v4, %v4414_v4  ;;  %v2760_v30 = vsel %vm304_vm0, %v2709_v49, 0.0 }
 0x3a0   : > { %2613 = vst.msk [vmem:[%s4240_s13 + $0x68] sm:$0xf] %vm447_vm3, %v2581_v44 }
 0x3a3   : > { %v2527_v36 = vpop.f32.mrf.mxu2 }
 0x3a4   : > { %v2576_v23 = vpack.c.bf16 %v2527_v36, %v2527_v36  ;;  %v2710_v5 = vmul.f32 %v2527_v36, %v2527_v36  ;;  %v2660_v15 = vsel %vm304_vm0, %v2527_v36, 0.0 }
 0x3a5   : > { %v4422_v52 = vpop.f32.mrf.mxu3 }
 0x3a6   : > { %2608 = vst.msk [vmem:[%s4240_s13 + $0x54] sm:$0xf] %vm447_vm3, %v2576_v23  ;;  %v2582_v54 = vpack.c.bf16 %v4422_v52, %v4422_v52  ;;  %v2762_v12 = vsel %vm304_vm0, %v2710_v5, 0.0  ;;  %v2672_v45 = vsel %vm304_vm0, %v4422_v52, 0.0 }
 0x3a7   : > { %v2510_v46 = vpop.f32.mrf.mxu1 }
 0x3a8   : > { %2614 = vst.msk [vmem:[%s4240_s13 + $0x6c] sm:$0xf] %vm447_vm3, %v2582_v54  ;;  %v2569_v32 = vpack.c.bf16 %v2510_v46, %v2510_v46  ;;  %v2703_v56 = vmul.f32 %v2510_v46, %v2510_v46  ;;  %v2646_v3 = vsel %vm304_vm0, %v2510_v46, 0.0  ;;  %v2666_v54 = vsel %vm304_vm0, %v4357_v47, 0.0 }
 0x3a9   : > { %v2647_v62 = vadd.f32 %v2646_v3, %v2645_v27  ;;  %v2714_v46 = vmul.f32 %v4370_v19, %v4370_v19  ;;  %v2715_v47 = vmul.f32 %v4414_v4, %v4414_v4 }
 0x3aa   : > { %2601 = vst.msk [vmem:[%s4240_s13 + $0x38] sm:$0xf] %vm447_vm3, %v2569_v32  ;;  %v2748_v48 = vsel %vm304_vm0, %v2703_v56, 0.0 }
 0x3ab   : > { %v2749_v38 = vadd.f32 %v2748_v48, %v2747_v8  ;;  %v2768_v48 = vsel %vm304_vm0, %v2713_v53, 0.0 }
 0x3af   : > { %v2512_v11 = vpop.f32.mrf.mxu1 }
 0x3b0   : > { %v2570_v28 = vpack.c.bf16 %v2512_v11, %v2512_v11  ;;  %v2648_v55 = vsel %vm304_vm0, %v2512_v11, 0.0  ;;  %v2704_v59 = vmul.f32 %v2512_v11, %v2512_v11 }
 0x3b1   : > { %v2649_v25 = vadd.f32 %v2648_v55, %v2647_v62  ;;  %v2668_v62 = vsel %vm304_vm0, %v4370_v19, 0.0  ;;  %v2670_v55 = vsel %vm304_vm0, %v4414_v4, 0.0  ;;  %v2772_v19 = vsel %vm304_vm0, %v2715_v47, 0.0 }
 0x3b2   : > { %2602 = vst.msk [vmem:[%s4240_s13 + $0x3c] sm:$0xf] %vm447_vm3, %v2570_v28  ;;  %v2750_v61 = vsel %vm304_vm0, %v2704_v59, 0.0  ;;  %v2770_v28 = vsel %vm304_vm0, %v2714_v46, 0.0  ;;  %v2716_v59 = vmul.f32 %v4422_v52, %v4422_v52 }
 0x3b3   : > { %v2651_v10 = vadd.f32 %v2650_v1, %v2649_v25  ;;  %v2751_v50 = vadd.f32 %v2750_v61, %v2749_v38 }
 0x3b5   : > { %v2653_v42 = vadd.f32 %v2652_v7, %v2651_v10  ;;  %v2753_v6 = vadd.f32 %v2752_v0, %v2751_v50  ;;  %v2774_v0 = vsel %vm304_vm0, %v2716_v59, 0.0 }
 0x3b7   : > { %v2655_v31 = vadd.f32 %v2654_v35, %v2653_v42  ;;  %v2755_v58 = vadd.f32 %v2754_v40, %v2753_v6 }
 0x3b9   : > { %v2757_v22 = vadd.f32 %v2756_v20, %v2755_v58  ;;  %v2657_v39 = vadd.f32 %v2656_v37, %v2655_v31 }
 0x3bb   : > { %v2759_v41 = vadd.f32 %v2758_v33, %v2757_v22  ;;  %v2659_v43 = vadd.f32 %v2658_v26, %v2657_v39 }
 0x3bd   : > { %v2761_v24 = vadd.f32 %v2760_v30, %v2759_v41  ;;  %v2661_v17 = vadd.f32 %v2660_v15, %v2659_v43 }
 0x3bf   : > { %v2763_v27 = vadd.f32 %v2762_v12, %v2761_v24 }
 0x3cb   : > { %v2530_v63 = vpop.f32.mrf.mxu2 }
 0x3cc   : > { %v2577_v57 = vpack.c.bf16 %v2530_v63, %v2530_v63  ;;  %v2711_v2 = vmul.f32 %v2530_v63, %v2530_v63  ;;  %v2662_v34 = vsel %vm304_vm0, %v2530_v63, 0.0 }
 0x3cd   : > { %v2663_v21 = vadd.f32 %v2662_v34, %v2661_v17 }
 0x3ce   : > { %2609 = vst.msk [vmem:[%s4240_s13 + $0x58] sm:$0xf] %vm447_vm3, %v2577_v57  ;;  %v2764_v60 = vsel %vm304_vm0, %v2711_v2, 0.0 }
 0x3cf   : > { %v2765_v36 = vadd.f32 %v2764_v60, %v2763_v27 }
 0x3d3   : > { %v2532_v51 = vpop.f32.mrf.mxu2  ;;  %v2545_v14 = vpop.f32.mrf.mxu3 }
 0x3d4   : > { %v2578_v8 = vpack.c.bf16 %v2532_v51, %v2532_v51  ;;  %v2664_v9 = vsel %vm304_vm0, %v2532_v51, 0.0  ;;  %v2712_v18 = vmul.f32 %v2532_v51, %v2532_v51  ;;  %v2583_v44 = vpack.c.bf16 %v2545_v14, %v2545_v14 }
 0x3d5   : > { %v2665_v23 = vadd.f32 %v2664_v9, %v2663_v21  ;;  %v2717_v7 = vmul.f32 %v2545_v14, %v2545_v14  ;;  %v2674_v42 = vsel %vm304_vm0, %v2545_v14, 0.0 }
 0x3d6   : > { %2610 = vst.msk [vmem:[%s4240_s13 + $0x5c] sm:$0xf] %vm447_vm3, %v2578_v8  ;;  %v2766_v32 = vsel %vm304_vm0, %v2712_v18, 0.0 }
 0x3d7   : > { %v2667_v56 = vadd.f32 %v2666_v54, %v2665_v23  ;;  %v2767_v3 = vadd.f32 %v2766_v32, %v2765_v36  ;;  %2615 = vst.msk [vmem:[%s4240_s13 + $0x70] sm:$0xf] %vm447_vm3, %v2583_v44  ;;  %v2776_v35 = vsel %vm304_vm0, %v2717_v7, 0.0 }
 0x3d9   : > { %v2669_v11 = vadd.f32 %v2668_v62, %v2667_v56  ;;  %v2769_v29 = vadd.f32 %v2768_v48, %v2767_v3 }
 0x3db   : > { %v2771_v38 = vadd.f32 %v2770_v28, %v2769_v29  ;;  %v2671_v25 = vadd.f32 %v2670_v55, %v2669_v11  ;;  %v2547_v1 = vpop.f32.mrf.mxu3 }
 0x3dc   : > { %v2584_v61 = vpack.c.bf16 %v2547_v1, %v2547_v1  ;;  %v2718_v16 = vmul.f32 %v2547_v1, %v2547_v1  ;;  %v2676_v58 = vsel %vm304_vm0, %v2547_v1, 0.0 }
 0x3dd   : > { %v2673_v10 = vadd.f32 %v2672_v45, %v2671_v25  ;;  %v2773_v50 = vadd.f32 %v2772_v19, %v2771_v38 }
 0x3de   : > { %2616 = vst.msk [vmem:[%s4240_s13 + $0x74] sm:$0xf] %vm447_vm3, %v2584_v61  ;;  %v2778_v22 = vsel %vm304_vm0, %v2718_v16, 0.0 }
 0x3df   : > { %v2775_v4 = vadd.f32 %v2774_v0, %v2773_v50  ;;  %v2675_v40 = vadd.f32 %v2674_v42, %v2673_v10 }
 0x3e1   : > { %v2777_v31 = vadd.f32 %v2776_v35, %v2775_v4  ;;  %v2677_v37 = vadd.f32 %v2676_v58, %v2675_v40 }
 0x3e3   : > { %v2779_v33 = vadd.f32 %v2778_v22, %v2777_v31 }
 0x3e5   : > { %v2550_v13 = vpop.f32.mrf.mxu3 }
 0x3e6   : > { %v2585_v6 = vpack.c.bf16 %v2550_v13, %v2550_v13  ;;  %v2719_v52 = vmul.f32 %v2550_v13, %v2550_v13  ;;  %v2678_v20 = vsel %vm304_vm0, %v2550_v13, 0.0 }
 0x3e7   : > { %v2679_v41 = vadd.f32 %v2678_v20, %v2677_v37 }
 0x3e8   : > { %2617 = vst.msk [vmem:[%s4240_s13 + $0x78] sm:$0xf] %vm447_vm3, %v2585_v6  ;;  %v2780_v39 = vsel %vm304_vm0, %v2719_v52, 0.0 }
 0x3e9   : > { %v2781_v43 = vadd.f32 %v2780_v39, %v2779_v33 }
 0x3ed   : > { %v2552_v49 = vpop.f32.mrf.mxu3 }
 0x3ee   : > { %v2586_v63 = vpack.c.bf16 %v2552_v49, %v2552_v49  ;;  %v2680_v26 = vsel %vm304_vm0, %v2552_v49, 0.0  ;;  %v2720_v57 = vmul.f32 %v2552_v49, %v2552_v49 }
 0x3ef   : > { %v2681_v30 = vadd.f32 %v2680_v26, %v2679_v41 }
 0x3f0   : > { %2618 = vst.msk [vmem:[%s4240_s13 + $0x7c] sm:$0xf] %vm447_vm3, %v2586_v63  ;;  %v2782_v5 = vsel %vm304_vm0, %v2720_v57, 0.0 }
 0x3f1   : > { %v2682_v2 = vrot.slane %v2681_v30, 4  ;;  %v2783_v24 = vadd.f32 %v2782_v5, %v2781_v43 }
 0x3f3   : > { %v2683_v15 = vadd.f32 %v2682_v2, %v2681_v30  ;;  %v2784_v34 = vrot.slane %v2783_v24, 4 }
 0x3f5   : > { %v2684_v17 = vrot.slane %v2683_v15, 2  ;;  %v2785_v12 = vadd.f32 %v2784_v34, %v2783_v24 }
 0x3f7   : > { %v2685_v60 = vadd.f32 %v2684_v17, %v2683_v15  ;;  %v2786_v53 = vrot.slane %v2785_v12, 2 }
 0x3f9   : > { %v2686_v21 = vrot.slane %v2685_v60, 1  ;;  %v2787_v27 = vadd.f32 %v2786_v53, %v2785_v12 }
 0x3fb   : > { %v2687_v51 = vadd.f32 %v2686_v21, %v2685_v60  ;;  %v2788_v14 = vrot.slane %v2787_v27, 1 }
 0x3fd   : > { %2688 = vst.msk [vmem:[%s254_s20] sm:$0x1] %vm313_vm1, %v2687_v51  ;;  %v2789_v8 = vadd.f32 %v2788_v14, %v2787_v27 }
 0x3fe   : > { %3144 = shalt.err (!%p3141_p3)
}
 0x3ff   : > { %3064 = dma.vmem_to_hbm [thread:$0]  (%p3295_p5), %s2815_s24, 16, %s2817_s26, %s2797_s23   ;;  %2790 = vst.msk [vmem:[%s260_s27] sm:$0x1] %vm313_vm1, %v2789_v8 }
 0x400   : > { %s2801_s17 = scalar_lea.sflag [#allocation7], %s4507_s8  ;;  %s3159_s18 = sshra.s32 %s2830_s9, 4  ;;  %s3160_s18 = int_to_ptr.hbm [resolvable:$true] %s3159_s18 }
 0x401   : > { %s3161_s19 = scalar_lea.hbm %s3160_s18, 1  ;;  %s3165_s11 = scalar_lea.hbm %s4584_s6, 3 }
 0x402   : > { %p3162_p4 = scmp.ne.s32.totalorder %s3160_s18, %s3161_s19  ;;  %p3166_p9 = scmp.lt.s32.totalorder %s3160_s18, %s4584_s6 }
 0x403   : > { %p3167_p10 = scmp.lt.s32.totalorder %s3165_s11, %s3161_s19 }
 0x404   : > { %p3163_p7 = pnand %p3162_p4, %p3295_p5 }
 0x405   : > { %p3168_p11 = por %p3167_p10, %p3166_p9 }
 0x406   : > { %p3164_p8 = pneg %p3163_p7 }
 0x408   : > { %p3169_p12 = pnand %p3168_p11, %p3164_p8 }
 0x40a   : > { %3172 = shalt.err (!%p3169_p12)
}
 0x40b   : > { %3065 = dma.vmem_to_hbm [thread:$0]  (%p3295_p5), %s2828_s7, 16, %s2830_s9, %s2801_s17  }
 0x40c PF: > { %p3075_p13 = scmp.ge.s32.totalorder %s3211_s3, 2  ;;  %s2849_s8 = sand.u32 1, %s3199_s21  }
 0x40d   : > { %s2850_s24 = scalar_lea.sflag [#allocation5], %s2849_s8 }
 0x40e   : > { %p3069_p0 = pnand %p3075_p13, %p3299_p6 }
 0x410   : > { %p3070_p1 = pneg %p3069_p0 }
 0x412   : > { %3190 = dma.done.wait (%p3070_p1), %s2850_s24, 16  }
 0x413   : > { %3192 = vsyncadd (%p3070_p1), %s2850_s24, 4294967280  ;;  %s2859_s26 = scalar_lea.sflag [#allocation7], %s2849_s8 }
 0x414   : > { %3194 = dma.done.wait (%p3070_p1), %s2859_s26, 16  }
 0x415   : > { %3196 = vsyncadd (%p3070_p1), %s2859_s26, 4294967280  ;;  %p20_p5 = scmp.ge.s32.totalorder %s3282_s25, 5   ;;  %s4587_s21 = smov %s3203_s22 }
 0x416   : > { %s4588_s22 = smov %s3207_s2  ;;  %s4589_s2 = smov %s3293_s28 }
 0x417   : > { %s4590_s3 = smov %s3282_s25  ;;  %22 = sbr.rel (!%p20_p5) target bundleno = 5 (0x5), region = 103 }
 0x41c   :  { %2864 = vsyncpa [#allocation5], 1 }
 0x41d   :  { %2866 = vsyncpa [#allocation5 + $0x1], 1 }
 0x41e   :  { %2867 = vsyncpa [#allocation7], 1 }
 0x41f   :  { %2869 = vsyncpa [#allocation7 + $0x1], 1 }

</bundles_post_ra>
